<compile_context>
chip_gen: v6e
topology: v6e:2x2x1
jax: 0.10.0
libtpu: 0.0.40
codegen_flags: <defaults>
</compile_context>

<pallas_src>
import functools
import math

import numpy as np

import jax
import jax.numpy as jnp
from jax.experimental import pallas as pl
from jax.experimental.pallas import tpu as pltpu


# ----------------------------------------------------------------------------
# Positional-encoding table: constant-folded once (host-side, float64).
# Reproduces the PyTorch double loop exactly (including its odd-column
# exponent quirk):
#   pe[pos, i]   = sin(pos / 10000 ** (2*i/d_model))       (even i)
#   pe[pos, i+1] = cos(pos / 10000 ** (2*(i+1)/d_model))
# ----------------------------------------------------------------------------
def _build_pe_table(max_seq_len, d_model):
    pos = np.arange(max_seq_len, dtype=np.float64)[:, None]
    i = np.arange(0, d_model, 2, dtype=np.float64)
    pe = np.zeros((max_seq_len, d_model), dtype=np.float64)
    pe[:, 0::2] = np.sin(pos / np.power(10000.0, 2.0 * i / d_model))
    pe[:, 1::2] = np.cos(pos / np.power(10000.0, 2.0 * (i + 1) / d_model))
    return jnp.asarray(pe, dtype=jnp.float32)


_LAYER_KEYS = ("ln1_g", "ln1_b", "wq", "bq", "wk", "bk", "wv", "bv",
               "wo", "bo", "ln2_g", "ln2_b", "w1", "b1", "w2", "b2")


def _layer_norm(v, g, b, eps=1e-5):
    mu = jnp.mean(v, axis=-1, keepdims=True)
    vc = v - mu
    var = jnp.mean(vc * vc, axis=-1, keepdims=True)
    return vc * jax.lax.rsqrt(var + eps) * g + b


# ----------------------------------------------------------------------------
# The single fused forward kernel.  One grid step = one batch tile (TB seqs).
# ----------------------------------------------------------------------------
def _transformer_kernel(ids_ref, pe_ref, emb_ref, *rest, n_heads, n_layers):
    out_ref = rest[-1]
    lnf_g_ref, lnf_b_ref, wout_ref = rest[-4:-1]
    layer_refs = rest[:-4]

    ids = ids_ref[...]                                   # (TB, S) int32
    TB, S = ids.shape
    V, D = emb_ref.shape
    H = n_heads
    dh = D // H
    rows = TB * S

    # ---- embedding lookup as a one-hot MXU matmul (V == 128 lanes) ----
    onehot = (jax.lax.broadcasted_iota(jnp.int32, (TB, S, V), 2)
              == ids[:, :, None]).astype(jnp.float32)
    x = jnp.dot(onehot.reshape(rows, V), emb_ref[...],
                preferred_element_type=jnp.float32)      # (rows, D)
    # ---- positional encoding add (table precomputed host-side, once) ----
    x = (x.reshape(TB, S, D) + pe_ref[...]).reshape(rows, D)

    for l in range(n_layers):                            # static unroll
        (ln1_g, ln1_b, wq, bq, wk, bk, wv, bv, wo, bo,
         ln2_g, ln2_b, w1, b1, w2, b2) = layer_refs[16 * l:16 * (l + 1)]

        # ---- multi-head self-attention sublayer ----
        x2 = _layer_norm(x, ln1_g[...], ln1_b[...])
        # 1/sqrt(dh) is already folded into wq / bq (host-side, at init).
        q = jnp.dot(x2, wq[...], preferred_element_type=jnp.float32) + bq[...]
        k = jnp.dot(x2, wk[...], preferred_element_type=jnp.float32) + bk[...]
        v = jnp.dot(x2, wv[...], preferred_element_type=jnp.float32) + bv[...]

        wo_full = wo[...]                                # (D, D)
        attn = jnp.zeros((rows, D), dtype=jnp.float32)
        # Static per-head loop (H is tiny); every head is batched over the TB
        # sequences via flash-style einsums.  No concat: each head is
        # accumulated straight into the output projection.
        for h in range(H):
            lo = h * dh
            qh = q[:, lo:lo + dh].reshape(TB, S, dh)
            kh = k[:, lo:lo + dh].reshape(TB, S, dh)
            vh = v[:, lo:lo + dh].reshape(TB, S, dh)
            s = jnp.einsum('bqd,bkd->bqk', qh, kh,
                           preferred_element_type=jnp.float32)    # (TB, S, S)
            s = s - jnp.max(s, axis=-1, keepdims=True)
            e = jnp.exp(s)
            p = e * pl.reciprocal(jnp.sum(e, axis=-1, keepdims=True),
                                  approx=True)
            oh = jnp.einsum('bqk,bkd->bqd', p, vh,
                            preferred_element_type=jnp.float32)   # (TB, S, dh)
            attn = attn + jnp.dot(oh.reshape(rows, dh),
                                  wo_full[lo:lo + dh, :],
                                  preferred_element_type=jnp.float32)
        x = x + attn + bo[...]                           # dropout1: identity (eval)

        # ---- feed-forward sublayer ----
        x2 = _layer_norm(x, ln2_g[...], ln2_b[...])
        h1 = jnp.maximum(
            jnp.dot(x2, w1[...], preferred_element_type=jnp.float32) + b1[...],
            0.0)
        ff = jnp.dot(h1, w2[...], preferred_element_type=jnp.float32) + b2[...]
        x = x + ff                                       # dropout2: identity (eval)

    # ---- final LayerNorm + vocab projection (lane-dense output: V = 128) ----
    xn = _layer_norm(x, lnf_g_ref[...], lnf_b_ref[...])
    logits = jnp.dot(xn, wout_ref[...], preferred_element_type=jnp.float32)
    out_ref[...] = logits.reshape(TB, S, V)


def _pick_batch_tile(batch, seq_len):
    """Smallest batch tile giving >= 128 rows per grid step when possible.

    Any TB < batch must also be a multiple of 8 so the (TB, S) ids block stays
    layout-legal; otherwise fall back to the whole batch in one step.
    """
    candidates = [tb for tb in range(1, batch + 1)
                  if batch % tb == 0 and (tb == batch or tb % 8 == 0)]
    for tb in sorted(candidates):
        if tb * seq_len >= 128:
            return tb
    return max(candidates)


def transformer_forward(params, ids, n_heads):
    B, S = ids.shape
    emb = params["emb"]
    V, D = emb.shape
    pe = params["pe"][:S]                                # static slice, no kernel

    TB = _pick_batch_tile(B, S)
    n_bt = B // TB

    flat_w = []
    for lyr in params["layers"]:
        flat_w += [lyr[k] for k in _LAYER_KEYS]
    tail = [params["lnf_g"], params["lnf_b"], params["wout"]]

    def full2d(a):
        return pl.BlockSpec(a.shape, lambda i: (0, 0))

    kernel = functools.partial(_transformer_kernel, n_heads=n_heads,
                               n_layers=len(params["layers"]))

    return pl.pallas_call(
        kernel,
        out_shape=jax.ShapeDtypeStruct((B, S, V), jnp.float32),
        grid=(n_bt,),
        in_specs=([pl.BlockSpec((TB, S), lambda i: (i, 0))]
                  + [full2d(a) for a in [pe, emb] + flat_w + tail]),
        out_specs=pl.BlockSpec((TB, S, V), lambda i: (i, 0, 0)),
        compiler_params=pltpu.CompilerParams(
            dimension_semantics=("parallel",)),
    )(ids, pe, emb, *flat_w, *tail)


# ----------------------------------------------------------------------------
# Parameters.  Linear weights are stored as (in, out) — i.e. W^T of nn.Linear —
# so kernels compute y = x @ W + b without transposes.  The packed qkv linear
# of the PyTorch module is stored as three separate (D, D) linears, which is
# mathematically identical.
# ----------------------------------------------------------------------------
def init_params(key, *, n_code, n_heads, embed_size, inner_ff_size,
                n_embeddings, seq_len):
    D, F, V, L, S = embed_size, inner_ff_size, n_embeddings, n_code, seq_len
    ks = iter(jax.random.split(key, 8 + 16 * L))

    def nrm(shape, scale):
        return jax.random.normal(next(ks), shape, dtype=jnp.float32) * scale

    layers = []
    for _ in range(L):
        layers.append(dict(
            ln1_g=1.0 + nrm((1, D), 0.1), ln1_b=nrm((1, D), 0.1),
            wq=nrm((D, D), 0.08), bq=nrm((1, D), 0.02),
            wk=nrm((D, D), 0.08), bk=nrm((1, D), 0.02),
            wv=nrm((D, D), 0.08), bv=nrm((1, D), 0.02),
            wo=nrm((D, D), 0.08), bo=nrm((1, D), 0.02),
            ln2_g=1.0 + nrm((1, D), 0.1), ln2_b=nrm((1, D), 0.1),
            w1=nrm((D, F), 0.08), b1=nrm((1, F), 0.02),
            w2=nrm((F, D), 0.08), b2=nrm((1, D), 0.02),
        ))
    return dict(
        emb=nrm((V, D), 1.0),
        pe=_build_pe_table(S, D),     # built ONCE; sliced per forward
        layers=layers,
        lnf_g=1.0 + nrm((1, D), 0.1),
        lnf_b=nrm((1, D), 0.1),
        wout=nrm((D, V), 0.08),       # final linear, bias=False
    )


def fold_attention_scale(params, n_heads):
    """Fold the 1/sqrt(dh) attention scale into wq/bq (host-side, once)."""
    D = params["emb"].shape[1]
    inv = 1.0 / math.sqrt(D // n_heads)
    layers = []
    for lyr in params["layers"]:
        l2 = dict(lyr)
        l2["wq"] = lyr["wq"] * inv
        l2["bq"] = lyr["bq"] * inv
        layers.append(l2)
    out = dict(params)
    out["layers"] = layers
    return out


# ----------------------------------------------------------------------------
# Pure-JAX reference (mirrors the PyTorch module in eval mode, unscaled wq).
# ----------------------------------------------------------------------------
def _ln_ref(x, g, b, eps=1e-5):
    mu = jnp.mean(x, axis=-1, keepdims=True)
    var = jnp.mean((x - mu) ** 2, axis=-1, keepdims=True)
    return (x - mu) / jnp.sqrt(var + eps) * g + b


def _reference_forward(params, ids, n_heads):
    x = params["emb"][ids] + params["pe"][None, :ids.shape[1], :]
    B, S, D = x.shape
    H, dh = n_heads, D // n_heads
    for lyr in params["layers"]:
        x2 = _ln_ref(x, lyr["ln1_g"], lyr["ln1_b"])
        q = x2 @ lyr["wq"] + lyr["bq"]
        k = x2 @ lyr["wk"] + lyr["bk"]
        v = x2 @ lyr["wv"] + lyr["bv"]

        def split(t):
            return t.reshape(B, S, H, dh).transpose(0, 2, 1, 3)

        qh, kh, vh = split(q), split(k), split(v)
        s = (qh @ kh.transpose(0, 1, 3, 2)) / math.sqrt(dh)
        p = jax.nn.softmax(s, axis=-1)
        attn = (p @ vh).transpose(0, 2, 1, 3).reshape(B, S, D)
        x = x + (attn @ lyr["wo"] + lyr["bo"])
        x2 = _ln_ref(x, lyr["ln2_g"], lyr["ln2_b"])
        x = x + (jax.nn.relu(x2 @ lyr["w1"] + lyr["b1"]) @ lyr["w2"] + lyr["b2"])
    x = _ln_ref(x, params["lnf_g"], params["lnf_b"])
    return x @ params["wout"]


if __name__ == "__main__":
    cfg = dict(n_code=2, n_heads=4, embed_size=32, inner_ff_size=64,
               n_embeddings=128, seq_len=8)
    batch = 2

    key = jax.random.PRNGKey(0)
    pkey, dkey = jax.random.split(key)
    params = init_params(pkey, **cfg)
    kernel_params = fold_attention_scale(params, cfg["n_heads"])  # once, host-side
    ids = jax.random.randint(dkey, (batch, cfg["seq_len"]), 0,
                             cfg["n_embeddings"], dtype=jnp.int32)

    out = transformer_forward(kernel_params, ids, cfg["n_heads"])
    out = jax.block_until_ready(out)

    ref = _reference_forward(params, ids, cfg["n_heads"])
    assert out.shape == (batch, cfg["seq_len"], cfg["n_embeddings"]), out.shape
    assert out.dtype == jnp.float32
    max_err = float(jnp.max(jnp.abs(out - ref)))
    assert jnp.allclose(out, ref, atol=1e-3, rtol=1e-3), \
        f"mismatch vs reference (max err {max_err})"

    print("KERNEL_OK")
</pallas_src>

<mosaic_0001>
module attributes {stable_mosaic.version = 11 : i64} {
  func.func @_transformer_kernel(%arg0: i32, %arg1: memref<2x8xi32, #tpu.memory_space<vmem>>, %arg2: memref<8x32xf32, #tpu.memory_space<vmem>>, %arg3: memref<128x32xf32, #tpu.memory_space<vmem>>, %arg4: memref<1x32xf32, #tpu.memory_space<vmem>>, %arg5: memref<1x32xf32, #tpu.memory_space<vmem>>, %arg6: memref<32x32xf32, #tpu.memory_space<vmem>>, %arg7: memref<1x32xf32, #tpu.memory_space<vmem>>, %arg8: memref<32x32xf32, #tpu.memory_space<vmem>>, %arg9: memref<1x32xf32, #tpu.memory_space<vmem>>, %arg10: memref<32x32xf32, #tpu.memory_space<vmem>>, %arg11: memref<1x32xf32, #tpu.memory_space<vmem>>, %arg12: memref<32x32xf32, #tpu.memory_space<vmem>>, %arg13: memref<1x32xf32, #tpu.memory_space<vmem>>, %arg14: memref<1x32xf32, #tpu.memory_space<vmem>>, %arg15: memref<1x32xf32, #tpu.memory_space<vmem>>, %arg16: memref<32x64xf32, #tpu.memory_space<vmem>>, %arg17: memref<1x64xf32, #tpu.memory_space<vmem>>, %arg18: memref<64x32xf32, #tpu.memory_space<vmem>>, %arg19: memref<1x32xf32, #tpu.memory_space<vmem>>, %arg20: memref<1x32xf32, #tpu.memory_space<vmem>>, %arg21: memref<1x32xf32, #tpu.memory_space<vmem>>, %arg22: memref<32x32xf32, #tpu.memory_space<vmem>>, %arg23: memref<1x32xf32, #tpu.memory_space<vmem>>, %arg24: memref<32x32xf32, #tpu.memory_space<vmem>>, %arg25: memref<1x32xf32, #tpu.memory_space<vmem>>, %arg26: memref<32x32xf32, #tpu.memory_space<vmem>>, %arg27: memref<1x32xf32, #tpu.memory_space<vmem>>, %arg28: memref<32x32xf32, #tpu.memory_space<vmem>>, %arg29: memref<1x32xf32, #tpu.memory_space<vmem>>, %arg30: memref<1x32xf32, #tpu.memory_space<vmem>>, %arg31: memref<1x32xf32, #tpu.memory_space<vmem>>, %arg32: memref<32x64xf32, #tpu.memory_space<vmem>>, %arg33: memref<1x64xf32, #tpu.memory_space<vmem>>, %arg34: memref<64x32xf32, #tpu.memory_space<vmem>>, %arg35: memref<1x32xf32, #tpu.memory_space<vmem>>, %arg36: memref<1x32xf32, #tpu.memory_space<vmem>>, %arg37: memref<1x32xf32, #tpu.memory_space<vmem>>, %arg38: memref<32x128xf32, #tpu.memory_space<vmem>>, %arg39: memref<2x8x128xf32, #tpu.memory_space<vmem>>) attributes {dimension_semantics = [#tpu.dimension_semantics<parallel>], iteration_bounds = array<i64: 1>, scalar_prefetch = 0 : i64, scratch_operands = 0 : i64, tpu.core_type = #tpu.core_type<tc>, window_params = [{transform_indices = @transform_0, window_bounds = array<i64: 2, 8>}, {pipeline_mode = #tpu.pipeline_mode<synchronous>, transform_indices = @transform_1, window_bounds = array<i64: 8, 32>}, {pipeline_mode = #tpu.pipeline_mode<synchronous>, transform_indices = @transform_2, window_bounds = array<i64: 128, 32>}, {pipeline_mode = #tpu.pipeline_mode<synchronous>, transform_indices = @transform_3, window_bounds = array<i64: 1, 32>}, {pipeline_mode = #tpu.pipeline_mode<synchronous>, transform_indices = @transform_4, window_bounds = array<i64: 1, 32>}, {pipeline_mode = #tpu.pipeline_mode<synchronous>, transform_indices = @transform_5, window_bounds = array<i64: 32, 32>}, {pipeline_mode = #tpu.pipeline_mode<synchronous>, transform_indices = @transform_6, window_bounds = array<i64: 1, 32>}, {pipeline_mode = #tpu.pipeline_mode<synchronous>, transform_indices = @transform_7, window_bounds = array<i64: 32, 32>}, {pipeline_mode = #tpu.pipeline_mode<synchronous>, transform_indices = @transform_8, window_bounds = array<i64: 1, 32>}, {pipeline_mode = #tpu.pipeline_mode<synchronous>, transform_indices = @transform_9, window_bounds = array<i64: 32, 32>}, {pipeline_mode = #tpu.pipeline_mode<synchronous>, transform_indices = @transform_10, window_bounds = array<i64: 1, 32>}, {pipeline_mode = #tpu.pipeline_mode<synchronous>, transform_indices = @transform_11, window_bounds = array<i64: 32, 32>}, {pipeline_mode = #tpu.pipeline_mode<synchronous>, transform_indices = @transform_12, window_bounds = array<i64: 1, 32>}, {pipeline_mode = #tpu.pipeline_mode<synchronous>, transform_indices = @transform_13, window_bounds = array<i64: 1, 32>}, {pipeline_mode = #tpu.pipeline_mode<synchronous>, transform_indices = @transform_14, window_bounds = array<i64: 1, 32>}, {pipeline_mode = #tpu.pipeline_mode<synchronous>, transform_indices = @transform_15, window_bounds = array<i64: 32, 64>}, {pipeline_mode = #tpu.pipeline_mode<synchronous>, transform_indices = @transform_16, window_bounds = array<i64: 1, 64>}, {pipeline_mode = #tpu.pipeline_mode<synchronous>, transform_indices = @transform_17, window_bounds = array<i64: 64, 32>}, {pipeline_mode = #tpu.pipeline_mode<synchronous>, transform_indices = @transform_18, window_bounds = array<i64: 1, 32>}, {pipeline_mode = #tpu.pipeline_mode<synchronous>, transform_indices = @transform_19, window_bounds = array<i64: 1, 32>}, {pipeline_mode = #tpu.pipeline_mode<synchronous>, transform_indices = @transform_20, window_bounds = array<i64: 1, 32>}, {pipeline_mode = #tpu.pipeline_mode<synchronous>, transform_indices = @transform_21, window_bounds = array<i64: 32, 32>}, {pipeline_mode = #tpu.pipeline_mode<synchronous>, transform_indices = @transform_22, window_bounds = array<i64: 1, 32>}, {pipeline_mode = #tpu.pipeline_mode<synchronous>, transform_indices = @transform_23, window_bounds = array<i64: 32, 32>}, {pipeline_mode = #tpu.pipeline_mode<synchronous>, transform_indices = @transform_24, window_bounds = array<i64: 1, 32>}, {pipeline_mode = #tpu.pipeline_mode<synchronous>, transform_indices = @transform_25, window_bounds = array<i64: 32, 32>}, {pipeline_mode = #tpu.pipeline_mode<synchronous>, transform_indices = @transform_26, window_bounds = array<i64: 1, 32>}, {pipeline_mode = #tpu.pipeline_mode<synchronous>, transform_indices = @transform_27, window_bounds = array<i64: 32, 32>}, {pipeline_mode = #tpu.pipeline_mode<synchronous>, transform_indices = @transform_28, window_bounds = array<i64: 1, 32>}, {pipeline_mode = #tpu.pipeline_mode<synchronous>, transform_indices = @transform_29, window_bounds = array<i64: 1, 32>}, {pipeline_mode = #tpu.pipeline_mode<synchronous>, transform_indices = @transform_30, window_bounds = array<i64: 1, 32>}, {pipeline_mode = #tpu.pipeline_mode<synchronous>, transform_indices = @transform_31, window_bounds = array<i64: 32, 64>}, {pipeline_mode = #tpu.pipeline_mode<synchronous>, transform_indices = @transform_32, window_bounds = array<i64: 1, 64>}, {pipeline_mode = #tpu.pipeline_mode<synchronous>, transform_indices = @transform_33, window_bounds = array<i64: 64, 32>}, {pipeline_mode = #tpu.pipeline_mode<synchronous>, transform_indices = @transform_34, window_bounds = array<i64: 1, 32>}, {pipeline_mode = #tpu.pipeline_mode<synchronous>, transform_indices = @transform_35, window_bounds = array<i64: 1, 32>}, {pipeline_mode = #tpu.pipeline_mode<synchronous>, transform_indices = @transform_36, window_bounds = array<i64: 1, 32>}, {pipeline_mode = #tpu.pipeline_mode<synchronous>, transform_indices = @transform_37, window_bounds = array<i64: 32, 128>}, {transform_indices = @transform_38, window_bounds = array<i64: 2, 8, 128>}]} {
    %c0 = arith.constant 0 : index
    %c0_0 = arith.constant 0 : index
    %0 = vector.load %arg1[%c0, %c0_0] : memref<2x8xi32, #tpu.memory_space<vmem>>, vector<2x8xi32>
    %1 = tpu.iota {dimensions = array<i32: 2>} : vector<2x8x128xi32>
    %2 = vector.shape_cast %0 : vector<2x8xi32> to vector<2x8x1xi32>
    %3 = vector.broadcast %2 : vector<2x8x1xi32> to vector<2x8x128xi32>
    %4 = arith.cmpi eq, %1, %3 : vector<2x8x128xi32>
    %5 = arith.extui %4 : vector<2x8x128xi1> to vector<2x8x128xi32>
    %6 = arith.sitofp %5 : vector<2x8x128xi32> to vector<2x8x128xf32>
    %7 = vector.shape_cast %6 : vector<2x8x128xf32> to vector<16x128xf32>
    %c0_1 = arith.constant 0 : index
    %c0_2 = arith.constant 0 : index
    %8 = vector.load %arg3[%c0_1, %c0_2] : memref<128x32xf32, #tpu.memory_space<vmem>>, vector<128x32xf32>
    %cst = arith.constant dense<0.000000e+00> : vector<16x32xf32>
    %9 = tpu.matmul %7, %8, %cst {dimension_numbers = #tpu.dot_dimension_numbers<[1], [0], [0], [1], [0, 0, 1, 1], [], []>} : vector<16x128xf32>, vector<128x32xf32>, vector<16x32xf32> -> vector<16x32xf32>
    %10 = vector.shape_cast %9 : vector<16x32xf32> to vector<2x8x32xf32>
    %c0_3 = arith.constant 0 : index
    %c0_4 = arith.constant 0 : index
    %11 = vector.load %arg2[%c0_3, %c0_4] : memref<8x32xf32, #tpu.memory_space<vmem>>, vector<8x32xf32>
    %12 = vector.shape_cast %11 : vector<8x32xf32> to vector<1x8x32xf32>
    %13 = vector.broadcast %12 : vector<1x8x32xf32> to vector<2x8x32xf32>
    %14 = arith.addf %10, %13 : vector<2x8x32xf32>
    %15 = vector.shape_cast %14 : vector<2x8x32xf32> to vector<16x32xf32>
    %c0_5 = arith.constant 0 : index
    %c0_6 = arith.constant 0 : index
    %16 = vector.load %arg4[%c0_5, %c0_6] : memref<1x32xf32, #tpu.memory_space<vmem>>, vector<1x32xf32>
    %c0_7 = arith.constant 0 : index
    %c0_8 = arith.constant 0 : index
    %17 = vector.load %arg5[%c0_7, %c0_8] : memref<1x32xf32, #tpu.memory_space<vmem>>, vector<1x32xf32>
    %cst_9 = arith.constant dense<0.000000e+00> : vector<16xf32>
    %18 = vector.multi_reduction <add>, %15, %cst_9 [1] : vector<16x32xf32> to vector<16xf32>
    %19 = vector.shape_cast %18 : vector<16xf32> to vector<16x1xf32>
    %cst_10 = arith.constant 3.200000e+01 : f32
    %20 = vector.broadcast %cst_10 : f32 to vector<16x1xf32>
    %21 = arith.divf %19, %20 : vector<16x1xf32>
    %22 = vector.broadcast %21 : vector<16x1xf32> to vector<16x32xf32>
    %23 = arith.subf %15, %22 : vector<16x32xf32>
    %24 = arith.mulf %23, %23 : vector<16x32xf32>
    %cst_11 = arith.constant dense<0.000000e+00> : vector<16xf32>
    %25 = vector.multi_reduction <add>, %24, %cst_11 [1] : vector<16x32xf32> to vector<16xf32>
    %26 = vector.shape_cast %25 : vector<16xf32> to vector<16x1xf32>
    %cst_12 = arith.constant 3.200000e+01 : f32
    %27 = vector.broadcast %cst_12 : f32 to vector<16x1xf32>
    %28 = arith.divf %26, %27 : vector<16x1xf32>
    %cst_13 = arith.constant 9.99999974E-6 : f32
    %29 = vector.broadcast %cst_13 : f32 to vector<16x1xf32>
    %30 = arith.addf %28, %29 : vector<16x1xf32>
    %31 = math.rsqrt %30 : vector<16x1xf32>
    %32 = vector.broadcast %31 : vector<16x1xf32> to vector<16x32xf32>
    %33 = arith.mulf %23, %32 : vector<16x32xf32>
    %34 = vector.broadcast %16 : vector<1x32xf32> to vector<16x32xf32>
    %35 = arith.mulf %33, %34 : vector<16x32xf32>
    %36 = vector.broadcast %17 : vector<1x32xf32> to vector<16x32xf32>
    %37 = arith.addf %35, %36 : vector<16x32xf32>
    %c0_14 = arith.constant 0 : index
    %c0_15 = arith.constant 0 : index
    %38 = vector.load %arg6[%c0_14, %c0_15] : memref<32x32xf32, #tpu.memory_space<vmem>>, vector<32x32xf32>
    %cst_16 = arith.constant dense<0.000000e+00> : vector<16x32xf32>
    %39 = tpu.matmul %37, %38, %cst_16 {dimension_numbers = #tpu.dot_dimension_numbers<[1], [0], [0], [1], [0, 0, 1, 1], [], []>} : vector<16x32xf32>, vector<32x32xf32>, vector<16x32xf32> -> vector<16x32xf32>
    %c0_17 = arith.constant 0 : index
    %c0_18 = arith.constant 0 : index
    %40 = vector.load %arg7[%c0_17, %c0_18] : memref<1x32xf32, #tpu.memory_space<vmem>>, vector<1x32xf32>
    %41 = vector.broadcast %40 : vector<1x32xf32> to vector<16x32xf32>
    %42 = arith.addf %39, %41 : vector<16x32xf32>
    %c0_19 = arith.constant 0 : index
    %c0_20 = arith.constant 0 : index
    %43 = vector.load %arg8[%c0_19, %c0_20] : memref<32x32xf32, #tpu.memory_space<vmem>>, vector<32x32xf32>
    %cst_21 = arith.constant dense<0.000000e+00> : vector<16x32xf32>
    %44 = tpu.matmul %37, %43, %cst_21 {dimension_numbers = #tpu.dot_dimension_numbers<[1], [0], [0], [1], [0, 0, 1, 1], [], []>} : vector<16x32xf32>, vector<32x32xf32>, vector<16x32xf32> -> vector<16x32xf32>
    %c0_22 = arith.constant 0 : index
    %c0_23 = arith.constant 0 : index
    %45 = vector.load %arg9[%c0_22, %c0_23] : memref<1x32xf32, #tpu.memory_space<vmem>>, vector<1x32xf32>
    %46 = vector.broadcast %45 : vector<1x32xf32> to vector<16x32xf32>
    %47 = arith.addf %44, %46 : vector<16x32xf32>
    %c0_24 = arith.constant 0 : index
    %c0_25 = arith.constant 0 : index
    %48 = vector.load %arg10[%c0_24, %c0_25] : memref<32x32xf32, #tpu.memory_space<vmem>>, vector<32x32xf32>
    %cst_26 = arith.constant dense<0.000000e+00> : vector<16x32xf32>
    %49 = tpu.matmul %37, %48, %cst_26 {dimension_numbers = #tpu.dot_dimension_numbers<[1], [0], [0], [1], [0, 0, 1, 1], [], []>} : vector<16x32xf32>, vector<32x32xf32>, vector<16x32xf32> -> vector<16x32xf32>
    %c0_27 = arith.constant 0 : index
    %c0_28 = arith.constant 0 : index
    %50 = vector.load %arg11[%c0_27, %c0_28] : memref<1x32xf32, #tpu.memory_space<vmem>>, vector<1x32xf32>
    %51 = vector.broadcast %50 : vector<1x32xf32> to vector<16x32xf32>
    %52 = arith.addf %49, %51 : vector<16x32xf32>
    %c0_29 = arith.constant 0 : index
    %c0_30 = arith.constant 0 : index
    %53 = vector.load %arg12[%c0_29, %c0_30] : memref<32x32xf32, #tpu.memory_space<vmem>>, vector<32x32xf32>
    %cst_31 = arith.constant 0.000000e+00 : f32
    %54 = vector.broadcast %cst_31 : f32 to vector<16x32xf32>
    %55 = vector.extract_strided_slice %42 {offsets = [0, 0], sizes = [16, 8], strides = [1, 1]} : vector<16x32xf32> to vector<16x8xf32>
    %56 = vector.shape_cast %55 : vector<16x8xf32> to vector<2x8x8xf32>
    %57 = vector.extract_strided_slice %47 {offsets = [0, 0], sizes = [16, 8], strides = [1, 1]} : vector<16x32xf32> to vector<16x8xf32>
    %58 = vector.shape_cast %57 : vector<16x8xf32> to vector<2x8x8xf32>
    %59 = vector.extract_strided_slice %52 {offsets = [0, 0], sizes = [16, 8], strides = [1, 1]} : vector<16x32xf32> to vector<16x8xf32>
    %60 = vector.shape_cast %59 : vector<16x8xf32> to vector<2x8x8xf32>
    "tpu.trace_start"() <{level = 10 : i32, message = "bqd,bkd->bqk"}> : () -> ()
    %cst_32 = arith.constant dense<0.000000e+00> : vector<2x8x8xf32>
    %61 = tpu.matmul %56, %58, %cst_32 {dimension_numbers = #tpu.dot_dimension_numbers<[2], [2], [1], [1], [0, 0, 0, 1, 1, 1], [0], [0]>} : vector<2x8x8xf32>, vector<2x8x8xf32>, vector<2x8x8xf32> -> vector<2x8x8xf32>
    "tpu.trace_stop"() : () -> ()
    %cst_33 = arith.constant dense<0xFF800000> : vector<2x8xf32>
    %62 = vector.multi_reduction <maximumf>, %61, %cst_33 [2] : vector<2x8x8xf32> to vector<2x8xf32>
    %63 = vector.shape_cast %62 : vector<2x8xf32> to vector<2x8x1xf32>
    %64 = vector.broadcast %63 : vector<2x8x1xf32> to vector<2x8x8xf32>
    %65 = arith.subf %61, %64 : vector<2x8x8xf32>
    %66 = math.exp %65 : vector<2x8x8xf32>
    %cst_34 = arith.constant dense<0.000000e+00> : vector<2x8xf32>
    %67 = vector.multi_reduction <add>, %66, %cst_34 [2] : vector<2x8x8xf32> to vector<2x8xf32>
    %68 = vector.shape_cast %67 : vector<2x8xf32> to vector<2x8x1xf32>
    %69 = tpu.reciprocal %68 {approx = true} : vector<2x8x1xf32> -> vector<2x8x1xf32>
    %70 = vector.broadcast %69 : vector<2x8x1xf32> to vector<2x8x8xf32>
    %71 = arith.mulf %66, %70 : vector<2x8x8xf32>
    "tpu.trace_start"() <{level = 10 : i32, message = "bqk,bkd->bqd"}> : () -> ()
    %cst_35 = arith.constant dense<0.000000e+00> : vector<2x8x8xf32>
    %72 = tpu.matmul %71, %60, %cst_35 {dimension_numbers = #tpu.dot_dimension_numbers<[2], [1], [1], [2], [0, 0, 0, 1, 1, 2], [0], [0]>} : vector<2x8x8xf32>, vector<2x8x8xf32>, vector<2x8x8xf32> -> vector<2x8x8xf32>
    "tpu.trace_stop"() : () -> ()
    %73 = vector.shape_cast %72 : vector<2x8x8xf32> to vector<16x8xf32>
    %74 = vector.extract_strided_slice %53 {offsets = [0, 0], sizes = [8, 32], strides = [1, 1]} : vector<32x32xf32> to vector<8x32xf32>
    %cst_36 = arith.constant dense<0.000000e+00> : vector<16x32xf32>
    %75 = tpu.matmul %73, %74, %cst_36 {dimension_numbers = #tpu.dot_dimension_numbers<[1], [0], [0], [1], [0, 0, 1, 1], [], []>} : vector<16x8xf32>, vector<8x32xf32>, vector<16x32xf32> -> vector<16x32xf32>
    %76 = arith.addf %54, %75 : vector<16x32xf32>
    %77 = vector.extract_strided_slice %42 {offsets = [0, 8], sizes = [16, 8], strides = [1, 1]} : vector<16x32xf32> to vector<16x8xf32>
    %78 = vector.shape_cast %77 : vector<16x8xf32> to vector<2x8x8xf32>
    %79 = vector.extract_strided_slice %47 {offsets = [0, 8], sizes = [16, 8], strides = [1, 1]} : vector<16x32xf32> to vector<16x8xf32>
    %80 = vector.shape_cast %79 : vector<16x8xf32> to vector<2x8x8xf32>
    %81 = vector.extract_strided_slice %52 {offsets = [0, 8], sizes = [16, 8], strides = [1, 1]} : vector<16x32xf32> to vector<16x8xf32>
    %82 = vector.shape_cast %81 : vector<16x8xf32> to vector<2x8x8xf32>
    "tpu.trace_start"() <{level = 10 : i32, message = "bqd,bkd->bqk"}> : () -> ()
    %cst_37 = arith.constant dense<0.000000e+00> : vector<2x8x8xf32>
    %83 = tpu.matmul %78, %80, %cst_37 {dimension_numbers = #tpu.dot_dimension_numbers<[2], [2], [1], [1], [0, 0, 0, 1, 1, 1], [0], [0]>} : vector<2x8x8xf32>, vector<2x8x8xf32>, vector<2x8x8xf32> -> vector<2x8x8xf32>
    "tpu.trace_stop"() : () -> ()
    %cst_38 = arith.constant dense<0xFF800000> : vector<2x8xf32>
    %84 = vector.multi_reduction <maximumf>, %83, %cst_38 [2] : vector<2x8x8xf32> to vector<2x8xf32>
    %85 = vector.shape_cast %84 : vector<2x8xf32> to vector<2x8x1xf32>
    %86 = vector.broadcast %85 : vector<2x8x1xf32> to vector<2x8x8xf32>
    %87 = arith.subf %83, %86 : vector<2x8x8xf32>
    %88 = math.exp %87 : vector<2x8x8xf32>
    %cst_39 = arith.constant dense<0.000000e+00> : vector<2x8xf32>
    %89 = vector.multi_reduction <add>, %88, %cst_39 [2] : vector<2x8x8xf32> to vector<2x8xf32>
    %90 = vector.shape_cast %89 : vector<2x8xf32> to vector<2x8x1xf32>
    %91 = tpu.reciprocal %90 {approx = true} : vector<2x8x1xf32> -> vector<2x8x1xf32>
    %92 = vector.broadcast %91 : vector<2x8x1xf32> to vector<2x8x8xf32>
    %93 = arith.mulf %88, %92 : vector<2x8x8xf32>
    "tpu.trace_start"() <{level = 10 : i32, message = "bqk,bkd->bqd"}> : () -> ()
    %cst_40 = arith.constant dense<0.000000e+00> : vector<2x8x8xf32>
    %94 = tpu.matmul %93, %82, %cst_40 {dimension_numbers = #tpu.dot_dimension_numbers<[2], [1], [1], [2], [0, 0, 0, 1, 1, 2], [0], [0]>} : vector<2x8x8xf32>, vector<2x8x8xf32>, vector<2x8x8xf32> -> vector<2x8x8xf32>
    "tpu.trace_stop"() : () -> ()
    %95 = vector.shape_cast %94 : vector<2x8x8xf32> to vector<16x8xf32>
    %96 = vector.extract_strided_slice %53 {offsets = [8, 0], sizes = [8, 32], strides = [1, 1]} : vector<32x32xf32> to vector<8x32xf32>
    %cst_41 = arith.constant dense<0.000000e+00> : vector<16x32xf32>
    %97 = tpu.matmul %95, %96, %cst_41 {dimension_numbers = #tpu.dot_dimension_numbers<[1], [0], [0], [1], [0, 0, 1, 1], [], []>} : vector<16x8xf32>, vector<8x32xf32>, vector<16x32xf32> -> vector<16x32xf32>
    %98 = arith.addf %76, %97 : vector<16x32xf32>
    %99 = vector.extract_strided_slice %42 {offsets = [0, 16], sizes = [16, 8], strides = [1, 1]} : vector<16x32xf32> to vector<16x8xf32>
    %100 = vector.shape_cast %99 : vector<16x8xf32> to vector<2x8x8xf32>
    %101 = vector.extract_strided_slice %47 {offsets = [0, 16], sizes = [16, 8], strides = [1, 1]} : vector<16x32xf32> to vector<16x8xf32>
    %102 = vector.shape_cast %101 : vector<16x8xf32> to vector<2x8x8xf32>
    %103 = vector.extract_strided_slice %52 {offsets = [0, 16], sizes = [16, 8], strides = [1, 1]} : vector<16x32xf32> to vector<16x8xf32>
    %104 = vector.shape_cast %103 : vector<16x8xf32> to vector<2x8x8xf32>
    "tpu.trace_start"() <{level = 10 : i32, message = "bqd,bkd->bqk"}> : () -> ()
    %cst_42 = arith.constant dense<0.000000e+00> : vector<2x8x8xf32>
    %105 = tpu.matmul %100, %102, %cst_42 {dimension_numbers = #tpu.dot_dimension_numbers<[2], [2], [1], [1], [0, 0, 0, 1, 1, 1], [0], [0]>} : vector<2x8x8xf32>, vector<2x8x8xf32>, vector<2x8x8xf32> -> vector<2x8x8xf32>
    "tpu.trace_stop"() : () -> ()
    %cst_43 = arith.constant dense<0xFF800000> : vector<2x8xf32>
    %106 = vector.multi_reduction <maximumf>, %105, %cst_43 [2] : vector<2x8x8xf32> to vector<2x8xf32>
    %107 = vector.shape_cast %106 : vector<2x8xf32> to vector<2x8x1xf32>
    %108 = vector.broadcast %107 : vector<2x8x1xf32> to vector<2x8x8xf32>
    %109 = arith.subf %105, %108 : vector<2x8x8xf32>
    %110 = math.exp %109 : vector<2x8x8xf32>
    %cst_44 = arith.constant dense<0.000000e+00> : vector<2x8xf32>
    %111 = vector.multi_reduction <add>, %110, %cst_44 [2] : vector<2x8x8xf32> to vector<2x8xf32>
    %112 = vector.shape_cast %111 : vector<2x8xf32> to vector<2x8x1xf32>
    %113 = tpu.reciprocal %112 {approx = true} : vector<2x8x1xf32> -> vector<2x8x1xf32>
    %114 = vector.broadcast %113 : vector<2x8x1xf32> to vector<2x8x8xf32>
    %115 = arith.mulf %110, %114 : vector<2x8x8xf32>
    "tpu.trace_start"() <{level = 10 : i32, message = "bqk,bkd->bqd"}> : () -> ()
    %cst_45 = arith.constant dense<0.000000e+00> : vector<2x8x8xf32>
    %116 = tpu.matmul %115, %104, %cst_45 {dimension_numbers = #tpu.dot_dimension_numbers<[2], [1], [1], [2], [0, 0, 0, 1, 1, 2], [0], [0]>} : vector<2x8x8xf32>, vector<2x8x8xf32>, vector<2x8x8xf32> -> vector<2x8x8xf32>
    "tpu.trace_stop"() : () -> ()
    %117 = vector.shape_cast %116 : vector<2x8x8xf32> to vector<16x8xf32>
    %118 = vector.extract_strided_slice %53 {offsets = [16, 0], sizes = [8, 32], strides = [1, 1]} : vector<32x32xf32> to vector<8x32xf32>
    %cst_46 = arith.constant dense<0.000000e+00> : vector<16x32xf32>
    %119 = tpu.matmul %117, %118, %cst_46 {dimension_numbers = #tpu.dot_dimension_numbers<[1], [0], [0], [1], [0, 0, 1, 1], [], []>} : vector<16x8xf32>, vector<8x32xf32>, vector<16x32xf32> -> vector<16x32xf32>
    %120 = arith.addf %98, %119 : vector<16x32xf32>
    %121 = vector.extract_strided_slice %42 {offsets = [0, 24], sizes = [16, 8], strides = [1, 1]} : vector<16x32xf32> to vector<16x8xf32>
    %122 = vector.shape_cast %121 : vector<16x8xf32> to vector<2x8x8xf32>
    %123 = vector.extract_strided_slice %47 {offsets = [0, 24], sizes = [16, 8], strides = [1, 1]} : vector<16x32xf32> to vector<16x8xf32>
    %124 = vector.shape_cast %123 : vector<16x8xf32> to vector<2x8x8xf32>
    %125 = vector.extract_strided_slice %52 {offsets = [0, 24], sizes = [16, 8], strides = [1, 1]} : vector<16x32xf32> to vector<16x8xf32>
    %126 = vector.shape_cast %125 : vector<16x8xf32> to vector<2x8x8xf32>
    "tpu.trace_start"() <{level = 10 : i32, message = "bqd,bkd->bqk"}> : () -> ()
    %cst_47 = arith.constant dense<0.000000e+00> : vector<2x8x8xf32>
    %127 = tpu.matmul %122, %124, %cst_47 {dimension_numbers = #tpu.dot_dimension_numbers<[2], [2], [1], [1], [0, 0, 0, 1, 1, 1], [0], [0]>} : vector<2x8x8xf32>, vector<2x8x8xf32>, vector<2x8x8xf32> -> vector<2x8x8xf32>
    "tpu.trace_stop"() : () -> ()
    %cst_48 = arith.constant dense<0xFF800000> : vector<2x8xf32>
    %128 = vector.multi_reduction <maximumf>, %127, %cst_48 [2] : vector<2x8x8xf32> to vector<2x8xf32>
    %129 = vector.shape_cast %128 : vector<2x8xf32> to vector<2x8x1xf32>
    %130 = vector.broadcast %129 : vector<2x8x1xf32> to vector<2x8x8xf32>
    %131 = arith.subf %127, %130 : vector<2x8x8xf32>
    %132 = math.exp %131 : vector<2x8x8xf32>
    %cst_49 = arith.constant dense<0.000000e+00> : vector<2x8xf32>
    %133 = vector.multi_reduction <add>, %132, %cst_49 [2] : vector<2x8x8xf32> to vector<2x8xf32>
    %134 = vector.shape_cast %133 : vector<2x8xf32> to vector<2x8x1xf32>
    %135 = tpu.reciprocal %134 {approx = true} : vector<2x8x1xf32> -> vector<2x8x1xf32>
    %136 = vector.broadcast %135 : vector<2x8x1xf32> to vector<2x8x8xf32>
    %137 = arith.mulf %132, %136 : vector<2x8x8xf32>
    "tpu.trace_start"() <{level = 10 : i32, message = "bqk,bkd->bqd"}> : () -> ()
    %cst_50 = arith.constant dense<0.000000e+00> : vector<2x8x8xf32>
    %138 = tpu.matmul %137, %126, %cst_50 {dimension_numbers = #tpu.dot_dimension_numbers<[2], [1], [1], [2], [0, 0, 0, 1, 1, 2], [0], [0]>} : vector<2x8x8xf32>, vector<2x8x8xf32>, vector<2x8x8xf32> -> vector<2x8x8xf32>
    "tpu.trace_stop"() : () -> ()
    %139 = vector.shape_cast %138 : vector<2x8x8xf32> to vector<16x8xf32>
    %140 = vector.extract_strided_slice %53 {offsets = [24, 0], sizes = [8, 32], strides = [1, 1]} : vector<32x32xf32> to vector<8x32xf32>
    %cst_51 = arith.constant dense<0.000000e+00> : vector<16x32xf32>
    %141 = tpu.matmul %139, %140, %cst_51 {dimension_numbers = #tpu.dot_dimension_numbers<[1], [0], [0], [1], [0, 0, 1, 1], [], []>} : vector<16x8xf32>, vector<8x32xf32>, vector<16x32xf32> -> vector<16x32xf32>
    %142 = arith.addf %120, %141 : vector<16x32xf32>
    %143 = arith.addf %15, %142 : vector<16x32xf32>
    %c0_52 = arith.constant 0 : index
    %c0_53 = arith.constant 0 : index
    %144 = vector.load %arg13[%c0_52, %c0_53] : memref<1x32xf32, #tpu.memory_space<vmem>>, vector<1x32xf32>
    %145 = vector.broadcast %144 : vector<1x32xf32> to vector<16x32xf32>
    %146 = arith.addf %143, %145 : vector<16x32xf32>
    %c0_54 = arith.constant 0 : index
    %c0_55 = arith.constant 0 : index
    %147 = vector.load %arg14[%c0_54, %c0_55] : memref<1x32xf32, #tpu.memory_space<vmem>>, vector<1x32xf32>
    %c0_56 = arith.constant 0 : index
    %c0_57 = arith.constant 0 : index
    %148 = vector.load %arg15[%c0_56, %c0_57] : memref<1x32xf32, #tpu.memory_space<vmem>>, vector<1x32xf32>
    %cst_58 = arith.constant dense<0.000000e+00> : vector<16xf32>
    %149 = vector.multi_reduction <add>, %146, %cst_58 [1] : vector<16x32xf32> to vector<16xf32>
    %150 = vector.shape_cast %149 : vector<16xf32> to vector<16x1xf32>
    %cst_59 = arith.constant 3.200000e+01 : f32
    %151 = vector.broadcast %cst_59 : f32 to vector<16x1xf32>
    %152 = arith.divf %150, %151 : vector<16x1xf32>
    %153 = vector.broadcast %152 : vector<16x1xf32> to vector<16x32xf32>
    %154 = arith.subf %146, %153 : vector<16x32xf32>
    %155 = arith.mulf %154, %154 : vector<16x32xf32>
    %cst_60 = arith.constant dense<0.000000e+00> : vector<16xf32>
    %156 = vector.multi_reduction <add>, %155, %cst_60 [1] : vector<16x32xf32> to vector<16xf32>
    %157 = vector.shape_cast %156 : vector<16xf32> to vector<16x1xf32>
    %cst_61 = arith.constant 3.200000e+01 : f32
    %158 = vector.broadcast %cst_61 : f32 to vector<16x1xf32>
    %159 = arith.divf %157, %158 : vector<16x1xf32>
    %cst_62 = arith.constant 9.99999974E-6 : f32
    %160 = vector.broadcast %cst_62 : f32 to vector<16x1xf32>
    %161 = arith.addf %159, %160 : vector<16x1xf32>
    %162 = math.rsqrt %161 : vector<16x1xf32>
    %163 = vector.broadcast %162 : vector<16x1xf32> to vector<16x32xf32>
    %164 = arith.mulf %154, %163 : vector<16x32xf32>
    %165 = vector.broadcast %147 : vector<1x32xf32> to vector<16x32xf32>
    %166 = arith.mulf %164, %165 : vector<16x32xf32>
    %167 = vector.broadcast %148 : vector<1x32xf32> to vector<16x32xf32>
    %168 = arith.addf %166, %167 : vector<16x32xf32>
    %c0_63 = arith.constant 0 : index
    %c0_64 = arith.constant 0 : index
    %169 = vector.load %arg16[%c0_63, %c0_64] : memref<32x64xf32, #tpu.memory_space<vmem>>, vector<32x64xf32>
    %cst_65 = arith.constant dense<0.000000e+00> : vector<16x64xf32>
    %170 = tpu.matmul %168, %169, %cst_65 {dimension_numbers = #tpu.dot_dimension_numbers<[1], [0], [0], [1], [0, 0, 1, 1], [], []>} : vector<16x32xf32>, vector<32x64xf32>, vector<16x64xf32> -> vector<16x64xf32>
    %c0_66 = arith.constant 0 : index
    %c0_67 = arith.constant 0 : index
    %171 = vector.load %arg17[%c0_66, %c0_67] : memref<1x64xf32, #tpu.memory_space<vmem>>, vector<1x64xf32>
    %172 = vector.broadcast %171 : vector<1x64xf32> to vector<16x64xf32>
    %173 = arith.addf %170, %172 : vector<16x64xf32>
    %cst_68 = arith.constant 0.000000e+00 : f32
    %174 = vector.broadcast %cst_68 : f32 to vector<16x64xf32>
    %175 = arith.maximumf %173, %174 : vector<16x64xf32>
    %c0_69 = arith.constant 0 : index
    %c0_70 = arith.constant 0 : index
    %176 = vector.load %arg18[%c0_69, %c0_70] : memref<64x32xf32, #tpu.memory_space<vmem>>, vector<64x32xf32>
    %cst_71 = arith.constant dense<0.000000e+00> : vector<16x32xf32>
    %177 = tpu.matmul %175, %176, %cst_71 {dimension_numbers = #tpu.dot_dimension_numbers<[1], [0], [0], [1], [0, 0, 1, 1], [], []>} : vector<16x64xf32>, vector<64x32xf32>, vector<16x32xf32> -> vector<16x32xf32>
    %c0_72 = arith.constant 0 : index
    %c0_73 = arith.constant 0 : index
    %178 = vector.load %arg19[%c0_72, %c0_73] : memref<1x32xf32, #tpu.memory_space<vmem>>, vector<1x32xf32>
    %179 = vector.broadcast %178 : vector<1x32xf32> to vector<16x32xf32>
    %180 = arith.addf %177, %179 : vector<16x32xf32>
    %181 = arith.addf %146, %180 : vector<16x32xf32>
    %c0_74 = arith.constant 0 : index
    %c0_75 = arith.constant 0 : index
    %182 = vector.load %arg20[%c0_74, %c0_75] : memref<1x32xf32, #tpu.memory_space<vmem>>, vector<1x32xf32>
    %c0_76 = arith.constant 0 : index
    %c0_77 = arith.constant 0 : index
    %183 = vector.load %arg21[%c0_76, %c0_77] : memref<1x32xf32, #tpu.memory_space<vmem>>, vector<1x32xf32>
    %cst_78 = arith.constant dense<0.000000e+00> : vector<16xf32>
    %184 = vector.multi_reduction <add>, %181, %cst_78 [1] : vector<16x32xf32> to vector<16xf32>
    %185 = vector.shape_cast %184 : vector<16xf32> to vector<16x1xf32>
    %cst_79 = arith.constant 3.200000e+01 : f32
    %186 = vector.broadcast %cst_79 : f32 to vector<16x1xf32>
    %187 = arith.divf %185, %186 : vector<16x1xf32>
    %188 = vector.broadcast %187 : vector<16x1xf32> to vector<16x32xf32>
    %189 = arith.subf %181, %188 : vector<16x32xf32>
    %190 = arith.mulf %189, %189 : vector<16x32xf32>
    %cst_80 = arith.constant dense<0.000000e+00> : vector<16xf32>
    %191 = vector.multi_reduction <add>, %190, %cst_80 [1] : vector<16x32xf32> to vector<16xf32>
    %192 = vector.shape_cast %191 : vector<16xf32> to vector<16x1xf32>
    %cst_81 = arith.constant 3.200000e+01 : f32
    %193 = vector.broadcast %cst_81 : f32 to vector<16x1xf32>
    %194 = arith.divf %192, %193 : vector<16x1xf32>
    %cst_82 = arith.constant 9.99999974E-6 : f32
    %195 = vector.broadcast %cst_82 : f32 to vector<16x1xf32>
    %196 = arith.addf %194, %195 : vector<16x1xf32>
    %197 = math.rsqrt %196 : vector<16x1xf32>
    %198 = vector.broadcast %197 : vector<16x1xf32> to vector<16x32xf32>
    %199 = arith.mulf %189, %198 : vector<16x32xf32>
    %200 = vector.broadcast %182 : vector<1x32xf32> to vector<16x32xf32>
    %201 = arith.mulf %199, %200 : vector<16x32xf32>
    %202 = vector.broadcast %183 : vector<1x32xf32> to vector<16x32xf32>
    %203 = arith.addf %201, %202 : vector<16x32xf32>
    %c0_83 = arith.constant 0 : index
    %c0_84 = arith.constant 0 : index
    %204 = vector.load %arg22[%c0_83, %c0_84] : memref<32x32xf32, #tpu.memory_space<vmem>>, vector<32x32xf32>
    %cst_85 = arith.constant dense<0.000000e+00> : vector<16x32xf32>
    %205 = tpu.matmul %203, %204, %cst_85 {dimension_numbers = #tpu.dot_dimension_numbers<[1], [0], [0], [1], [0, 0, 1, 1], [], []>} : vector<16x32xf32>, vector<32x32xf32>, vector<16x32xf32> -> vector<16x32xf32>
    %c0_86 = arith.constant 0 : index
    %c0_87 = arith.constant 0 : index
    %206 = vector.load %arg23[%c0_86, %c0_87] : memref<1x32xf32, #tpu.memory_space<vmem>>, vector<1x32xf32>
    %207 = vector.broadcast %206 : vector<1x32xf32> to vector<16x32xf32>
    %208 = arith.addf %205, %207 : vector<16x32xf32>
    %c0_88 = arith.constant 0 : index
    %c0_89 = arith.constant 0 : index
    %209 = vector.load %arg24[%c0_88, %c0_89] : memref<32x32xf32, #tpu.memory_space<vmem>>, vector<32x32xf32>
    %cst_90 = arith.constant dense<0.000000e+00> : vector<16x32xf32>
    %210 = tpu.matmul %203, %209, %cst_90 {dimension_numbers = #tpu.dot_dimension_numbers<[1], [0], [0], [1], [0, 0, 1, 1], [], []>} : vector<16x32xf32>, vector<32x32xf32>, vector<16x32xf32> -> vector<16x32xf32>
    %c0_91 = arith.constant 0 : index
    %c0_92 = arith.constant 0 : index
    %211 = vector.load %arg25[%c0_91, %c0_92] : memref<1x32xf32, #tpu.memory_space<vmem>>, vector<1x32xf32>
    %212 = vector.broadcast %211 : vector<1x32xf32> to vector<16x32xf32>
    %213 = arith.addf %210, %212 : vector<16x32xf32>
    %c0_93 = arith.constant 0 : index
    %c0_94 = arith.constant 0 : index
    %214 = vector.load %arg26[%c0_93, %c0_94] : memref<32x32xf32, #tpu.memory_space<vmem>>, vector<32x32xf32>
    %cst_95 = arith.constant dense<0.000000e+00> : vector<16x32xf32>
    %215 = tpu.matmul %203, %214, %cst_95 {dimension_numbers = #tpu.dot_dimension_numbers<[1], [0], [0], [1], [0, 0, 1, 1], [], []>} : vector<16x32xf32>, vector<32x32xf32>, vector<16x32xf32> -> vector<16x32xf32>
    %c0_96 = arith.constant 0 : index
    %c0_97 = arith.constant 0 : index
    %216 = vector.load %arg27[%c0_96, %c0_97] : memref<1x32xf32, #tpu.memory_space<vmem>>, vector<1x32xf32>
    %217 = vector.broadcast %216 : vector<1x32xf32> to vector<16x32xf32>
    %218 = arith.addf %215, %217 : vector<16x32xf32>
    %c0_98 = arith.constant 0 : index
    %c0_99 = arith.constant 0 : index
    %219 = vector.load %arg28[%c0_98, %c0_99] : memref<32x32xf32, #tpu.memory_space<vmem>>, vector<32x32xf32>
    %cst_100 = arith.constant 0.000000e+00 : f32
    %220 = vector.broadcast %cst_100 : f32 to vector<16x32xf32>
    %221 = vector.extract_strided_slice %208 {offsets = [0, 0], sizes = [16, 8], strides = [1, 1]} : vector<16x32xf32> to vector<16x8xf32>
    %222 = vector.shape_cast %221 : vector<16x8xf32> to vector<2x8x8xf32>
    %223 = vector.extract_strided_slice %213 {offsets = [0, 0], sizes = [16, 8], strides = [1, 1]} : vector<16x32xf32> to vector<16x8xf32>
    %224 = vector.shape_cast %223 : vector<16x8xf32> to vector<2x8x8xf32>
    %225 = vector.extract_strided_slice %218 {offsets = [0, 0], sizes = [16, 8], strides = [1, 1]} : vector<16x32xf32> to vector<16x8xf32>
    %226 = vector.shape_cast %225 : vector<16x8xf32> to vector<2x8x8xf32>
    "tpu.trace_start"() <{level = 10 : i32, message = "bqd,bkd->bqk"}> : () -> ()
    %cst_101 = arith.constant dense<0.000000e+00> : vector<2x8x8xf32>
    %227 = tpu.matmul %222, %224, %cst_101 {dimension_numbers = #tpu.dot_dimension_numbers<[2], [2], [1], [1], [0, 0, 0, 1, 1, 1], [0], [0]>} : vector<2x8x8xf32>, vector<2x8x8xf32>, vector<2x8x8xf32> -> vector<2x8x8xf32>
    "tpu.trace_stop"() : () -> ()
    %cst_102 = arith.constant dense<0xFF800000> : vector<2x8xf32>
    %228 = vector.multi_reduction <maximumf>, %227, %cst_102 [2] : vector<2x8x8xf32> to vector<2x8xf32>
    %229 = vector.shape_cast %228 : vector<2x8xf32> to vector<2x8x1xf32>
    %230 = vector.broadcast %229 : vector<2x8x1xf32> to vector<2x8x8xf32>
    %231 = arith.subf %227, %230 : vector<2x8x8xf32>
    %232 = math.exp %231 : vector<2x8x8xf32>
    %cst_103 = arith.constant dense<0.000000e+00> : vector<2x8xf32>
    %233 = vector.multi_reduction <add>, %232, %cst_103 [2] : vector<2x8x8xf32> to vector<2x8xf32>
    %234 = vector.shape_cast %233 : vector<2x8xf32> to vector<2x8x1xf32>
    %235 = tpu.reciprocal %234 {approx = true} : vector<2x8x1xf32> -> vector<2x8x1xf32>
    %236 = vector.broadcast %235 : vector<2x8x1xf32> to vector<2x8x8xf32>
    %237 = arith.mulf %232, %236 : vector<2x8x8xf32>
    "tpu.trace_start"() <{level = 10 : i32, message = "bqk,bkd->bqd"}> : () -> ()
    %cst_104 = arith.constant dense<0.000000e+00> : vector<2x8x8xf32>
    %238 = tpu.matmul %237, %226, %cst_104 {dimension_numbers = #tpu.dot_dimension_numbers<[2], [1], [1], [2], [0, 0, 0, 1, 1, 2], [0], [0]>} : vector<2x8x8xf32>, vector<2x8x8xf32>, vector<2x8x8xf32> -> vector<2x8x8xf32>
    "tpu.trace_stop"() : () -> ()
    %239 = vector.shape_cast %238 : vector<2x8x8xf32> to vector<16x8xf32>
    %240 = vector.extract_strided_slice %219 {offsets = [0, 0], sizes = [8, 32], strides = [1, 1]} : vector<32x32xf32> to vector<8x32xf32>
    %cst_105 = arith.constant dense<0.000000e+00> : vector<16x32xf32>
    %241 = tpu.matmul %239, %240, %cst_105 {dimension_numbers = #tpu.dot_dimension_numbers<[1], [0], [0], [1], [0, 0, 1, 1], [], []>} : vector<16x8xf32>, vector<8x32xf32>, vector<16x32xf32> -> vector<16x32xf32>
    %242 = arith.addf %220, %241 : vector<16x32xf32>
    %243 = vector.extract_strided_slice %208 {offsets = [0, 8], sizes = [16, 8], strides = [1, 1]} : vector<16x32xf32> to vector<16x8xf32>
    %244 = vector.shape_cast %243 : vector<16x8xf32> to vector<2x8x8xf32>
    %245 = vector.extract_strided_slice %213 {offsets = [0, 8], sizes = [16, 8], strides = [1, 1]} : vector<16x32xf32> to vector<16x8xf32>
    %246 = vector.shape_cast %245 : vector<16x8xf32> to vector<2x8x8xf32>
    %247 = vector.extract_strided_slice %218 {offsets = [0, 8], sizes = [16, 8], strides = [1, 1]} : vector<16x32xf32> to vector<16x8xf32>
    %248 = vector.shape_cast %247 : vector<16x8xf32> to vector<2x8x8xf32>
    "tpu.trace_start"() <{level = 10 : i32, message = "bqd,bkd->bqk"}> : () -> ()
    %cst_106 = arith.constant dense<0.000000e+00> : vector<2x8x8xf32>
    %249 = tpu.matmul %244, %246, %cst_106 {dimension_numbers = #tpu.dot_dimension_numbers<[2], [2], [1], [1], [0, 0, 0, 1, 1, 1], [0], [0]>} : vector<2x8x8xf32>, vector<2x8x8xf32>, vector<2x8x8xf32> -> vector<2x8x8xf32>
    "tpu.trace_stop"() : () -> ()
    %cst_107 = arith.constant dense<0xFF800000> : vector<2x8xf32>
    %250 = vector.multi_reduction <maximumf>, %249, %cst_107 [2] : vector<2x8x8xf32> to vector<2x8xf32>
    %251 = vector.shape_cast %250 : vector<2x8xf32> to vector<2x8x1xf32>
    %252 = vector.broadcast %251 : vector<2x8x1xf32> to vector<2x8x8xf32>
    %253 = arith.subf %249, %252 : vector<2x8x8xf32>
    %254 = math.exp %253 : vector<2x8x8xf32>
    %cst_108 = arith.constant dense<0.000000e+00> : vector<2x8xf32>
    %255 = vector.multi_reduction <add>, %254, %cst_108 [2] : vector<2x8x8xf32> to vector<2x8xf32>
    %256 = vector.shape_cast %255 : vector<2x8xf32> to vector<2x8x1xf32>
    %257 = tpu.reciprocal %256 {approx = true} : vector<2x8x1xf32> -> vector<2x8x1xf32>
    %258 = vector.broadcast %257 : vector<2x8x1xf32> to vector<2x8x8xf32>
    %259 = arith.mulf %254, %258 : vector<2x8x8xf32>
    "tpu.trace_start"() <{level = 10 : i32, message = "bqk,bkd->bqd"}> : () -> ()
    %cst_109 = arith.constant dense<0.000000e+00> : vector<2x8x8xf32>
    %260 = tpu.matmul %259, %248, %cst_109 {dimension_numbers = #tpu.dot_dimension_numbers<[2], [1], [1], [2], [0, 0, 0, 1, 1, 2], [0], [0]>} : vector<2x8x8xf32>, vector<2x8x8xf32>, vector<2x8x8xf32> -> vector<2x8x8xf32>
    "tpu.trace_stop"() : () -> ()
    %261 = vector.shape_cast %260 : vector<2x8x8xf32> to vector<16x8xf32>
    %262 = vector.extract_strided_slice %219 {offsets = [8, 0], sizes = [8, 32], strides = [1, 1]} : vector<32x32xf32> to vector<8x32xf32>
    %cst_110 = arith.constant dense<0.000000e+00> : vector<16x32xf32>
    %263 = tpu.matmul %261, %262, %cst_110 {dimension_numbers = #tpu.dot_dimension_numbers<[1], [0], [0], [1], [0, 0, 1, 1], [], []>} : vector<16x8xf32>, vector<8x32xf32>, vector<16x32xf32> -> vector<16x32xf32>
    %264 = arith.addf %242, %263 : vector<16x32xf32>
    %265 = vector.extract_strided_slice %208 {offsets = [0, 16], sizes = [16, 8], strides = [1, 1]} : vector<16x32xf32> to vector<16x8xf32>
    %266 = vector.shape_cast %265 : vector<16x8xf32> to vector<2x8x8xf32>
    %267 = vector.extract_strided_slice %213 {offsets = [0, 16], sizes = [16, 8], strides = [1, 1]} : vector<16x32xf32> to vector<16x8xf32>
    %268 = vector.shape_cast %267 : vector<16x8xf32> to vector<2x8x8xf32>
    %269 = vector.extract_strided_slice %218 {offsets = [0, 16], sizes = [16, 8], strides = [1, 1]} : vector<16x32xf32> to vector<16x8xf32>
    %270 = vector.shape_cast %269 : vector<16x8xf32> to vector<2x8x8xf32>
    "tpu.trace_start"() <{level = 10 : i32, message = "bqd,bkd->bqk"}> : () -> ()
    %cst_111 = arith.constant dense<0.000000e+00> : vector<2x8x8xf32>
    %271 = tpu.matmul %266, %268, %cst_111 {dimension_numbers = #tpu.dot_dimension_numbers<[2], [2], [1], [1], [0, 0, 0, 1, 1, 1], [0], [0]>} : vector<2x8x8xf32>, vector<2x8x8xf32>, vector<2x8x8xf32> -> vector<2x8x8xf32>
    "tpu.trace_stop"() : () -> ()
    %cst_112 = arith.constant dense<0xFF800000> : vector<2x8xf32>
    %272 = vector.multi_reduction <maximumf>, %271, %cst_112 [2] : vector<2x8x8xf32> to vector<2x8xf32>
    %273 = vector.shape_cast %272 : vector<2x8xf32> to vector<2x8x1xf32>
    %274 = vector.broadcast %273 : vector<2x8x1xf32> to vector<2x8x8xf32>
    %275 = arith.subf %271, %274 : vector<2x8x8xf32>
    %276 = math.exp %275 : vector<2x8x8xf32>
    %cst_113 = arith.constant dense<0.000000e+00> : vector<2x8xf32>
    %277 = vector.multi_reduction <add>, %276, %cst_113 [2] : vector<2x8x8xf32> to vector<2x8xf32>
    %278 = vector.shape_cast %277 : vector<2x8xf32> to vector<2x8x1xf32>
    %279 = tpu.reciprocal %278 {approx = true} : vector<2x8x1xf32> -> vector<2x8x1xf32>
    %280 = vector.broadcast %279 : vector<2x8x1xf32> to vector<2x8x8xf32>
    %281 = arith.mulf %276, %280 : vector<2x8x8xf32>
    "tpu.trace_start"() <{level = 10 : i32, message = "bqk,bkd->bqd"}> : () -> ()
    %cst_114 = arith.constant dense<0.000000e+00> : vector<2x8x8xf32>
    %282 = tpu.matmul %281, %270, %cst_114 {dimension_numbers = #tpu.dot_dimension_numbers<[2], [1], [1], [2], [0, 0, 0, 1, 1, 2], [0], [0]>} : vector<2x8x8xf32>, vector<2x8x8xf32>, vector<2x8x8xf32> -> vector<2x8x8xf32>
    "tpu.trace_stop"() : () -> ()
    %283 = vector.shape_cast %282 : vector<2x8x8xf32> to vector<16x8xf32>
    %284 = vector.extract_strided_slice %219 {offsets = [16, 0], sizes = [8, 32], strides = [1, 1]} : vector<32x32xf32> to vector<8x32xf32>
    %cst_115 = arith.constant dense<0.000000e+00> : vector<16x32xf32>
    %285 = tpu.matmul %283, %284, %cst_115 {dimension_numbers = #tpu.dot_dimension_numbers<[1], [0], [0], [1], [0, 0, 1, 1], [], []>} : vector<16x8xf32>, vector<8x32xf32>, vector<16x32xf32> -> vector<16x32xf32>
    %286 = arith.addf %264, %285 : vector<16x32xf32>
    %287 = vector.extract_strided_slice %208 {offsets = [0, 24], sizes = [16, 8], strides = [1, 1]} : vector<16x32xf32> to vector<16x8xf32>
    %288 = vector.shape_cast %287 : vector<16x8xf32> to vector<2x8x8xf32>
    %289 = vector.extract_strided_slice %213 {offsets = [0, 24], sizes = [16, 8], strides = [1, 1]} : vector<16x32xf32> to vector<16x8xf32>
    %290 = vector.shape_cast %289 : vector<16x8xf32> to vector<2x8x8xf32>
    %291 = vector.extract_strided_slice %218 {offsets = [0, 24], sizes = [16, 8], strides = [1, 1]} : vector<16x32xf32> to vector<16x8xf32>
    %292 = vector.shape_cast %291 : vector<16x8xf32> to vector<2x8x8xf32>
    "tpu.trace_start"() <{level = 10 : i32, message = "bqd,bkd->bqk"}> : () -> ()
    %cst_116 = arith.constant dense<0.000000e+00> : vector<2x8x8xf32>
    %293 = tpu.matmul %288, %290, %cst_116 {dimension_numbers = #tpu.dot_dimension_numbers<[2], [2], [1], [1], [0, 0, 0, 1, 1, 1], [0], [0]>} : vector<2x8x8xf32>, vector<2x8x8xf32>, vector<2x8x8xf32> -> vector<2x8x8xf32>
    "tpu.trace_stop"() : () -> ()
    %cst_117 = arith.constant dense<0xFF800000> : vector<2x8xf32>
    %294 = vector.multi_reduction <maximumf>, %293, %cst_117 [2] : vector<2x8x8xf32> to vector<2x8xf32>
    %295 = vector.shape_cast %294 : vector<2x8xf32> to vector<2x8x1xf32>
    %296 = vector.broadcast %295 : vector<2x8x1xf32> to vector<2x8x8xf32>
    %297 = arith.subf %293, %296 : vector<2x8x8xf32>
    %298 = math.exp %297 : vector<2x8x8xf32>
    %cst_118 = arith.constant dense<0.000000e+00> : vector<2x8xf32>
    %299 = vector.multi_reduction <add>, %298, %cst_118 [2] : vector<2x8x8xf32> to vector<2x8xf32>
    %300 = vector.shape_cast %299 : vector<2x8xf32> to vector<2x8x1xf32>
    %301 = tpu.reciprocal %300 {approx = true} : vector<2x8x1xf32> -> vector<2x8x1xf32>
    %302 = vector.broadcast %301 : vector<2x8x1xf32> to vector<2x8x8xf32>
    %303 = arith.mulf %298, %302 : vector<2x8x8xf32>
    "tpu.trace_start"() <{level = 10 : i32, message = "bqk,bkd->bqd"}> : () -> ()
    %cst_119 = arith.constant dense<0.000000e+00> : vector<2x8x8xf32>
    %304 = tpu.matmul %303, %292, %cst_119 {dimension_numbers = #tpu.dot_dimension_numbers<[2], [1], [1], [2], [0, 0, 0, 1, 1, 2], [0], [0]>} : vector<2x8x8xf32>, vector<2x8x8xf32>, vector<2x8x8xf32> -> vector<2x8x8xf32>
    "tpu.trace_stop"() : () -> ()
    %305 = vector.shape_cast %304 : vector<2x8x8xf32> to vector<16x8xf32>
    %306 = vector.extract_strided_slice %219 {offsets = [24, 0], sizes = [8, 32], strides = [1, 1]} : vector<32x32xf32> to vector<8x32xf32>
    %cst_120 = arith.constant dense<0.000000e+00> : vector<16x32xf32>
    %307 = tpu.matmul %305, %306, %cst_120 {dimension_numbers = #tpu.dot_dimension_numbers<[1], [0], [0], [1], [0, 0, 1, 1], [], []>} : vector<16x8xf32>, vector<8x32xf32>, vector<16x32xf32> -> vector<16x32xf32>
    %308 = arith.addf %286, %307 : vector<16x32xf32>
    %309 = arith.addf %181, %308 : vector<16x32xf32>
    %c0_121 = arith.constant 0 : index
    %c0_122 = arith.constant 0 : index
    %310 = vector.load %arg29[%c0_121, %c0_122] : memref<1x32xf32, #tpu.memory_space<vmem>>, vector<1x32xf32>
    %311 = vector.broadcast %310 : vector<1x32xf32> to vector<16x32xf32>
    %312 = arith.addf %309, %311 : vector<16x32xf32>
    %c0_123 = arith.constant 0 : index
    %c0_124 = arith.constant 0 : index
    %313 = vector.load %arg30[%c0_123, %c0_124] : memref<1x32xf32, #tpu.memory_space<vmem>>, vector<1x32xf32>
    %c0_125 = arith.constant 0 : index
    %c0_126 = arith.constant 0 : index
    %314 = vector.load %arg31[%c0_125, %c0_126] : memref<1x32xf32, #tpu.memory_space<vmem>>, vector<1x32xf32>
    %cst_127 = arith.constant dense<0.000000e+00> : vector<16xf32>
    %315 = vector.multi_reduction <add>, %312, %cst_127 [1] : vector<16x32xf32> to vector<16xf32>
    %316 = vector.shape_cast %315 : vector<16xf32> to vector<16x1xf32>
    %cst_128 = arith.constant 3.200000e+01 : f32
    %317 = vector.broadcast %cst_128 : f32 to vector<16x1xf32>
    %318 = arith.divf %316, %317 : vector<16x1xf32>
    %319 = vector.broadcast %318 : vector<16x1xf32> to vector<16x32xf32>
    %320 = arith.subf %312, %319 : vector<16x32xf32>
    %321 = arith.mulf %320, %320 : vector<16x32xf32>
    %cst_129 = arith.constant dense<0.000000e+00> : vector<16xf32>
    %322 = vector.multi_reduction <add>, %321, %cst_129 [1] : vector<16x32xf32> to vector<16xf32>
    %323 = vector.shape_cast %322 : vector<16xf32> to vector<16x1xf32>
    %cst_130 = arith.constant 3.200000e+01 : f32
    %324 = vector.broadcast %cst_130 : f32 to vector<16x1xf32>
    %325 = arith.divf %323, %324 : vector<16x1xf32>
    %cst_131 = arith.constant 9.99999974E-6 : f32
    %326 = vector.broadcast %cst_131 : f32 to vector<16x1xf32>
    %327 = arith.addf %325, %326 : vector<16x1xf32>
    %328 = math.rsqrt %327 : vector<16x1xf32>
    %329 = vector.broadcast %328 : vector<16x1xf32> to vector<16x32xf32>
    %330 = arith.mulf %320, %329 : vector<16x32xf32>
    %331 = vector.broadcast %313 : vector<1x32xf32> to vector<16x32xf32>
    %332 = arith.mulf %330, %331 : vector<16x32xf32>
    %333 = vector.broadcast %314 : vector<1x32xf32> to vector<16x32xf32>
    %334 = arith.addf %332, %333 : vector<16x32xf32>
    %c0_132 = arith.constant 0 : index
    %c0_133 = arith.constant 0 : index
    %335 = vector.load %arg32[%c0_132, %c0_133] : memref<32x64xf32, #tpu.memory_space<vmem>>, vector<32x64xf32>
    %cst_134 = arith.constant dense<0.000000e+00> : vector<16x64xf32>
    %336 = tpu.matmul %334, %335, %cst_134 {dimension_numbers = #tpu.dot_dimension_numbers<[1], [0], [0], [1], [0, 0, 1, 1], [], []>} : vector<16x32xf32>, vector<32x64xf32>, vector<16x64xf32> -> vector<16x64xf32>
    %c0_135 = arith.constant 0 : index
    %c0_136 = arith.constant 0 : index
    %337 = vector.load %arg33[%c0_135, %c0_136] : memref<1x64xf32, #tpu.memory_space<vmem>>, vector<1x64xf32>
    %338 = vector.broadcast %337 : vector<1x64xf32> to vector<16x64xf32>
    %339 = arith.addf %336, %338 : vector<16x64xf32>
    %cst_137 = arith.constant 0.000000e+00 : f32
    %340 = vector.broadcast %cst_137 : f32 to vector<16x64xf32>
    %341 = arith.maximumf %339, %340 : vector<16x64xf32>
    %c0_138 = arith.constant 0 : index
    %c0_139 = arith.constant 0 : index
    %342 = vector.load %arg34[%c0_138, %c0_139] : memref<64x32xf32, #tpu.memory_space<vmem>>, vector<64x32xf32>
    %cst_140 = arith.constant dense<0.000000e+00> : vector<16x32xf32>
    %343 = tpu.matmul %341, %342, %cst_140 {dimension_numbers = #tpu.dot_dimension_numbers<[1], [0], [0], [1], [0, 0, 1, 1], [], []>} : vector<16x64xf32>, vector<64x32xf32>, vector<16x32xf32> -> vector<16x32xf32>
    %c0_141 = arith.constant 0 : index
    %c0_142 = arith.constant 0 : index
    %344 = vector.load %arg35[%c0_141, %c0_142] : memref<1x32xf32, #tpu.memory_space<vmem>>, vector<1x32xf32>
    %345 = vector.broadcast %344 : vector<1x32xf32> to vector<16x32xf32>
    %346 = arith.addf %343, %345 : vector<16x32xf32>
    %347 = arith.addf %312, %346 : vector<16x32xf32>
    %c0_143 = arith.constant 0 : index
    %c0_144 = arith.constant 0 : index
    %348 = vector.load %arg36[%c0_143, %c0_144] : memref<1x32xf32, #tpu.memory_space<vmem>>, vector<1x32xf32>
    %c0_145 = arith.constant 0 : index
    %c0_146 = arith.constant 0 : index
    %349 = vector.load %arg37[%c0_145, %c0_146] : memref<1x32xf32, #tpu.memory_space<vmem>>, vector<1x32xf32>
    %cst_147 = arith.constant dense<0.000000e+00> : vector<16xf32>
    %350 = vector.multi_reduction <add>, %347, %cst_147 [1] : vector<16x32xf32> to vector<16xf32>
    %351 = vector.shape_cast %350 : vector<16xf32> to vector<16x1xf32>
    %cst_148 = arith.constant 3.200000e+01 : f32
    %352 = vector.broadcast %cst_148 : f32 to vector<16x1xf32>
    %353 = arith.divf %351, %352 : vector<16x1xf32>
    %354 = vector.broadcast %353 : vector<16x1xf32> to vector<16x32xf32>
    %355 = arith.subf %347, %354 : vector<16x32xf32>
    %356 = arith.mulf %355, %355 : vector<16x32xf32>
    %cst_149 = arith.constant dense<0.000000e+00> : vector<16xf32>
    %357 = vector.multi_reduction <add>, %356, %cst_149 [1] : vector<16x32xf32> to vector<16xf32>
    %358 = vector.shape_cast %357 : vector<16xf32> to vector<16x1xf32>
    %cst_150 = arith.constant 3.200000e+01 : f32
    %359 = vector.broadcast %cst_150 : f32 to vector<16x1xf32>
    %360 = arith.divf %358, %359 : vector<16x1xf32>
    %cst_151 = arith.constant 9.99999974E-6 : f32
    %361 = vector.broadcast %cst_151 : f32 to vector<16x1xf32>
    %362 = arith.addf %360, %361 : vector<16x1xf32>
    %363 = math.rsqrt %362 : vector<16x1xf32>
    %364 = vector.broadcast %363 : vector<16x1xf32> to vector<16x32xf32>
    %365 = arith.mulf %355, %364 : vector<16x32xf32>
    %366 = vector.broadcast %348 : vector<1x32xf32> to vector<16x32xf32>
    %367 = arith.mulf %365, %366 : vector<16x32xf32>
    %368 = vector.broadcast %349 : vector<1x32xf32> to vector<16x32xf32>
    %369 = arith.addf %367, %368 : vector<16x32xf32>
    %c0_152 = arith.constant 0 : index
    %c0_153 = arith.constant 0 : index
    %370 = vector.load %arg38[%c0_152, %c0_153] : memref<32x128xf32, #tpu.memory_space<vmem>>, vector<32x128xf32>
    %cst_154 = arith.constant dense<0.000000e+00> : vector<16x128xf32>
    %371 = tpu.matmul %369, %370, %cst_154 {dimension_numbers = #tpu.dot_dimension_numbers<[1], [0], [0], [1], [0, 0, 1, 1], [], []>} : vector<16x32xf32>, vector<32x128xf32>, vector<16x128xf32> -> vector<16x128xf32>
    %372 = vector.shape_cast %371 : vector<16x128xf32> to vector<2x8x128xf32>
    %c0_155 = arith.constant 0 : index
    %c0_156 = arith.constant 0 : index
    %c0_157 = arith.constant 0 : index
    %373 = vector.load %arg39[%c0_155, %c0_156, %c0_157] : memref<2x8x128xf32, #tpu.memory_space<vmem>>, vector<2x8x128xf32>
    tpu.vector_store %arg39[%c0_155, %c0_156, %c0_157], %372 {strides = array<i32>} : memref<2x8x128xf32, #tpu.memory_space<vmem>>, vector<2x8x128xf32>,
    return
  }
  func.func @transform_0(%arg0: i32) -> (i32, i32) {
    %c0_i32 = arith.constant 0 : i32
    %c0_i32_0 = arith.constant 0 : i32
    return %arg0, %c0_i32 : i32, i32
  }
  func.func @transform_1(%arg0: i32) -> (i32, i32) {
    %c0_i32 = arith.constant 0 : i32
    %c0_i32_0 = arith.constant 0 : i32
    %c0_i32_1 = arith.constant 0 : i32
    return %c0_i32, %c0_i32_0 : i32, i32
  }
  func.func @transform_2(%arg0: i32) -> (i32, i32) {
    %c0_i32 = arith.constant 0 : i32
    %c0_i32_0 = arith.constant 0 : i32
    %c0_i32_1 = arith.constant 0 : i32
    return %c0_i32, %c0_i32_0 : i32, i32
  }
  func.func @transform_3(%arg0: i32) -> (i32, i32) {
    %c0_i32 = arith.constant 0 : i32
    %c0_i32_0 = arith.constant 0 : i32
    %c0_i32_1 = arith.constant 0 : i32
    return %c0_i32, %c0_i32_0 : i32, i32
  }
  func.func @transform_4(%arg0: i32) -> (i32, i32) {
    %c0_i32 = arith.constant 0 : i32
    %c0_i32_0 = arith.constant 0 : i32
    %c0_i32_1 = arith.constant 0 : i32
    return %c0_i32, %c0_i32_0 : i32, i32
  }
  func.func @transform_5(%arg0: i32) -> (i32, i32) {
    %c0_i32 = arith.constant 0 : i32
    %c0_i32_0 = arith.constant 0 : i32
    %c0_i32_1 = arith.constant 0 : i32
    return %c0_i32, %c0_i32_0 : i32, i32
  }
  func.func @transform_6(%arg0: i32) -> (i32, i32) {
    %c0_i32 = arith.constant 0 : i32
    %c0_i32_0 = arith.constant 0 : i32
    %c0_i32_1 = arith.constant 0 : i32
    return %c0_i32, %c0_i32_0 : i32, i32
  }
  func.func @transform_7(%arg0: i32) -> (i32, i32) {
    %c0_i32 = arith.constant 0 : i32
    %c0_i32_0 = arith.constant 0 : i32
    %c0_i32_1 = arith.constant 0 : i32
    return %c0_i32, %c0_i32_0 : i32, i32
  }
  func.func @transform_8(%arg0: i32) -> (i32, i32) {
    %c0_i32 = arith.constant 0 : i32
    %c0_i32_0 = arith.constant 0 : i32
    %c0_i32_1 = arith.constant 0 : i32
    return %c0_i32, %c0_i32_0 : i32, i32
  }
  func.func @transform_9(%arg0: i32) -> (i32, i32) {
    %c0_i32 = arith.constant 0 : i32
    %c0_i32_0 = arith.constant 0 : i32
    %c0_i32_1 = arith.constant 0 : i32
    return %c0_i32, %c0_i32_0 : i32, i32
  }
  func.func @transform_10(%arg0: i32) -> (i32, i32) {
    %c0_i32 = arith.constant 0 : i32
    %c0_i32_0 = arith.constant 0 : i32
    %c0_i32_1 = arith.constant 0 : i32
    return %c0_i32, %c0_i32_0 : i32, i32
  }
  func.func @transform_11(%arg0: i32) -> (i32, i32) {
    %c0_i32 = arith.constant 0 : i32
    %c0_i32_0 = arith.constant 0 : i32
    %c0_i32_1 = arith.constant 0 : i32
    return %c0_i32, %c0_i32_0 : i32, i32
  }
  func.func @transform_12(%arg0: i32) -> (i32, i32) {
    %c0_i32 = arith.constant 0 : i32
    %c0_i32_0 = arith.constant 0 : i32
    %c0_i32_1 = arith.constant 0 : i32
    return %c0_i32, %c0_i32_0 : i32, i32
  }
  func.func @transform_13(%arg0: i32) -> (i32, i32) {
    %c0_i32 = arith.constant 0 : i32
    %c0_i32_0 = arith.constant 0 : i32
    %c0_i32_1 = arith.constant 0 : i32
    return %c0_i32, %c0_i32_0 : i32, i32
  }
  func.func @transform_14(%arg0: i32) -> (i32, i32) {
    %c0_i32 = arith.constant 0 : i32
    %c0_i32_0 = arith.constant 0 : i32
    %c0_i32_1 = arith.constant 0 : i32
    return %c0_i32, %c0_i32_0 : i32, i32
  }
  func.func @transform_15(%arg0: i32) -> (i32, i32) {
    %c0_i32 = arith.constant 0 : i32
    %c0_i32_0 = arith.constant 0 : i32
    %c0_i32_1 = arith.constant 0 : i32
    return %c0_i32, %c0_i32_0 : i32, i32
  }
  func.func @transform_16(%arg0: i32) -> (i32, i32) {
    %c0_i32 = arith.constant 0 : i32
    %c0_i32_0 = arith.constant 0 : i32
    %c0_i32_1 = arith.constant 0 : i32
    return %c0_i32, %c0_i32_0 : i32, i32
  }
  func.func @transform_17(%arg0: i32) -> (i32, i32) {
    %c0_i32 = arith.constant 0 : i32
    %c0_i32_0 = arith.constant 0 : i32
    %c0_i32_1 = arith.constant 0 : i32
    return %c0_i32, %c0_i32_0 : i32, i32
  }
  func.func @transform_18(%arg0: i32) -> (i32, i32) {
    %c0_i32 = arith.constant 0 : i32
    %c0_i32_0 = arith.constant 0 : i32
    %c0_i32_1 = arith.constant 0 : i32
    return %c0_i32, %c0_i32_0 : i32, i32
  }
  func.func @transform_19(%arg0: i32) -> (i32, i32) {
    %c0_i32 = arith.constant 0 : i32
    %c0_i32_0 = arith.constant 0 : i32
    %c0_i32_1 = arith.constant 0 : i32
    return %c0_i32, %c0_i32_0 : i32, i32
  }
  func.func @transform_20(%arg0: i32) -> (i32, i32) {
    %c0_i32 = arith.constant 0 : i32
    %c0_i32_0 = arith.constant 0 : i32
    %c0_i32_1 = arith.constant 0 : i32
    return %c0_i32, %c0_i32_0 : i32, i32
  }
  func.func @transform_21(%arg0: i32) -> (i32, i32) {
    %c0_i32 = arith.constant 0 : i32
    %c0_i32_0 = arith.constant 0 : i32
    %c0_i32_1 = arith.constant 0 : i32
    return %c0_i32, %c0_i32_0 : i32, i32
  }
  func.func @transform_22(%arg0: i32) -> (i32, i32) {
    %c0_i32 = arith.constant 0 : i32
    %c0_i32_0 = arith.constant 0 : i32
    %c0_i32_1 = arith.constant 0 : i32
    return %c0_i32, %c0_i32_0 : i32, i32
  }
  func.func @transform_23(%arg0: i32) -> (i32, i32) {
    %c0_i32 = arith.constant 0 : i32
    %c0_i32_0 = arith.constant 0 : i32
    %c0_i32_1 = arith.constant 0 : i32
    return %c0_i32, %c0_i32_0 : i32, i32
  }
  func.func @transform_24(%arg0: i32) -> (i32, i32) {
    %c0_i32 = arith.constant 0 : i32
    %c0_i32_0 = arith.constant 0 : i32
    %c0_i32_1 = arith.constant 0 : i32
    return %c0_i32, %c0_i32_0 : i32, i32
  }
  func.func @transform_25(%arg0: i32) -> (i32, i32) {
    %c0_i32 = arith.constant 0 : i32
    %c0_i32_0 = arith.constant 0 : i32
    %c0_i32_1 = arith.constant 0 : i32
    return %c0_i32, %c0_i32_0 : i32, i32
  }
  func.func @transform_26(%arg0: i32) -> (i32, i32) {
    %c0_i32 = arith.constant 0 : i32
    %c0_i32_0 = arith.constant 0 : i32
    %c0_i32_1 = arith.constant 0 : i32
    return %c0_i32, %c0_i32_0 : i32, i32
  }
  func.func @transform_27(%arg0: i32) -> (i32, i32) {
    %c0_i32 = arith.constant 0 : i32
    %c0_i32_0 = arith.constant 0 : i32
    %c0_i32_1 = arith.constant 0 : i32
    return %c0_i32, %c0_i32_0 : i32, i32
  }
  func.func @transform_28(%arg0: i32) -> (i32, i32) {
    %c0_i32 = arith.constant 0 : i32
    %c0_i32_0 = arith.constant 0 : i32
    %c0_i32_1 = arith.constant 0 : i32
    return %c0_i32, %c0_i32_0 : i32, i32
  }
  func.func @transform_29(%arg0: i32) -> (i32, i32) {
    %c0_i32 = arith.constant 0 : i32
    %c0_i32_0 = arith.constant 0 : i32
    %c0_i32_1 = arith.constant 0 : i32
    return %c0_i32, %c0_i32_0 : i32, i32
  }
  func.func @transform_30(%arg0: i32) -> (i32, i32) {
    %c0_i32 = arith.constant 0 : i32
    %c0_i32_0 = arith.constant 0 : i32
    %c0_i32_1 = arith.constant 0 : i32
    return %c0_i32, %c0_i32_0 : i32, i32
  }
  func.func @transform_31(%arg0: i32) -> (i32, i32) {
    %c0_i32 = arith.constant 0 : i32
    %c0_i32_0 = arith.constant 0 : i32
    %c0_i32_1 = arith.constant 0 : i32
    return %c0_i32, %c0_i32_0 : i32, i32
  }
  func.func @transform_32(%arg0: i32) -> (i32, i32) {
    %c0_i32 = arith.constant 0 : i32
    %c0_i32_0 = arith.constant 0 : i32
    %c0_i32_1 = arith.constant 0 : i32
    return %c0_i32, %c0_i32_0 : i32, i32
  }
  func.func @transform_33(%arg0: i32) -> (i32, i32) {
    %c0_i32 = arith.constant 0 : i32
    %c0_i32_0 = arith.constant 0 : i32
    %c0_i32_1 = arith.constant 0 : i32
    return %c0_i32, %c0_i32_0 : i32, i32
  }
  func.func @transform_34(%arg0: i32) -> (i32, i32) {
    %c0_i32 = arith.constant 0 : i32
    %c0_i32_0 = arith.constant 0 : i32
    %c0_i32_1 = arith.constant 0 : i32
    return %c0_i32, %c0_i32_0 : i32, i32
  }
  func.func @transform_35(%arg0: i32) -> (i32, i32) {
    %c0_i32 = arith.constant 0 : i32
    %c0_i32_0 = arith.constant 0 : i32
    %c0_i32_1 = arith.constant 0 : i32
    return %c0_i32, %c0_i32_0 : i32, i32
  }
  func.func @transform_36(%arg0: i32) -> (i32, i32) {
    %c0_i32 = arith.constant 0 : i32
    %c0_i32_0 = arith.constant 0 : i32
    %c0_i32_1 = arith.constant 0 : i32
    return %c0_i32, %c0_i32_0 : i32, i32
  }
  func.func @transform_37(%arg0: i32) -> (i32, i32) {
    %c0_i32 = arith.constant 0 : i32
    %c0_i32_0 = arith.constant 0 : i32
    %c0_i32_1 = arith.constant 0 : i32
    return %c0_i32, %c0_i32_0 : i32, i32
  }
  func.func @transform_38(%arg0: i32) -> (i32, i32, i32) {
    %c0_i32 = arith.constant 0 : i32
    %c0_i32_0 = arith.constant 0 : i32
    %c0_i32_1 = arith.constant 0 : i32
    return %arg0, %c0_i32, %c0_i32_0 : i32, i32, i32
  }
}

</mosaic_0001>

<bundles_post_ra>
// kernel: tpu_custom_call.1
= control target key start
LH: loop header
LB: loop body
LE: loop exit
PB: predicated region body
PF: predicated region fallthrough
CT: control target
= control target key end

     0   :  { %s6464_s6 = smov 1   ;;  %s6465_s10 = smov 2   ;;  %s7241_s0 = inlined_call_operand.smem [shape: u32[39], index: -1, kind: input, shape index: {}] }
   0x1   :  { %s6542_s5 = sld [smem:[%s7241_s0]]   ;;  %s6466_s14 = smov 3  }
   0x2   :  { %s6547_s9 = sld [smem:[%s7241_s0 + %s6464_s6]]   ;;  %s6467_s18 = smov 4  }
   0x3   :  { %s6552_s13 = sld [smem:[%s7241_s0 + %s6465_s10]]   ;;  %s6468_s22 = smov 5  }
   0x4   :  { %s6557_s17 = sld [smem:[%s7241_s0 + %s6466_s14]]   ;;  %s6469_s26 = smov 6  }
   0x5   :  { %s6562_s21 = sld [smem:[%s7241_s0 + %s6467_s18]]   ;;  %s6470_s30 = smov 7  }
   0x6   :  { %s6567_s25 = sld [smem:[%s7241_s0 + %s6468_s22]]   ;;  %s6471_s4 = smov 8  }
   0x7   :  { %s6572_s29 = sld [smem:[%s7241_s0 + %s6469_s26]]   ;;  %s6472_s10 = smov 9  }
   0x8   :  { %s6577_s3 = sld [smem:[%s7241_s0 + %s6470_s30]]   ;;  %s6473_s15 = smov 10  }
   0x9   :  { %7255 = sst [smem:[#allocation52_spill]] %s6552_s13  ;;  %s6474_s20 = smov 11  }
   0xa   :  { %s6582_s8 = sld [smem:[%s7241_s0 + %s6471_s4]]   ;;  %s6475_s26 = smov 12  }
   0xb   :  { %s6587_s14 = sld [smem:[%s7241_s0 + %s6472_s10]]   ;;  %s6476_s1 = smov 13  }
   0xc   :  { %7256 = sst [smem:[#allocation53_spill]] %s6567_s25  ;;  %s6477_s7 = smov 14  }
   0xd   :  { %s6592_s19 = sld [smem:[%s7241_s0 + %s6473_s15]]   ;;  %s6478_s15 = smov 15  }
   0xe   :  { %7257 = sst [smem:[#allocation54_spill]] %s6577_s3  ;;  %s6479_s22 = smov 16  }
   0xf   :  { %s6597_s24 = sld [smem:[%s7241_s0 + %s6474_s20]]   ;;  %s6480_s28 = smov 17  }
  0x10   :  { %s6602_s30 = sld [smem:[%s7241_s0 + %s6475_s26]]  }
  0x11   :  { %7258 = sst [smem:[#allocation55_spill]] %s6587_s14 }
  0x12   :  { %s6607_s6 = sld [smem:[%s7241_s0 + %s6476_s1]]  }
  0x13   :  { %s6612_s12 = sld [smem:[%s7241_s0 + %s6477_s7]]   ;;  %s6481_s7 = smov 18  }
  0x14   :  { %s6617_s20 = sld [smem:[%s7241_s0 + %s6478_s15]]   ;;  %s6482_s15 = smov 19  }
  0x15   :  { %7259 = sst [smem:[#allocation56_spill]] %s6597_s24 }
  0x16   :  { %s6622_s27 = sld [smem:[%s7241_s0 + %s6479_s22]]   ;;  %s6483_s22 = smov 20  }
  0x17   :  { %s6627_s4 = sld [smem:[%s7241_s0 + %s6480_s28]]   ;;  %s6484_s28 = smov 21  }
  0x18   :  { %7260 = sst [smem:[#allocation57_spill]] %s6607_s6 }
  0x19   :  { %s6632_s24 = sld [smem:[%s7241_s0 + %s6481_s7]]   ;;  %s6485_s7 = smov 22  }
  0x1a   :  { %7261 = sst [smem:[#allocation58_spill]] %s6617_s20 }
  0x1b   :  { %s6637_s20 = sld [smem:[%s7241_s0 + %s6482_s15]]   ;;  %s6486_s15 = smov 23  }
  0x1c   :  { %7262 = sst [smem:[#allocation59_spill]] %s6622_s27 }
  0x1d   :  { %7263 = sst [smem:[#allocation60_spill]] %s6627_s4 }
  0x1e   :  { %s6642_s14 = sld [smem:[%s7241_s0 + %s6483_s22]]   ;;  %s6487_s22 = smov 24  }
  0x1f   :  { %s6647_s4 = sld [smem:[%s7241_s0 + %s6484_s28]]   ;;  %s6488_s28 = smov 25  }
  0x20   :  { %s6652_s3 = sld [smem:[%s7241_s0 + %s6485_s7]]   ;;  %s6489_s7 = smov 26  }
  0x21   :  { %7264 = sst [smem:[#allocation61_spill]] %s6637_s20 }
  0x22   :  { %s6657_s25 = sld [smem:[%s7241_s0 + %s6486_s15]]   ;;  %s6490_s15 = smov 27  }
  0x23   :  { %s6662_s13 = sld [smem:[%s7241_s0 + %s6487_s22]]   ;;  %s6491_s22 = smov 28  }
  0x25   :  { %7265 = sst [smem:[#allocation62_spill]] %s6647_s4 }
  0x26   :  { %7266 = sst [smem:[#allocation63_spill]] %s6652_s3 }
  0x27   :  { %s6667_s4 = sld [smem:[%s7241_s0 + %s6488_s28]]   ;;  %s6492_s28 = smov 29  }
  0x28   :  { %7267 = sst [smem:[#allocation64_spill]] %s6657_s25 }
  0x29   :  { %7268 = sst [smem:[#allocation65_spill]] %s6662_s13 }
  0x2a   :  { %s6672_s3 = sld [smem:[%s7241_s0 + %s6489_s7]]   ;;  %s6493_s7 = smov 30  }
  0x2b   :  { %s6677_s25 = sld [smem:[%s7241_s0 + %s6490_s15]]   ;;  %s6494_s15 = smov 31  }
  0x2c   :  { %s6682_s13 = sld [smem:[%s7241_s0 + %s6491_s22]]   ;;  %s6495_s22 = smov 32  }
  0x2d   :  { %7269 = sst [smem:[#allocation66_spill]] %s6667_s4 }
  0x2e   :  { %s6687_s4 = sld [smem:[%s7241_s0 + %s6492_s28]]   ;;  %s6496_s28 = smov 33  }
  0x2f   :  { %s6692_s20 = sld [smem:[%s7241_s0 + %s6493_s7]]   ;;  %s6497_s7 = smov 34  }
  0x30   :  { %s6707_s27 = sld [smem:[%s7241_s0 + %s6496_s28]]   ;;  %s6500_s28 = smov 37  }
  0x31   :  { %7270 = sst [smem:[#allocation67_spill]] %s6677_s25 }
  0x32   :  { %7271 = sst [smem:[#allocation68_spill]] %s6682_s13 }
  0x33   :  { %s6697_s25 = sld [smem:[%s7241_s0 + %s6494_s15]]   ;;  %s6498_s15 = smov 35  }
  0x34   :  { %s6702_s13 = sld [smem:[%s7241_s0 + %s6495_s22]]   ;;  %s6499_s22 = smov 36  }
  0x35   :  { %7272 = sst [smem:[#allocation69_spill]] %s6692_s20 }
  0x36   :  { %7274 = sst [smem:[#allocation71_spill]] %s6707_s27 }
  0x37   :  { %s6712_s20 = sld [smem:[%s7241_s0 + %s6497_s7]]   ;;  %s6501_s7 = smov 38  }
  0x38   :  { %s6722_s6 = sld [smem:[%s7241_s0 + %s6499_s22]]  }
  0x39   :  { %7273 = sst [smem:[#allocation70_spill]] %s6697_s25 }
  0x3a   :  { %s6717_s25 = sld [smem:[%s7241_s0 + %s6498_s15]]  }
  0x3b   :  { %s6727_s27 = sld [smem:[%s7241_s0 + %s6500_s28]]  }
  0x3d   :  { %7275 = sst [smem:[#allocation72_spill]] %s6712_s20 }
  0x3e   :  { %s6732_s20 = sld [smem:[%s7241_s0 + %s6501_s7]]  }
  0x3f   :  { %82 = vsyncpa [#allocation3], 0 }
  0x40   :  { %83 = vsyncpa [#allocation6], 0 }
  0x41   :  { %84 = vsyncpa [#allocation9], 0 }
  0x42   :  { %85 = vsyncpa [#allocation12], 0 }
  0x43   :  { %86 = vsyncpa [#allocation15], 0 }
  0x44   :  { %87 = vsyncpa [#allocation18], 0 }
  0x45   :  { %88 = vsyncpa [#allocation21], 0 }
  0x46   :  { %89 = vsyncpa [#allocation24], 0 }
  0x47   :  { %90 = vsyncpa [#allocation27], 0 }
  0x48   :  { %91 = vsyncpa [#allocation30], 0 }
  0x49   :  { %92 = vsyncpa [#allocation33], 0 }
  0x4a   :  { %93 = vsyncpa [#allocation36], 0 }
  0x4b   :  { %94 = vsyncpa [#allocation4], 0  ;;  %s6502_s15 = smov [#allocation5]   ;;  %s6503_s18 = smov [#allocation8]  }
  0x4c   :  { %s111_s16 = sshll.u32 %s6502_s15, 4  ;;  %s133_s22 = sshll.u32 %s6503_s18, 4  ;;  %s112_s16 = int_to_ptr.vmem [resolvable:$true] %s111_s16  ;;  %s134_s22 = int_to_ptr.vmem [resolvable:$true] %s133_s22 }
  0x4d   :  { %s5966_s0 = scalar_lea.vmem %s112_s16, 128  ;;  %p5971_p1 = scmp.lt.s32.totalorder %s112_s16, %s112_s16 }
  0x4e   :  { %p5967_p0 = scmp.ne.s32.totalorder %s112_s16, %s5966_s0  ;;  %p5972_p2 = scmp.lt.s32.totalorder %s5966_s0, %s5966_s0 }
  0x50   :  { %p5973_p3 = por %p5972_p2, %p5971_p1 }
  0x52   :  { %p5974_p4 = pnand %p5973_p3, %p5967_p0 }
  0x54   :  { %5977 = shalt.err (!%p5974_p4)
}
  0x55   :  { %114 = dma.hbm_to_vmem [thread:$0]  %s6547_s9, 128, %s112_s16, [#allocation6]  }
  0x56   :  { %s5986_s23 = scalar_lea.vmem %s134_s22, 16  ;;  %s5990_s26 = scalar_lea.vmem %s134_s22, 32 }
  0x57   :  { %p5987_p5 = scmp.ne.s32.totalorder %s134_s22, %s5986_s23  ;;  %p5991_p6 = scmp.lt.s32.totalorder %s134_s22, %s134_s22 }
  0x58   :  { %p5992_p7 = scmp.lt.s32.totalorder %s5990_s26, %s5986_s23 }
  0x5a   :  { %p5993_p8 = por %p5992_p7, %p5991_p6 }
  0x5c   :  { %p5994_p9 = pnand %p5993_p8, %p5987_p5 }
  0x5e   :  { %5997 = shalt.err (!%p5994_p9)
}
  0x5f   :  { %136 = dma.hbm_to_vmem [thread:$0]  %s6562_s21, 16, %s134_s22, [#allocation9]  }
  0x60   :  { %s6504_s28 = smov [#allocation11]   ;;  %s6505_s2 = smov [#allocation14]  }
  0x61   :  { %s157_s1 = sshll.u32 %s6504_s28, 4  ;;  %s181_s7 = sshll.u32 %s6505_s2, 4  ;;  %s158_s1 = int_to_ptr.vmem [resolvable:$true] %s157_s1  ;;  %s182_s7 = int_to_ptr.vmem [resolvable:$true] %s181_s7 }
  0x62   :  { %s6006_s10 = scalar_lea.vmem %s158_s1, 16  ;;  %s6010_s11 = scalar_lea.vmem %s158_s1, 32 }
  0x63   :  { %p6007_p10 = scmp.ne.s32.totalorder %s158_s1, %s6006_s10  ;;  %p6011_p11 = scmp.lt.s32.totalorder %s158_s1, %s158_s1 }
  0x64   :  { %p6012_p12 = scmp.lt.s32.totalorder %s6010_s11, %s6006_s10 }
  0x66   :  { %p6013_p13 = por %p6012_p12, %p6011_p11 }
  0x68   :  { %p6014_p0 = pnand %p6013_p13, %p6007_p10 }
  0x6a   :  { %6017 = shalt.err (!%p6014_p0)
}
  0x6b   :  { %160 = dma.hbm_to_vmem [thread:$0]  %s6582_s8, 16, %s158_s1, [#allocation12]  }
  0x6c   :  { %s6026_s9 = scalar_lea.vmem %s182_s7, 16  ;;  %s6030_s15 = scalar_lea.vmem %s182_s7, 32 }
  0x6d   :  { %p6027_p1 = scmp.ne.s32.totalorder %s182_s7, %s6026_s9  ;;  %p6031_p2 = scmp.lt.s32.totalorder %s182_s7, %s182_s7 }
  0x6e   :  { %p6032_p3 = scmp.lt.s32.totalorder %s6030_s15, %s6026_s9 }
  0x70   :  { %p6033_p4 = por %p6032_p3, %p6031_p2 }
  0x72   :  { %p6034_p5 = pnand %p6033_p4, %p6027_p1 }
  0x74   :  { %6037 = shalt.err (!%p6034_p5)
}
  0x75   :  { %184 = dma.hbm_to_vmem [thread:$0]  %s6602_s30, 16, %s182_s7, [#allocation15]  }
  0x76   :  { %s6506_s21 = smov [#allocation17]   ;;  %s6507_s18 = smov [#allocation20]  }
  0x77   :  { %s201_s16 = sshll.u32 %s6506_s21, 4  ;;  %s225_s22 = sshll.u32 %s6507_s18, 4  ;;  %s202_s16 = int_to_ptr.vmem [resolvable:$true] %s201_s16  ;;  %s226_s22 = int_to_ptr.vmem [resolvable:$true] %s225_s22 }
  0x78   :  { %s6046_s0 = scalar_lea.vmem %s202_s16, 16  ;;  %s6050_s23 = scalar_lea.vmem %s202_s16, 32 }
  0x79   :  { %p6047_p6 = scmp.ne.s32.totalorder %s202_s16, %s6046_s0  ;;  %p6051_p7 = scmp.lt.s32.totalorder %s202_s16, %s202_s16 }
  0x7a   :  { %p6052_p8 = scmp.lt.s32.totalorder %s6050_s23, %s6046_s0 }
  0x7c   :  { %p6053_p9 = por %p6052_p8, %p6051_p7 }
  0x7e   :  { %p6054_p10 = pnand %p6053_p9, %p6047_p6 }
  0x80   :  { %6057 = shalt.err (!%p6054_p10)
}
  0x81   :  { %204 = dma.hbm_to_vmem [thread:$0]  %s6612_s12, 16, %s202_s16, [#allocation18]  }
  0x82   :  { %s6066_s8 = scalar_lea.vmem %s226_s22, 16  ;;  %s6070_s26 = scalar_lea.vmem %s226_s22, 32 }
  0x83   :  { %p6067_p11 = scmp.ne.s32.totalorder %s226_s22, %s6066_s8  ;;  %p6071_p12 = scmp.lt.s32.totalorder %s226_s22, %s226_s22 }
  0x84   :  { %p6072_p13 = scmp.lt.s32.totalorder %s6070_s26, %s6066_s8 }
  0x86   :  { %p6073_p0 = por %p6072_p13, %p6071_p12 }
  0x88   :  { %p6074_p1 = pnand %p6073_p0, %p6067_p11 }
  0x8a   :  { %6077 = shalt.err (!%p6074_p1)
}
  0x8b   :  { %228 = dma.hbm_to_vmem [thread:$0]  %s6632_s24, 16, %s226_s22, [#allocation21]  }
  0x8c   :  { %s6508_s30 = smov [#allocation23]   ;;  %s6509_s1 = smov [#allocation26]  }
  0x8d   :  { %s245_s28 = sshll.u32 %s6508_s30, 4  ;;  %s273_s2 = sshll.u32 %s6509_s1, 4  ;;  %s246_s28 = int_to_ptr.vmem [resolvable:$true] %s245_s28  ;;  %s274_s2 = int_to_ptr.vmem [resolvable:$true] %s273_s2 }
  0x8e   :  { %s6086_s7 = scalar_lea.vmem %s246_s28, 16  ;;  %s6090_s10 = scalar_lea.vmem %s246_s28, 32 }
  0x8f   :  { %p6087_p2 = scmp.ne.s32.totalorder %s246_s28, %s6086_s7  ;;  %p6091_p3 = scmp.lt.s32.totalorder %s246_s28, %s246_s28 }
  0x90   :  { %p6092_p4 = scmp.lt.s32.totalorder %s6090_s10, %s6086_s7 }
  0x92   :  { %p6093_p5 = por %p6092_p4, %p6091_p3 }
  0x94   :  { %p6094_p6 = pnand %p6093_p5, %p6087_p2 }
  0x96   :  { %6097 = shalt.err (!%p6094_p6)
}
  0x97   :  { %248 = dma.hbm_to_vmem [thread:$0]  %s6642_s14, 16, %s246_s28, [#allocation24]  }
  0x98   :  { %s6106_s12 = scalar_lea.vmem %s274_s2, 16  ;;  %s6110_s11 = scalar_lea.vmem %s274_s2, 32 }
  0x99   :  { %p6107_p7 = scmp.ne.s32.totalorder %s274_s2, %s6106_s12  ;;  %p6111_p8 = scmp.lt.s32.totalorder %s274_s2, %s274_s2 }
  0x9a   :  { %p6112_p9 = scmp.lt.s32.totalorder %s6110_s11, %s6106_s12 }
  0x9c   :  { %p6113_p10 = por %p6112_p9, %p6111_p8 }
  0x9e   :  { %p6114_p11 = pnand %p6113_p10, %p6107_p7 }
  0xa0   :  { %6117 = shalt.err (!%p6114_p11)
}
  0xa1   :  { %276 = dma.hbm_to_vmem [thread:$0]  %s6672_s3, 16, %s274_s2, [#allocation27]  }
  0xa2   :  { %s6510_s24 = smov [#allocation29]   ;;  %s6511_s15 = smov [#allocation32]  }
  0xa3   :  { %s295_s9 = sshll.u32 %s6510_s24, 4  ;;  %s317_s21 = sshll.u32 %s6511_s15, 4  ;;  %s296_s9 = int_to_ptr.vmem [resolvable:$true] %s295_s9  ;;  %s318_s21 = int_to_ptr.vmem [resolvable:$true] %s317_s21 }
  0xa4   :  { %s6126_s16 = scalar_lea.vmem %s296_s9, 16  ;;  %s6130_s18 = scalar_lea.vmem %s296_s9, 32 }
  0xa5   :  { %p6127_p12 = scmp.ne.s32.totalorder %s296_s9, %s6126_s16  ;;  %p6131_p13 = scmp.lt.s32.totalorder %s296_s9, %s296_s9 }
  0xa6   :  { %p6132_p0 = scmp.lt.s32.totalorder %s6130_s18, %s6126_s16 }
  0xa8   :  { %p6133_p1 = por %p6132_p0, %p6131_p13 }
  0xaa   :  { %p6134_p2 = pnand %p6133_p1, %p6127_p12 }
  0xac   :  { %6137 = shalt.err (!%p6134_p2)
}
  0xad   :  { %298 = dma.hbm_to_vmem [thread:$0]  %s6687_s4, 16, %s296_s9, [#allocation30]  }
  0xae   :  { %s6146_s14 = scalar_lea.vmem %s318_s21, 16  ;;  %s6150_s22 = scalar_lea.vmem %s318_s21, 32 }
  0xaf   :  { %p6147_p3 = scmp.ne.s32.totalorder %s318_s21, %s6146_s14  ;;  %p6151_p4 = scmp.lt.s32.totalorder %s318_s21, %s318_s21 }
  0xb0   :  { %p6152_p5 = scmp.lt.s32.totalorder %s6150_s22, %s6146_s14 }
  0xb2   :  { %p6153_p6 = por %p6152_p5, %p6151_p4 }
  0xb4   :  { %p6154_p7 = pnand %p6153_p6, %p6147_p3 }
  0xb6   :  { %6157 = shalt.err (!%p6154_p7)
}
  0xb7   :  { %320 = dma.hbm_to_vmem [thread:$0]  %s6702_s13, 16, %s318_s21, [#allocation33]  }
  0xb8   :  { %s6512_s3 = smov [#allocation35]   ;;  %s6513_s23 = smov [#allocation2]  }
  0xb9   :  { %s339_s0 = sshll.u32 %s6512_s3, 4  ;;  %s101_s8 = sshll.u32 %s6513_s23, 4  ;;  %s340_s0 = int_to_ptr.vmem [resolvable:$true] %s339_s0  ;;  %s102_s8 = int_to_ptr.vmem [resolvable:$true] %s101_s8 }
  0xba   :  { %s6166_s26 = scalar_lea.vmem %s340_s0, 16  ;;  %s6170_s30 = scalar_lea.vmem %s340_s0, 32 }
  0xbb   :  { %p6167_p8 = scmp.ne.s32.totalorder %s340_s0, %s6166_s26  ;;  %p6171_p9 = scmp.lt.s32.totalorder %s340_s0, %s340_s0 }
  0xbc   :  { %p6172_p10 = scmp.lt.s32.totalorder %s6170_s30, %s6166_s26 }
  0xbe   :  { %p6173_p11 = por %p6172_p10, %p6171_p9 }
  0xc0   :  { %p6174_p12 = pnand %p6173_p11, %p6167_p8 }
  0xc2   :  { %6177 = shalt.err (!%p6174_p12)
}
  0xc3   :  { %342 = dma.hbm_to_vmem [thread:$0]  %s6717_s25, 16, %s340_s0, [#allocation36]  }
  0xc4   :  { %s6186_s4 = scalar_lea.vmem %s102_s8, 32  ;;  %p6191_p0 = scmp.lt.s32.totalorder %s102_s8, %s102_s8 }
  0xc5   :  { %p6187_p13 = scmp.ne.s32.totalorder %s102_s8, %s6186_s4  ;;  %p6192_p1 = scmp.lt.s32.totalorder %s6186_s4, %s6186_s4 }
  0xc7   :  { %p6193_p2 = por %p6192_p1, %p6191_p0 }
  0xc9   :  { %p6194_p3 = pnand %p6193_p2, %p6187_p13 }
  0xcb   :  { %6197 = shalt.err (!%p6194_p3)
}
  0xcc   :  { %104 = dma.hbm_to_vmem [thread:$0]  %s6542_s5, 32, %s102_s8, [#allocation3]  }
  0xcd   :  { %s6514_s13 = smov [#allocation7]   ;;  %s6515_s1 = smov [#allocation10]  }
  0xce   :  { %s123_s28 = sshll.u32 %s6514_s13, 4  ;;  %s145_s2 = sshll.u32 %s6515_s1, 4  ;;  %s124_s28 = int_to_ptr.vmem [resolvable:$true] %s123_s28  ;;  %s146_s2 = int_to_ptr.vmem [resolvable:$true] %s145_s2 }
  0xcf   :  { %s6206_s7 = scalar_lea.vmem %s124_s28, 16  ;;  %s6210_s10 = scalar_lea.vmem %s124_s28, 32 }
  0xd0   :  { %p6207_p4 = scmp.ne.s32.totalorder %s124_s28, %s6206_s7  ;;  %p6211_p5 = scmp.lt.s32.totalorder %s124_s28, %s124_s28 }
  0xd1   :  { %p6212_p6 = scmp.lt.s32.totalorder %s6210_s10, %s6206_s7 }
  0xd3   :  { %p6213_p7 = por %p6212_p6, %p6211_p5 }
  0xd5   :  { %p6214_p8 = pnand %p6213_p7, %p6207_p4 }
  0xd7   :  { %6217 = shalt.err (!%p6214_p8)
}
  0xd8   :  { %126 = dma.hbm_to_vmem [thread:$0]  %s6557_s17, 16, %s124_s28, [#allocation6]  }
  0xd9   :  { %s6226_s25 = scalar_lea.vmem %s146_s2, 16  ;;  %s6230_s12 = scalar_lea.vmem %s146_s2, 32 }
  0xda   :  { %p6227_p9 = scmp.ne.s32.totalorder %s146_s2, %s6226_s25  ;;  %p6231_p10 = scmp.lt.s32.totalorder %s146_s2, %s146_s2 }
  0xdb   :  { %p6232_p11 = scmp.lt.s32.totalorder %s6230_s12, %s6226_s25 }
  0xdd   :  { %p6233_p12 = por %p6232_p11, %p6231_p10 }
  0xdf   :  { %p6234_p13 = pnand %p6233_p12, %p6227_p9 }
  0xe1   :  { %6237 = shalt.err (!%p6234_p13)
}
  0xe2   :  { %148 = dma.hbm_to_vmem [thread:$0]  %s6572_s29, 16, %s146_s2, [#allocation9]  }
  0xe3   :  { %s6516_s5 = smov [#allocation13]   ;;  %s6517_s24 = smov [#allocation16]  }
  0xe4   :  { %s169_s11 = sshll.u32 %s6516_s5, 4  ;;  %s191_s9 = sshll.u32 %s6517_s24, 4  ;;  %s170_s11 = int_to_ptr.vmem [resolvable:$true] %s169_s11  ;;  %s192_s9 = int_to_ptr.vmem [resolvable:$true] %s191_s9 }
  0xe5   :  { %s6246_s15 = scalar_lea.vmem %s170_s11, 16  ;;  %s6250_s21 = scalar_lea.vmem %s170_s11, 32 }
  0xe6   :  { %p6247_p0 = scmp.ne.s32.totalorder %s170_s11, %s6246_s15  ;;  %p6251_p1 = scmp.lt.s32.totalorder %s170_s11, %s170_s11 }
  0xe7   :  { %p6252_p2 = scmp.lt.s32.totalorder %s6250_s21, %s6246_s15 }
  0xe9   :  { %p6253_p3 = por %p6252_p2, %p6251_p1 }
  0xeb   :  { %p6254_p4 = pnand %p6253_p3, %p6247_p0 }
  0xed   :  { %6257 = shalt.err (!%p6254_p4)
}
  0xee   :  { %172 = dma.hbm_to_vmem [thread:$0]  %s6592_s19, 16, %s170_s11, [#allocation12]  }
  0xef   :  { %s6266_s17 = scalar_lea.vmem %s192_s9, 16  ;;  %s6270_s16 = scalar_lea.vmem %s192_s9, 32 }
  0xf0   :  { %p6267_p5 = scmp.ne.s32.totalorder %s192_s9, %s6266_s17  ;;  %p6271_p6 = scmp.lt.s32.totalorder %s192_s9, %s192_s9 }
  0xf1   :  { %p6272_p7 = scmp.lt.s32.totalorder %s6270_s16, %s6266_s17 }
  0xf3   :  { %p6273_p8 = por %p6272_p7, %p6271_p6 }
  0xf5   :  { %p6274_p9 = pnand %p6273_p8, %p6267_p5 }
  0xf7   :  { %6277 = shalt.err (!%p6274_p9)
}
  0xf8   :  { %s7276_s29 = sld [smem:[#allocation57_spill]]  ;;  %s6518_s18 = smov [#allocation19]  }
  0xf9   :  { %s213_s14 = sshll.u32 %s6518_s18, 4  ;;  %s6519_s22 = smov [#allocation22]   ;;  %s214_s14 = int_to_ptr.vmem [resolvable:$true] %s213_s14 }
  0xfa   :  { %s235_s3 = sshll.u32 %s6519_s22, 4  ;;  %s6286_s0 = scalar_lea.vmem %s214_s14, 16  ;;  %s236_s3 = int_to_ptr.vmem [resolvable:$true] %s235_s3 }
  0xfb   :  { %p6287_p10 = scmp.ne.s32.totalorder %s214_s14, %s6286_s0  ;;  %s6290_s23 = scalar_lea.vmem %s214_s14, 32 }
  0xfc   :  { %p6291_p11 = scmp.lt.s32.totalorder %s214_s14, %s214_s14  ;;  %p6292_p12 = scmp.lt.s32.totalorder %s6290_s23, %s6286_s0 }
  0xfe   :  { %194 = dma.hbm_to_vmem [thread:$0]  %s7276_s29, 16, %s192_s9, [#allocation15]  }
  0xff   :  { %p6293_p13 = por %p6292_p12, %p6291_p11 }
 0x101   :  { %p6294_p0 = pnand %p6293_p13, %p6287_p10 }
 0x103   :  { %6297 = shalt.err (!%p6294_p0)
}
 0x104   :  { %s7277_s19 = sld [smem:[#allocation59_spill]]  ;;  %s6306_s8 = scalar_lea.vmem %s236_s3, 16 }
 0x105   :  { %p6307_p1 = scmp.ne.s32.totalorder %s236_s3, %s6306_s8  ;;  %s6310_s26 = scalar_lea.vmem %s236_s3, 32 }
 0x106   :  { %p6311_p2 = scmp.lt.s32.totalorder %s236_s3, %s236_s3  ;;  %p6312_p3 = scmp.lt.s32.totalorder %s6310_s26, %s6306_s8 }
 0x108   :  { %p6313_p4 = por %p6312_p3, %p6311_p2 }
 0x10a   :  { %216 = dma.hbm_to_vmem [thread:$0]  %s7277_s19, 16, %s214_s14, [#allocation18]  }
 0x10b   :  { %p6314_p5 = pnand %p6313_p4, %p6307_p1 }
 0x10d   :  { %6317 = shalt.err (!%p6314_p5)
}
 0x10e   :  { %s7278_s30 = sld [smem:[#allocation61_spill]]  ;;  %s6520_s4 = smov [#allocation25]  }
 0x10f   :  { %s261_s13 = sshll.u32 %s6520_s4, 4  ;;  %s6521_s28 = smov [#allocation28]   ;;  %s262_s13 = int_to_ptr.vmem [resolvable:$true] %s261_s13 }
 0x110   :  { %s285_s1 = sshll.u32 %s6521_s28, 4  ;;  %s6326_s2 = scalar_lea.vmem %s262_s13, 16  ;;  %s286_s1 = int_to_ptr.vmem [resolvable:$true] %s285_s1 }
 0x111   :  { %p6327_p6 = scmp.ne.s32.totalorder %s262_s13, %s6326_s2  ;;  %s6330_s7 = scalar_lea.vmem %s262_s13, 32 }
 0x112   :  { %p6331_p7 = scmp.lt.s32.totalorder %s262_s13, %s262_s13  ;;  %p6332_p8 = scmp.lt.s32.totalorder %s6330_s7, %s6326_s2 }
 0x114   :  { %238 = dma.hbm_to_vmem [thread:$0]  %s7278_s30, 16, %s236_s3, [#allocation21]  }
 0x115   :  { %p6333_p9 = por %p6332_p8, %p6331_p7 }
 0x117   :  { %p6334_p10 = pnand %p6333_p9, %p6327_p6 }
 0x119   :  { %6337 = shalt.err (!%p6334_p10)
}
 0x11a   :  { %s7279_s10 = sld [smem:[#allocation65_spill]]  ;;  %s6346_s25 = scalar_lea.vmem %s286_s1, 16 }
 0x11b   :  { %p6347_p11 = scmp.ne.s32.totalorder %s286_s1, %s6346_s25  ;;  %s6350_s12 = scalar_lea.vmem %s286_s1, 32 }
 0x11c   :  { %p6351_p12 = scmp.lt.s32.totalorder %s286_s1, %s286_s1  ;;  %p6352_p13 = scmp.lt.s32.totalorder %s6350_s12, %s6346_s25 }
 0x11e   :  { %p6353_p0 = por %p6352_p13, %p6351_p12 }
 0x120   :  { %264 = dma.hbm_to_vmem [thread:$0]  %s7279_s10, 16, %s262_s13, [#allocation24]  }
 0x121   :  { %p6354_p1 = pnand %p6353_p0, %p6347_p11 }
 0x123   :  { %6357 = shalt.err (!%p6354_p1)
}
 0x124   :  { %s7280_s5 = sld [smem:[#allocation68_spill]]  ;;  %s6522_s11 = smov [#allocation31]  }
 0x125   :  { %s305_s24 = sshll.u32 %s6522_s11, 4  ;;  %s6523_s9 = smov [#allocation34]   ;;  %s306_s24 = int_to_ptr.vmem [resolvable:$true] %s305_s24 }
 0x126   :  { %s329_s15 = sshll.u32 %s6523_s9, 4  ;;  %s6366_s21 = scalar_lea.vmem %s306_s24, 16  ;;  %s330_s15 = int_to_ptr.vmem [resolvable:$true] %s329_s15 }
 0x127   :  { %p6367_p2 = scmp.ne.s32.totalorder %s306_s24, %s6366_s21  ;;  %s6370_s17 = scalar_lea.vmem %s306_s24, 32 }
 0x128   :  { %p6371_p3 = scmp.lt.s32.totalorder %s306_s24, %s306_s24  ;;  %p6372_p4 = scmp.lt.s32.totalorder %s6370_s17, %s6366_s21 }
 0x12a   :  { %288 = dma.hbm_to_vmem [thread:$0]  %s7280_s5, 16, %s286_s1, [#allocation27]  }
 0x12b   :  { %p6373_p5 = por %p6372_p4, %p6371_p3 }
 0x12d   :  { %p6374_p6 = pnand %p6373_p5, %p6367_p2 }
 0x12f   :  { %6377 = shalt.err (!%p6374_p6)
}
 0x130   :  { %s7281_s16 = sld [smem:[#allocation69_spill]]  ;;  %s6386_s29 = scalar_lea.vmem %s330_s15, 16 }
 0x131   :  { %p6387_p7 = scmp.ne.s32.totalorder %s330_s15, %s6386_s29  ;;  %s6390_s18 = scalar_lea.vmem %s330_s15, 32 }
 0x132   :  { %p6391_p8 = scmp.lt.s32.totalorder %s330_s15, %s330_s15  ;;  %p6392_p9 = scmp.lt.s32.totalorder %s6390_s18, %s6386_s29 }
 0x134   :  { %p6393_p10 = por %p6392_p9, %p6391_p8 }
 0x136   :  { %308 = dma.hbm_to_vmem [thread:$0]  %s7281_s16, 16, %s306_s24, [#allocation30]  }
 0x137   :  { %p6394_p11 = pnand %p6393_p10, %p6387_p7 }
 0x139   :  { %6397 = shalt.err (!%p6394_p11)
}
 0x13a   :  { %s7282_s14 = sld [smem:[#allocation72_spill]]  ;;  %s6524_s22 = smov [#allocation37]  }
 0x13b   :  { %s349_s3 = sshll.u32 %s6524_s22, 4  ;;  %s350_s3 = int_to_ptr.vmem [resolvable:$true] %s349_s3 }
 0x13c   :  { %s6406_s0 = scalar_lea.vmem %s350_s3, 16  ;;  %s6410_s23 = scalar_lea.vmem %s350_s3, 32 }
 0x13d   :  { %p6407_p12 = scmp.ne.s32.totalorder %s350_s3, %s6406_s0  ;;  %p6411_p13 = scmp.lt.s32.totalorder %s350_s3, %s350_s3 }
 0x13e   :  { %p6412_p0 = scmp.lt.s32.totalorder %s6410_s23, %s6406_s0 }
 0x140   :  { %332 = dma.hbm_to_vmem [thread:$0]  %s7282_s14, 16, %s330_s15, [#allocation33]  }
 0x141   :  { %p6413_p1 = por %p6412_p0, %p6411_p13 }
 0x143   :  { %p6414_p2 = pnand %p6413_p1, %p6407_p12 }
 0x145   :  { %6417 = shalt.err (!%p6414_p2)
}
 0x146   :  { %352 = dma.hbm_to_vmem [thread:$0]  %s6722_s6, 16, %s350_s3, [#allocation36]  }
 0x147   :  { %6438 = dma.done.wait [#allocation3], 32  }
 0x148   :  { %6439 = vsyncadd [#allocation3], 4294967264 }
 0x149   :  { %6440 = dma.done.wait [#allocation6], 144  }
 0x14a   :  { %6441 = vsyncadd [#allocation6], 4294967152 }
 0x14b   :  { %6442 = dma.done.wait [#allocation9], 32  }
 0x14c   :  { %6443 = vsyncadd [#allocation9], 4294967264 }
 0x14d   :  { %6444 = dma.done.wait [#allocation12], 32  }
 0x14e   :  { %6445 = vsyncadd [#allocation12], 4294967264 }
 0x14f   :  { %6446 = dma.done.wait [#allocation15], 32  }
 0x150   :  { %6447 = vsyncadd [#allocation15], 4294967264 }
 0x151   :  { %6448 = dma.done.wait [#allocation18], 32  }
 0x152   :  { %6449 = vsyncadd [#allocation18], 4294967264 }
 0x153   :  { %6450 = dma.done.wait [#allocation21], 32  }
 0x154   :  { %6451 = vsyncadd [#allocation21], 4294967264 }
 0x155   :  { %6452 = dma.done.wait [#allocation24], 32  }
 0x156   :  { %6453 = vsyncadd [#allocation24], 4294967264 }
 0x157   :  { %6454 = dma.done.wait [#allocation27], 32  }
 0x158   :  { %6455 = vsyncadd [#allocation27], 4294967264 }
 0x159   :  { %6456 = dma.done.wait [#allocation30], 32  }
 0x15a   :  { %6457 = vsyncadd [#allocation30], 4294967264 }
 0x15b   :  { %6458 = dma.done.wait [#allocation33], 32  }
 0x15c   :  { %6459 = vsyncadd [#allocation33], 4294967264 }
 0x15d   :  { %6460 = dma.done.wait [#allocation36], 32  }
 0x15e   :  { %6461 = vsyncadd [#allocation36], 4294967264  ;;  %s7283_s6 = sld [smem:[#allocation52_spill]]  ;;  %v425_v0 = vlaneseq  ;;  %v424_v4 = vld [vmem:[#allocation2] sm:$0x3]  ;;  %v6525_v25 = vmov 1.0  }
 0x15f   :  { %v538_v28 = vld [vmem:[#allocation5] sm:$0xff]  ;;  %vm543_vm2 = vcmask 261120   ;;  %s7284_s19 = sld [smem:[#allocation53_spill]]  ;;  %v5144_v56 = vld [vmem:[#allocation7] ss:$0 sm:$0xff]  ;;  %vm6527_vm3 = vmmov 0  }
 0x160   :  { %v428_v1 = vshrl.u32 %v425_v0, 7  ;;  %v426_v23 = vand.u32 127, %v425_v0  ;;  %s7285_s8 = sld [smem:[#allocation54_spill]]  ;;  %v5145_v58 = vld [vmem:[#allocation8] ss:$0 sm:$0xff]  ;;  %vm855_vm4 = vcmask 64512  }
 0x161   :  { %s7286_s26 = sld [smem:[#allocation55_spill]]  ;;  %s6528_s30 = smov 120   ;;  %vm2660_vm5 = vcmask 523264  }
 0x162   :  { %v429_v2 = vsub.s32 0, %v428_v1  ;;  %v436_v3 = vsub.s32 1, %v428_v1  ;;  %s7287_s4 = sld [smem:[#allocation56_spill]]  ;;  %s6529_s13 = smov 112  }
 0x163   :  { %s6530_s28 = smov 104   ;;  %s7288_s1 = sld [smem:[#allocation58_spill]] }
 0x164   :  { %v462_v5 = vld [vmem:[%s7283_s6 + $0x78] sm:$0xff]  ;;  %v461_v6 = vld [vmem:[%s7283_s6 + $0x70] sm:$0xff]  ;;  %v430_v7 = vrot.slane %v424_v4, %v429_v2  ;;  %v460_v8 = vld [vmem:[%s7283_s6 + $0x68] sm:$0xff]  ;;  %v437_v9 = vrot.slane %v424_v4, %v436_v3  ;;  %s7289_s2 = sld [smem:[#allocation60_spill]] }
 0x165   :  { %5432 = vmatprep.subr.mxu0 %v462_v5  ;;  %v459_v10 = vld [vmem:[%s7283_s6 + $0x60] sm:$0xff]  ;;  %v458_v11 = vld [vmem:[%s7283_s6 + $0x58] sm:$0xff]  ;;  %v457_v12 = vld [vmem:[%s7283_s6 + $0x50] sm:$0xff]  ;;  %s7290_s7 = sld [smem:[#allocation62_spill]] }
 0x166   :  { %5433 = vmatpush3.msra.mxu0 %v462_v5  ;;  %432 = vbcast.lane.b32.xlu0 %v430_v7, 256  ;;  %v456_v13 = vld [vmem:[%s7283_s6 + $0x48] sm:$0xff]  ;;  %v455_v14 = vld [vmem:[%s7283_s6 + $0x40] sm:$0xff]  ;;  %v454_v15 = vld [vmem:[%s7283_s6 + $0x38] sm:$0xff]  ;;  %s7291_s10 = sld [smem:[#allocation66_spill]] }
 0x167   :  { %5434 = vmatprep.subr.mxu0 %v461_v6  ;;  %v453_v16 = vld [vmem:[%s7283_s6 + $0x30] sm:$0xff]  ;;  %v452_v17 = vld [vmem:[%s7283_s6 + $0x28] sm:$0xff]  ;;  %v451_v18 = vld [vmem:[%s7283_s6 + $0x20] sm:$0xff]  ;;  %s7292_s25 = sld [smem:[#allocation64_spill]] }
 0x168   :  { %5435 = vmatpush3.msra.mxu0 %v461_v6  ;;  %v450_v19 = vld [vmem:[%s7283_s6 + $0x18] sm:$0xff]  ;;  %v449_v20 = vld [vmem:[%s7283_s6 + $0x10] sm:$0xff]  ;;  %v448_v21 = vld [vmem:[%s7283_s6 + $0x8] sm:$0xff]  ;;  %s7293_s12 = sld [smem:[#allocation63_spill]] }
 0x169   :  { %5436 = vmatprep.subr.mxu0 %v460_v8  ;;  %v447_v22 = vld [vmem:[%s7283_s6] sm:$0xff]  ;;  %v590_v44 = vld [vmem:[%s7284_s19 + $0x18] sm:$0xff]  ;;  %v589_v45 = vld [vmem:[%s7284_s19 + $0x10] sm:$0xff]  ;;  %s7294_s5 = sld [smem:[#allocation67_spill]] }
 0x16a   :  { %5437 = vmatpush3.msra.mxu0 %v460_v8  ;;  %439 = vbcast.lane.b32.xlu0 %v437_v9, 256  ;;  %v588_v46 = vld [vmem:[%s7284_s19 + $0x8] sm:$0xff]  ;;  %v587_v47 = vld [vmem:[%s7284_s19] sm:$0xff]  ;;  %v682_v48 = vld [vmem:[%s7285_s8 + $0x18] sm:$0xff]  ;;  %v6526_v8 = vmov 0.0   ;;  %s7295_s11 = sld [smem:[#allocation70_spill]] }
 0x16b   :  { %5438 = vmatprep.subr.mxu0 %v459_v10  ;;  %5467 = vmatprep.subr.mxu1 %v590_v44  ;;  %v681_v1 = vld [vmem:[%s7285_s8 + $0x10] sm:$0xff]  ;;  %v680_v2 = vld [vmem:[%s7285_s8 + $0x8] sm:$0xff]  ;;  %v679_v3 = vld [vmem:[%s7285_s8] sm:$0xff]  ;;  %s7296_s24 = sld [smem:[#allocation71_spill]] }
 0x16c   :  { %5439 = vmatpush3.msra.mxu0 %v459_v10  ;;  %5468 = vmatpush3.msra.mxu1 %v590_v44  ;;  %v768_v4 = vld [vmem:[%s7286_s26 + $0x18] sm:$0xff]  ;;  %v767_v5 = vld [vmem:[%s7286_s26 + $0x10] sm:$0xff]  ;;  %v766_v6 = vld [vmem:[%s7286_s26 + $0x8] sm:$0xff] }
 0x16d   :  { %5440 = vmatprep.subr.mxu0 %v458_v11  ;;  %5469 = vmatprep.subr.mxu1 %v589_v45  ;;  %v765_v7 = vld [vmem:[%s7286_s26] sm:$0xff] }
 0x16e   :  { %5441 = vmatpush3.msra.mxu0 %v458_v11  ;;  %5470 = vmatpush3.msra.mxu1 %v589_v45  ;;  %v5149_v11 = vld [vmem:[#allocation11] ss:$0 sm:$0xff] }
 0x16f   :  { %5442 = vmatprep.subr.mxu0 %v457_v12  ;;  %5471 = vmatprep.subr.mxu1 %v588_v46 }
 0x170   :  { %5443 = vmatpush3.msra.mxu0 %v457_v12  ;;  %5472 = vmatpush3.msra.mxu1 %v588_v46 }
 0x171   :  { %5444 = vmatprep.subr.mxu0 %v456_v13  ;;  %5473 = vmatprep.subr.mxu1 %v587_v47 }
 0x172   :  { %5445 = vmatpush3.msra.mxu0 %v456_v13  ;;  %5474 = vmatpush3.msra.mxu1 %v587_v47 }
 0x173   :  { %5446 = vmatprep.subr.mxu0 %v455_v14  ;;  %5478 = vmatprep.subr.mxu1 %v682_v48 }
 0x174   :  { %5447 = vmatpush3.msra.mxu0 %v455_v14 }
 0x175   :  { %5448 = vmatprep.subr.mxu0 %v454_v15 }
 0x176   :  { %5449 = vmatpush3.msra.mxu0 %v454_v15 }
 0x177   :  { %5450 = vmatprep.subr.mxu0 %v453_v16 }
 0x178   :  { %5451 = vmatpush3.msra.mxu0 %v453_v16  ;;  %v5146_v16 = vld [vmem:[#allocation10] ss:$0 sm:$0xff] }
 0x179   :  { %5452 = vmatprep.subr.mxu0 %v452_v17 }
 0x17a   :  { %5453 = vmatpush3.msra.mxu0 %v452_v17 }
 0x17b   :  { %5454 = vmatprep.subr.mxu0 %v451_v18 }
 0x17c   :  { %5455 = vmatpush3.msra.mxu0 %v451_v18 }
 0x17d   :  { %5456 = vmatprep.subr.mxu0 %v450_v19 }
 0x17e   :  { %5457 = vmatpush3.msra.mxu0 %v450_v19  ;;  %v5152_v19 = vld [vmem:[#allocation13] ss:$0 sm:$0xff] }
 0x17f   :  { %5458 = vmatprep.subr.mxu0 %v449_v20 }
 0x180   :  { %5459 = vmatpush3.msra.mxu0 %v449_v20 }
 0x181   :  { %5460 = vmatprep.subr.mxu0 %v448_v21 }
 0x182   :  { %5461 = vmatpush3.msra.mxu0 %v448_v21 }
 0x183   :  { %5462 = vmatprep.subr.mxu0 %v447_v22 }
 0x184   :  { %5463 = vmatpush3.msra.mxu0 %v447_v22 }
 0x185   :  { %5510 = vmatprep.subr.mxu0 %v6526_v8 }
 0x1d8   :  { %v433_v24 = vpop.permute.xlu0 %432 }
 0x1d9   :  { %vm441_vm0 = vcmp.eq.s32.totalorder %v426_v23, %v433_v24 }
 0x1da   :  { %5464 = vmatprep.mubr.msk.f32.mxu0 %vm441_vm0, %v6525_v25 }
 0x1dc   :  { %v440_v26 = vpop.permute.xlu0 %439 }
 0x1dd   :  { %vm442_vm1 = vcmp.eq.s32.totalorder %v426_v23, %v440_v26 }
 0x1de   :  { %5465 = vmatmul.mubr.msk.f32.vlgmr.msra.gmra.mxu0 %vm442_vm1, %v6525_v25 }
 0x1df   :  { %5512 = vmatprep.mubr.msk.f32.mxu0 %vm6527_vm3, %v6526_v8 }
 0x29e   :  { %v5466_v27 = vpop.f32.mrf.mxu0 }
 0x29f   :  { %v6775_v31 = vadd.f32 %v5466_v27, %v538_v28 }
 0x2a0   :  { %v529_v29 = vpop.f32.mrf.mxu0 }
 0x2a1   :  { %v6773_v30 = vadd.f32 %v538_v28, %v529_v29  ;;  %v547_v33 = vsel %vm543_vm2, %v6775_v31, 0.0 }
 0x2a3   :  { %v544_v32 = vsel %vm543_vm2, %v6773_v30, 0.0 }
 0x2a4   :  { %545 = vadd.xlane.f32.xlu1 %v544_v32 }
 0x2a8   :  { %548 = vadd.xlane.f32.xlu1 %v547_v33 }
 0x32d   :  { %v546_v34 = vpop.xlane.xlu1 %545 }
 0x32e   :  { %v551_v35 = vmul.f32 0.03125, %v546_v34 }
 0x330   :  { %v553_v36 = vsub.f32 %v6773_v30, %v551_v35 }
 0x331   :  { %v549_v37 = vpop.xlane.xlu1 %548 }
 0x332   :  { %v552_v38 = vmul.f32 0.03125, %v549_v37  ;;  %v555_v39 = vmul.f32 %v553_v36, %v553_v36 }
 0x334   :  { %v554_v40 = vsub.f32 %v6775_v31, %v552_v38  ;;  %v557_v41 = vsel %vm543_vm2, %v555_v39, 0.0 }
 0x335   :  { %558 = vadd.xlane.f32.xlu0 %v557_v41 }
 0x336   :  { %v556_v42 = vmul.f32 %v554_v40, %v554_v40 }
 0x338   :  { %v560_v43 = vsel %vm543_vm2, %v556_v42, 0.0 }
 0x339   :  { %561 = vadd.xlane.f32.xlu1 %v560_v43 }
 0x3be   :  { %v559_v49 = vpop.xlane.xlu0 %558 }
 0x3bf   :  { %v563_v50 = vmul.f32 0.03125, %v559_v49 }
 0x3c1   :  { %v565_v51 = vadd.f32 1e-05, %v563_v50 }
 0x3c2   :  { %v562_v52 = vpop.xlane.xlu1 %561 }
 0x3c3   :  { %5874 = vrsqrt.f32 %v565_v51  ;;  %v564_v53 = vmul.f32 0.03125, %v562_v52 }
 0x3c5   :  { %v566_v54 = vadd.f32 1e-05, %v564_v53 }
 0x3c7   :  { %5876 = vrsqrt.f32 %v566_v54 }
 0x3d0   :  { %v5875_v55 = vpop.eup %5874 }
 0x3d1   :  { %v569_v57 = vmul.f32 %v5875_v55, %v553_v36 }
 0x3d3   :  { %v577_v59 = vmul.f32 %v5144_v56, %v569_v57 }
 0x3d4   :  { %v5877_v60 = vpop.eup %5876 }
 0x3d5   :  { %v570_v61 = vmul.f32 %v5877_v60, %v554_v40  ;;  %v585_v62 = vadd.f32 %v5145_v58, %v577_v59 }
 0x3d7   :  { %v578_v63 = vmul.f32 %v5144_v56, %v570_v61  ;;  %5475 = vmatprep.mubr.msk.f32.mxu1 %vm543_vm2, %v585_v62 }
 0x3d9   :  { %v586_v0 = vadd.f32 %v5145_v58, %v578_v63 }
 0x3db   :  { %5476 = vmatmul.mubr.msk.f32.vlgmr.msra.gmra.mxu1 %vm543_vm2, %v586_v0 }
 0x3dc   :  { %5479 = vmatpush3.msra.mxu1 %v682_v48  ;;  %5486 = vmatprep.mubr.msk.f32.mxu1 %vm543_vm2, %v585_v62 }
 0x3dd   :  { %5480 = vmatprep.subr.mxu1 %v681_v1 }
 0x3de   :  { %5481 = vmatpush3.msra.mxu1 %v681_v1 }
 0x3df   :  { %5482 = vmatprep.subr.mxu1 %v680_v2 }
 0x3e0   :  { %5483 = vmatpush3.msra.mxu1 %v680_v2 }
 0x3e1   :  { %5484 = vmatprep.subr.mxu1 %v679_v3 }
 0x3e2   :  { %5485 = vmatpush3.msra.mxu1 %v679_v3 }
 0x3e3   :  { %5487 = vmatmul.mubr.msk.f32.vlgmr.msra.gmra.mxu1 %vm543_vm2, %v586_v0  ;;  %5489 = vmatprep.subr.mxu1 %v768_v4 }
 0x3e4   :  { %5490 = vmatpush3.msra.mxu1 %v768_v4  ;;  %5497 = vmatprep.mubr.msk.f32.mxu1 %vm543_vm2, %v585_v62 }
 0x3e5   :  { %5491 = vmatprep.subr.mxu1 %v767_v5 }
 0x3e6   :  { %5492 = vmatpush3.msra.mxu1 %v767_v5 }
 0x3e7   :  { %5493 = vmatprep.subr.mxu1 %v766_v6 }
 0x3e8   :  { %5494 = vmatpush3.msra.mxu1 %v766_v6 }
 0x3e9   :  { %5495 = vmatprep.subr.mxu1 %v765_v7 }
 0x3ea   :  { %5496 = vmatpush3.msra.mxu1 %v765_v7 }
 0x3eb   :  { %5498 = vmatmul.mubr.msk.f32.vlgmr.msra.gmra.mxu1 %vm543_vm2, %v586_v0  ;;  %5500 = vmatprep.subr.mxu1 %v6526_v8 }
 0x3ec   :  { %5502 = vmatprep.mubr.msk.f32.mxu1 %vm6527_vm3, %v6526_v8 }
 0x49b   :  { %v5477_v9 = vpop.f32.mrf.mxu1 }
 0x49c   :  { %v6826_v20 = vadd.f32 %v5477_v9, %v5146_v16 }
 0x49d   :  { %v670_v10 = vpop.f32.mrf.mxu1 }
 0x49e   :  { %v6817_v17 = vadd.f32 %v5146_v16, %v670_v10 }
 0x4a3   :  { %v5488_v12 = vpop.f32.mrf.mxu1 }
 0x4a4   :  { %v6809_v13 = vadd.f32 %v5488_v12, %v5149_v11  ;;  %v851_v12 = vld [vmem:[%s7287_s4] sm:$0xff] }
 0x4a5   :  { %v756_v14 = vpop.f32.mrf.mxu1 }
 0x4a6   :  { %v6811_v15 = vadd.f32 %v5149_v11, %v756_v14  ;;  %1256 = vrot.lane.b32.xlu0 %v6809_v13, %s6528_s30 }
 0x4a8   :  { %5501 = vmatpush3.xpose.msk.msra.mxu1 %vm855_vm4, %v6811_v15 }
 0x4a9   :  { %5505 = vmatprep.subr.mxu1 %v6526_v8 }
 0x4ab   :  { %v5499_v18 = vpop.f32.mrf.mxu1  ;;  %5503 = vmatmul.mubr.msk.f32.vlgmr.msra.gmra.mxu1 %vm855_vm4, %v6817_v17 }
 0x4ac   :  { %5506 = vmatpush3.xpose.msk.msra.mxu1 %vm855_vm4, %v6809_v13  ;;  %5507 = vmatprep.mubr.msk.f32.mxu1 %vm6527_vm3, %v6526_v8  ;;  %v6829_v22 = vadd.f32 %v5499_v18, %v5152_v19 }
 0x4ad   :  { %v842_v21 = vpop.f32.mrf.mxu1  ;;  %5515 = vmatprep.subr.mxu1 %v6526_v8 }
 0x4ae   :  { %v6831_v23 = vadd.f32 %v5152_v19, %v842_v21 }
 0x4af   :  { %5508 = vmatmul.mubr.msk.f32.vlgmr.msra.gmra.mxu1 %vm855_vm4, %v6826_v20 }
 0x4b0   :  { %5511 = vmatpush3.msra.mxu0 %v6831_v23  ;;  %5516 = vmatpush3.msra.mxu1 %v6829_v22 }
 0x4b1   :  { %5520 = vmatprep.subr.mxu0 %v6526_v8  ;;  %5517 = vmatprep.mubr.msk.f32.mxu1 %vm6527_vm3, %v6526_v8 }
 0x4b2   :  { %5525 = vmatprep.subr.mxu1 %v6526_v8 }
 0x518   :  { %v1257_v50 = vpop.permute.xlu0 %1256 }
 0x56b   :  { %v928_v24 = vpop.f32.mrf.mxu1 }
 0x56c   :  { %v1008_v25 = vsel %vm855_vm4, %v928_v24, -inf }
 0x56d   :  { %1009 = vmax.xlane.f32.xlu1 %v1008_v25  ;;  %v5504_v26 = vpop.f32.mrf.mxu1 }
 0x56f   :  { %v1004_v27 = vpop.f32.mrf.mxu1 }
 0x570   :  { %v1011_v28 = vsel %vm855_vm4, %v1004_v27, -inf }
 0x571   :  { %1012 = vmax.xlane.f32.xlu1 %v1011_v28  ;;  %v5509_v29 = vpop.f32.mrf.mxu1 }
 0x582   :  { %1178 = vrot.lane.b32.xlu1 %v6811_v15, %s6528_s30 }
 0x586   :  { %1176 = vrot.lane.b32.xlu1 %v6817_v17, %s6528_s30 }
 0x5f6   :  { %v1010_v32 = vpop.xlane.xlu1 %1009 }
 0x5f7   :  { %v1014_v33 = vsub.f32 %v928_v24, %v1010_v32 }
 0x5f9   :  { %v1016_v34 = vmul.f32 1.442695, %v1014_v33 }
 0x5fa   :  { %v1013_v35 = vpop.xlane.xlu1 %1012 }
 0x5fb   :  { %5878 = vpow2.f32 %v1016_v34  ;;  %v1015_v36 = vsub.f32 %v1004_v27, %v1013_v35  ;;  %v852_v27 = vld [vmem:[%s7287_s4 + $0x8] sm:$0xff] }
 0x5fd   :  { %v1018_v37 = vmul.f32 1.442695, %v1015_v36 }
 0x5fe   :  { %v1179_v42 = vpop.permute.xlu1 %1178 }
 0x5ff   :  { %5880 = vpow2.f32 %v1018_v37 }
 0x602   :  { %v1177_v43 = vpop.permute.xlu1 %1176 }
 0x608   :  { %v5879_v38 = vpop.eup %5878 }
 0x609   :  { %v1020_v39 = vsel %vm855_vm4, %v5879_v38, 0.0 }
 0x60a   :  { %1021 = vadd.xlane.f32.xlu1 %v1020_v39 }
 0x60c   :  { %v5881_v40 = vpop.eup %5880 }
 0x60d   :  { %v1023_v41 = vsel %vm855_vm4, %v5881_v40, 0.0 }
 0x60e   :  { %1024 = vadd.xlane.f32.xlu1 %v1023_v41 }
 0x61f   :  { %1254 = vrot.lane.b32.xlu1 %v6826_v20, %s6528_s30 }
 0x693   :  { %v1022_v44 = vpop.xlane.xlu1 %1021 }
 0x694   :  { %5882 = vrcp.f32 %v1022_v44 }
 0x697   :  { %v1025_v45 = vpop.xlane.xlu1 %1024 }
 0x698   :  { %5884 = vrcp.f32 %v1025_v45 }
 0x69b   :  { %v1255_v51 = vpop.permute.xlu1 %1254 }
 0x6a1   :  { %v5883_v46 = vpop.eup %5882 }
 0x6a2   :  { %v1028_v47 = vmul.f32 %v5883_v46, %v5879_v38 }
 0x6a4   :  { %5513 = vmatmul.mubr.msk.f32.vlgmr.msra.gmra.mxu0 %vm855_vm4, %v1028_v47 }
 0x6a5   :  { %v5885_v48 = vpop.eup %5884  ;;  %5521 = vmatpush3.xpose.msk.msra.mxu0 %vm855_vm4, %v1179_v42  ;;  %5522 = vmatprep.mubr.msk.f32.mxu0 %vm6527_vm3, %v6526_v8 }
 0x6a6   :  { %v1029_v49 = vmul.f32 %v5885_v48, %v5881_v40  ;;  %5530 = vmatprep.subr.mxu0 %v6526_v8 }
 0x6a8   :  { %5518 = vmatmul.mubr.msk.f32.vlgmr.msra.gmra.mxu1 %vm855_vm4, %v1029_v49  ;;  %5523 = vmatmul.mubr.msk.f32.vlgmr.msra.gmra.mxu0 %vm855_vm4, %v1177_v43 }
 0x6a9   :  { %5526 = vmatpush3.xpose.msk.msra.mxu1 %vm855_vm4, %v1257_v50  ;;  %5527 = vmatprep.mubr.msk.f32.mxu1 %vm6527_vm3, %v6526_v8 }
 0x6aa   :  { %5535 = vmatprep.subr.mxu1 %v6526_v8  ;;  %5532 = vmatprep.mubr.msk.f32.mxu0 %vm6527_vm3, %v6526_v8 }
 0x6ac   :  { %5528 = vmatmul.mubr.msk.f32.vlgmr.msra.gmra.mxu1 %vm855_vm4, %v1255_v51 }
 0x6ad   :  { %5537 = vmatprep.mubr.msk.f32.mxu1 %vm6527_vm3, %v6526_v8 }
 0x764   :  { %v1099_v52 = vpop.f32.mrf.mxu0 }
 0x766   :  { %v5514_v53 = vpop.f32.mrf.mxu0 }
 0x768   :  { %v1172_v54 = vpop.f32.mrf.mxu1  ;;  %v1250_v55 = vpop.f32.mrf.mxu0 }
 0x769   :  { %v1332_v56 = vsel %vm855_vm4, %v1250_v55, -inf }
 0x76a   :  { %1333 = vmax.xlane.f32.xlu1 %v1332_v56  ;;  %v5519_v57 = vpop.f32.mrf.mxu1  ;;  %v5524_v58 = vpop.f32.mrf.mxu0 }
 0x76c   :  { %v1328_v59 = vpop.f32.mrf.mxu1 }
 0x76d   :  { %v1335_v60 = vsel %vm855_vm4, %v1328_v59, -inf }
 0x76e   :  { %1336 = vmax.xlane.f32.xlu0 %v1335_v60  ;;  %v5529_v61 = vpop.f32.mrf.mxu1 }
 0x76f   :  { %v853_v61 = vld [vmem:[%s7287_s4 + $0x10] sm:$0xff] }
 0x7f3   :  { %v1334_v62 = vpop.xlane.xlu1 %1333 }
 0x7f4   :  { %v1338_v63 = vsub.f32 %v1250_v55, %v1334_v62 }
 0x7f6   :  { %v1340_v0 = vmul.f32 1.442695, %v1338_v63 }
 0x7f7   :  { %v1337_v1 = vpop.xlane.xlu0 %1336 }
 0x7f8   :  { %5886 = vpow2.f32 %v1340_v0  ;;  %v1339_v2 = vsub.f32 %v1328_v59, %v1337_v1 }
 0x7fa   :  { %v1342_v3 = vmul.f32 1.442695, %v1339_v2 }
 0x7fc   :  { %5888 = vpow2.f32 %v1342_v3 }
 0x805   :  { %v5887_v4 = vpop.eup %5886 }
 0x806   :  { %v1344_v5 = vsel %vm855_vm4, %v5887_v4, 0.0 }
 0x807   :  { %1345 = vadd.xlane.f32.xlu1 %v1344_v5 }
 0x809   :  { %v5889_v6 = vpop.eup %5888 }
 0x80a   :  { %v1347_v7 = vsel %vm855_vm4, %v5889_v6, 0.0 }
 0x80b   :  { %1348 = vadd.xlane.f32.xlu0 %v1347_v7 }
 0x818   :  { %1355 = vrot.lane.b32.xlu1 %v6831_v23, %s6528_s30 }
 0x81c   :  { %1672 = vrot.lane.b32.xlu1 %v6811_v15, %s6529_s13 }
 0x820   :  { %1750 = vrot.lane.b32.xlu1 %v6809_v13, %s6529_s13 }
 0x821   :  { %1432 = vrot.lane.b32.xlu0 %v6829_v22, %s6528_s30 }
 0x824   :  { %1748 = vrot.lane.b32.xlu1 %v6826_v20, %s6529_s13 }
 0x825   :  { %1670 = vrot.lane.b32.xlu0 %v6817_v17, %s6529_s13 }
 0x890   :  { %v1346_v9 = vpop.xlane.xlu1 %1345 }
 0x891   :  { %5890 = vrcp.f32 %v1346_v9 }
 0x894   :  { %v1356_v10 = vpop.permute.xlu1 %1355  ;;  %v1349_v11 = vpop.xlane.xlu0 %1348 }
 0x895   :  { %5892 = vrcp.f32 %v1349_v11  ;;  %5531 = vmatpush3.msra.mxu0 %v1356_v10 }
 0x896   :  { %5540 = vmatprep.subr.mxu0 %v852_v27 }
 0x898   :  { %v1433_v14 = vpop.permute.xlu0 %1432  ;;  %v1673_v19 = vpop.permute.xlu1 %1672 }
 0x899   :  { %5536 = vmatpush3.msra.mxu1 %v1433_v14 }
 0x89a   :  { %5545 = vmatprep.subr.mxu1 %v851_v12 }
 0x89c   :  { %v1751_v25 = vpop.permute.xlu1 %1750  ;;  %v1671_v34 = vpop.permute.xlu0 %1670 }
 0x89e   :  { %v5891_v16 = vpop.eup %5890 }
 0x89f   :  { %v1352_v18 = vmul.f32 %v5891_v16, %v5887_v4 }
 0x8a0   :  { %v1749_v26 = vpop.permute.xlu1 %1748 }
 0x8a1   :  { %5533 = vmatmul.mubr.msk.f32.vlgmr.msra.gmra.mxu0 %vm855_vm4, %v1352_v18 }
 0x8a2   :  { %v5893_v21 = vpop.eup %5892  ;;  %5541 = vmatpush3.msra.mxu0 %v852_v27 }
 0x8a3   :  { %v1353_v24 = vmul.f32 %v5893_v21, %v5889_v6  ;;  %5550 = vmatprep.subr.mxu0 %v6526_v8 }
 0x8a5   :  { %5538 = vmatmul.mubr.msk.f32.vlgmr.msra.gmra.mxu1 %vm855_vm4, %v1353_v24 }
 0x8a6   :  { %5547 = vmatprep.mubr.msk.f32.mxu1 %vm855_vm4, %v1099_v52  ;;  %5546 = vmatpush3.msra.mxu1 %v851_v12 }
 0x8a7   :  { %5555 = vmatprep.subr.mxu1 %v6526_v8 }
 0x8a9   :  { %5548 = vmatmul.mubr.msk.f32.vlgmr.msra.gmra.mxu1 %vm855_vm4, %v1172_v54 }
 0x8aa   :  { %5556 = vmatpush3.xpose.msk.msra.mxu1 %vm855_vm4, %v1751_v25  ;;  %5557 = vmatprep.mubr.msk.f32.mxu1 %vm6527_vm3, %v6526_v8 }
 0x8ab   :  { %5565 = vmatprep.subr.mxu1 %v6526_v8 }
 0x8ad   :  { %5558 = vmatmul.mubr.msk.f32.vlgmr.msra.gmra.mxu1 %vm855_vm4, %v1749_v26 }
 0x8ae   :  { %5567 = vmatprep.mubr.msk.f32.mxu1 %vm6527_vm3, %v6526_v8 }
 0x961   :  { %v1427_v28 = vpop.f32.mrf.mxu0 }
 0x962   :  { %5542 = vmatprep.mubr.msk.f32.mxu0 %vm855_vm4, %v1427_v28 }
 0x963   :  { %v5534_v29 = vpop.f32.mrf.mxu0 }
 0x965   :  { %v1504_v32 = vpop.f32.mrf.mxu1 }
 0x966   :  { %5543 = vmatmul.mubr.msk.f32.vlgmr.msra.gmra.mxu0 %vm855_vm4, %v1504_v32 }
 0x967   :  { %5551 = vmatpush3.xpose.msk.msra.mxu0 %vm855_vm4, %v1673_v19  ;;  %v5539_v33 = vpop.f32.mrf.mxu1  ;;  %5552 = vmatprep.mubr.msk.f32.mxu0 %vm6527_vm3, %v6526_v8 }
 0x968   :  { %5560 = vmatprep.subr.mxu0 %v6526_v8 }
 0x969   :  { %v6904_v35 = vpop.f32.mrf.mxu1 }
 0x96a   :  { %5553 = vmatmul.mubr.msk.f32.vlgmr.msra.gmra.mxu0 %vm855_vm4, %v1671_v34 }
 0x96b   :  { %v6907_v36 = vpop.f32.mrf.mxu1  ;;  %5562 = vmatprep.mubr.msk.f32.mxu0 %vm6527_vm3, %v6526_v8 }
 0x96d   :  { %v1822_v37 = vpop.f32.mrf.mxu1 }
 0x96e   :  { %v1829_v38 = vsel %vm855_vm4, %v1822_v37, -inf }
 0x96f   :  { %1830 = vmax.xlane.f32.xlu1 %v1829_v38  ;;  %v5559_v39 = vpop.f32.mrf.mxu1 }
 0x980   :  { %1848 = vrot.lane.b32.xlu1 %v6831_v23, %s6529_s13 }
 0x984   :  { %2085 = vrot.lane.b32.xlu1 %v6811_v15, %s6530_s28 }
 0x988   :  { %2163 = vrot.lane.b32.xlu1 %v6809_v13, %s6530_s28 }
 0x98c   :  { %2161 = vrot.lane.b32.xlu1 %v6826_v20, %s6530_s28 }
 0x9f8   :  { %v1831_v40 = vpop.xlane.xlu1 %1830 }
 0x9f9   :  { %v1833_v42 = vsub.f32 %v1822_v37, %v1831_v40 }
 0x9fb   :  { %v1836_v43 = vmul.f32 1.442695, %v1833_v42 }
 0x9fc   :  { %v1849_v41 = vpop.permute.xlu1 %1848 }
 0x9fd   :  { %5561 = vmatpush3.msra.mxu0 %v1849_v41  ;;  %5894 = vpow2.f32 %v1836_v43 }
 0x9fe   :  { %5570 = vmatprep.subr.mxu0 %v853_v61 }
 0xa00   :  { %v2086_v58 = vpop.permute.xlu1 %2085 }
 0xa04   :  { %v2164_v3 = vpop.permute.xlu1 %2163 }
 0xa08   :  { %v2162_v6 = vpop.permute.xlu1 %2161 }
 0xa0a   :  { %v5895_v15 = vpop.eup %5894 }
 0xa0b   :  { %v1841_v13 = vsel %vm855_vm4, %v5895_v15, 0.0 }
 0xa26   :  { %v6920_v44 = vpop.f32.mrf.mxu0 }
 0xa27   :  { %v1667_v14 = vadd.f32 %v6904_v35, %v6920_v44 }
 0xa28   :  { %v6922_v45 = vpop.f32.mrf.mxu0 }
 0xa29   :  { %v1662_v18 = vadd.f32 %v6907_v36, %v6922_v45 }
 0xa2a   :  { %v1744_v46 = vpop.f32.mrf.mxu0 }
 0xa2b   :  { %v1826_v47 = vsel %vm855_vm4, %v1744_v46, -inf }
 0xa2c   :  { %1827 = vmax.xlane.f32.xlu0 %v1826_v47  ;;  %v5554_v48 = vpop.f32.mrf.mxu0 }
 0xa30   :  { %1842 = vadd.xlane.f32.xlu0 %v1841_v13 }
 0xab5   :  { %v1828_v20 = vpop.xlane.xlu0 %1827 }
 0xab6   :  { %v1832_v49 = vsub.f32 %v1744_v46, %v1828_v20 }
 0xab8   :  { %v1834_v50 = vmul.f32 1.442695, %v1832_v49 }
 0xab9   :  { %v1843_v53 = vpop.xlane.xlu0 %1842 }
 0xaba   :  { %5896 = vpow2.f32 %v1834_v50 }
 0xabb   :  { %5898 = vrcp.f32 %v1843_v53 }
 0xac7   :  { %v5897_v51 = vpop.eup %5896 }
 0xac8   :  { %v1838_v52 = vsel %vm855_vm4, %v5897_v51, 0.0  ;;  %v5899_v55 = vpop.eup %5898 }
 0xac9   :  { %1839 = vadd.xlane.f32.xlu0 %v1838_v52  ;;  %v1847_v57 = vmul.f32 %v5899_v55, %v5895_v15  ;;  %v5187_v15 = vld [vmem:[#allocation14] ss:$0 sm:$0xff] }
 0xadf   :  { %1924 = vrot.lane.b32.xlu0 %v6829_v22, %s6529_s13 }
 0xae3   :  { %2083 = vrot.lane.b32.xlu0 %v6817_v17, %s6530_s28 }
 0xb52   :  { %v1840_v54 = vpop.xlane.xlu0 %1839 }
 0xb53   :  { %5900 = vrcp.f32 %v1840_v54 }
 0xb56   :  { %v1925_v56 = vpop.permute.xlu0 %1924 }
 0xb57   :  { %5566 = vmatpush3.msra.mxu1 %v1925_v56 }
 0xb58   :  { %5568 = vmatmul.mubr.msk.f32.vlgmr.msra.gmra.mxu1 %vm855_vm4, %v1847_v57  ;;  %5575 = vmatprep.subr.mxu1 %v6526_v8 }
 0xb59   :  { %5576 = vmatpush3.xpose.msk.msra.mxu1 %vm855_vm4, %v2086_v58  ;;  %5577 = vmatprep.mubr.msk.f32.mxu1 %vm6527_vm3, %v6526_v8 }
 0xb5a   :  { %v2084_v17 = vpop.permute.xlu0 %2083  ;;  %5585 = vmatprep.subr.mxu1 %v6526_v8 }
 0xb5c   :  { %5578 = vmatmul.mubr.msk.f32.vlgmr.msra.gmra.mxu1 %vm855_vm4, %v2084_v17 }
 0xb5d   :  { %5587 = vmatprep.mubr.msk.f32.mxu1 %vm6527_vm3, %v6526_v8 }
 0xb60   :  { %v5901_v59 = vpop.eup %5900 }
 0xb61   :  { %v1846_v60 = vmul.f32 %v5901_v59, %v5897_v51 }
 0xb63   :  { %5563 = vmatmul.mubr.msk.f32.vlgmr.msra.gmra.mxu0 %vm855_vm4, %v1846_v60 }
 0xb64   :  { %5571 = vmatpush3.msra.mxu0 %v853_v61  ;;  %v2554_v61 = vld [vmem:[%s7288_s1 + $0x18] sm:$0xff] }
 0xb65   :  { %5580 = vmatprep.subr.mxu0 %v6526_v8 }
 0xc18   :  { %v1996_v62 = vpop.f32.mrf.mxu1 }
 0xc1a   :  { %v5569_v63 = vpop.f32.mrf.mxu1 }
 0xc1b   :  { %v2552_v63 = vld [vmem:[%s7288_s1 + $0x8] sm:$0xff] }
 0xc1c   :  { %v2157_v0 = vpop.f32.mrf.mxu1 }
 0xc1d   :  { %v2239_v1 = vsel %vm855_vm4, %v2157_v0, -inf }
 0xc1e   :  { %2240 = vmax.xlane.f32.xlu0 %v2239_v1  ;;  %v5579_v2 = vpop.f32.mrf.mxu1  ;;  %v2652_v1 = vld [vmem:[%s7289_s2 + $0x38] sm:$0xff] }
 0xc1f   :  { %v2651_v2 = vld [vmem:[%s7289_s2 + $0x30] sm:$0xff] }
 0xc23   :  { %v1920_v4 = vpop.f32.mrf.mxu0 }
 0xc24   :  { %5572 = vmatprep.mubr.msk.f32.mxu0 %vm855_vm4, %v1920_v4  ;;  %v2649_v4 = vld [vmem:[%s7289_s2 + $0x20] sm:$0xff] }
 0xc25   :  { %v5564_v5 = vpop.f32.mrf.mxu0  ;;  %5573 = vmatmul.mubr.msk.f32.vlgmr.msra.gmra.mxu0 %vm855_vm4, %v1996_v62  ;;  %v2553_v62 = vld [vmem:[%s7288_s1 + $0x10] sm:$0xff] }
 0xc26   :  { %5581 = vmatpush3.xpose.msk.msra.mxu0 %vm855_vm4, %v2164_v3  ;;  %5582 = vmatprep.mubr.msk.f32.mxu0 %vm6527_vm3, %v6526_v8  ;;  %v2650_v3 = vld [vmem:[%s7289_s2 + $0x28] sm:$0xff] }
 0xc27   :  { %5590 = vmatprep.subr.mxu0 %v6526_v8 }
 0xc29   :  { %5583 = vmatmul.mubr.msk.f32.vlgmr.msra.gmra.mxu0 %vm855_vm4, %v2162_v6 }
 0xc2a   :  { %5592 = vmatprep.mubr.msk.f32.mxu0 %vm6527_vm3, %v6526_v8 }
 0xca7   :  { %v2241_v7 = vpop.xlane.xlu0 %2240 }
 0xca8   :  { %v2245_v9 = vsub.f32 %v2157_v0, %v2241_v7  ;;  %v2551_v0 = vld [vmem:[%s7288_s1] sm:$0xff] }
 0xcaa   :  { %v2247_v10 = vmul.f32 1.442695, %v2245_v9 }
 0xcac   :  { %5902 = vpow2.f32 %v2247_v10 }
 0xcb9   :  { %v5903_v11 = vpop.eup %5902 }
 0xcba   :  { %v2251_v12 = vsel %vm855_vm4, %v5903_v11, 0.0 }
 0xcbb   :  { %2252 = vadd.xlane.f32.xlu0 %v2251_v12 }
 0xce5   :  { %v5574_v16 = vpop.f32.mrf.mxu0 }
 0xce6   :  { %v2082_v19 = vadd.f32 %v5574_v16, %v1667_v14  ;;  %v5188_v14 = vld [vmem:[#allocation16] ss:$0 sm:$0xff] }
 0xce7   :  { %v2072_v21 = vpop.f32.mrf.mxu0 }
 0xce8   :  { %v2081_v24 = vadd.f32 %v2072_v21, %v1662_v18 }
 0xce9   :  { %v2235_v25 = vpop.f32.mrf.mxu0 }
 0xcea   :  { %v2242_v26 = vsel %vm855_vm4, %v2235_v25, -inf }
 0xceb   :  { %2243 = vmax.xlane.f32.xlu1 %v2242_v26  ;;  %v5584_v27 = vpop.f32.mrf.mxu0 }
 0xcfc   :  { %2261 = vrot.lane.b32.xlu1 %v6831_v23, %s6530_s28  ;;  %v854_v23 = vld [vmem:[%s7287_s4 + $0x18] sm:$0xff] }
 0xd44   :  { %v2253_v28 = vpop.xlane.xlu0 %2252 }
 0xd45   :  { %5904 = vrcp.f32 %v2253_v28  ;;  %v2648_v28 = vld [vmem:[%s7289_s2 + $0x18] sm:$0xff] }
 0xd52   :  { %v5905_v32 = vpop.eup %5904 }
 0xd53   :  { %v2259_v36 = vmul.f32 %v5905_v32, %v5903_v11  ;;  %v2646_v32 = vld [vmem:[%s7289_s2 + $0x8] sm:$0xff] }
 0xd74   :  { %v2244_v29 = vpop.xlane.xlu1 %2243 }
 0xd75   :  { %v2246_v33 = vsub.f32 %v2235_v25, %v2244_v29  ;;  %v2647_v29 = vld [vmem:[%s7289_s2 + $0x10] sm:$0xff] }
 0xd77   :  { %v2249_v34 = vmul.f32 1.442695, %v2246_v33  ;;  %v2645_v33 = vld [vmem:[%s7289_s2] sm:$0xff] }
 0xd78   :  { %v2262_v35 = vpop.permute.xlu1 %2261 }
 0xd79   :  { %5906 = vpow2.f32 %v2249_v34  ;;  %5586 = vmatpush3.msra.mxu1 %v2262_v35  ;;  %v5190_v34 = vld [vmem:[#allocation19] ss:$0 sm:$0xff] }
 0xd7a   :  { %5588 = vmatmul.mubr.msk.f32.vlgmr.msra.gmra.mxu1 %vm855_vm4, %v2259_v36  ;;  %5595 = vmatprep.subr.mxu1 %v854_v23 }
 0xd7b   :  { %5596 = vmatpush3.msra.mxu1 %v854_v23 }
 0xd7c   :  { %5611 = vmatprep.subr.mxu1 %v2652_v1 }
 0xd86   :  { %v5907_v37 = vpop.eup %5906 }
 0xd87   :  { %v2254_v38 = vsel %vm855_vm4, %v5907_v37, 0.0 }
 0xd88   :  { %2255 = vadd.xlane.f32.xlu0 %v2254_v38 }
 0xd9e   :  { %2337 = vrot.lane.b32.xlu0 %v6829_v22, %s6530_s28 }
 0xe11   :  { %v2256_v39 = vpop.xlane.xlu0 %2255 }
 0xe12   :  { %5908 = vrcp.f32 %v2256_v39 }
 0xe15   :  { %v2338_v40 = vpop.permute.xlu0 %2337 }
 0xe16   :  { %5591 = vmatpush3.msra.mxu0 %v2338_v40  ;;  %v5193_v40 = vld [vmem:[#allocation20] ss:$0 sm:$0xff] }
 0xe17   :  { %5600 = vmatprep.subr.mxu0 %v2554_v61 }
 0xe1f   :  { %v5909_v41 = vpop.eup %5908 }
 0xe20   :  { %v2260_v42 = vmul.f32 %v5909_v41, %v5907_v37 }
 0xe22   :  { %5593 = vmatmul.mubr.msk.f32.vlgmr.msra.gmra.mxu0 %vm855_vm4, %v2260_v42 }
 0xe23   :  { %5601 = vmatpush3.msra.mxu0 %v2554_v61 }
 0xe24   :  { %5602 = vmatprep.subr.mxu0 %v2553_v62 }
 0xe25   :  { %5603 = vmatpush3.msra.mxu0 %v2553_v62 }
 0xe26   :  { %5604 = vmatprep.subr.mxu0 %v2552_v63 }
 0xe27   :  { %5605 = vmatpush3.msra.mxu0 %v2552_v63 }
 0xe28   :  { %5606 = vmatprep.subr.mxu0 %v2551_v0 }
 0xe29   :  { %5607 = vmatpush3.msra.mxu0 %v2551_v0 }
 0xe3a   :  { %v2333_v43 = vpop.f32.mrf.mxu1 }
 0xe3b   :  { %5597 = vmatprep.mubr.msk.f32.mxu1 %vm855_vm4, %v2333_v43 }
 0xe3c   :  { %v5589_v44 = vpop.f32.mrf.mxu1 }
 0xee2   :  { %v2409_v45 = vpop.f32.mrf.mxu0 }
 0xee3   :  { %5598 = vmatmul.mubr.msk.f32.vlgmr.msra.gmra.mxu1 %vm855_vm4, %v2409_v45 }
 0xee4   :  { %v5594_v46 = vpop.f32.mrf.mxu0  ;;  %5612 = vmatpush3.msra.mxu1 %v2652_v1 }
 0xee5   :  { %5613 = vmatprep.subr.mxu1 %v2651_v2 }
 0xee6   :  { %5614 = vmatpush3.msra.mxu1 %v2651_v2 }
 0xee7   :  { %5615 = vmatprep.subr.mxu1 %v2650_v3 }
 0xee8   :  { %5616 = vmatpush3.msra.mxu1 %v2650_v3 }
 0xee9   :  { %5617 = vmatprep.subr.mxu1 %v2649_v4 }
 0xeea   :  { %5618 = vmatpush3.msra.mxu1 %v2649_v4  ;;  %v5196_v4 = vld [vmem:[#allocation22] ss:$0 sm:$0xff] }
 0xeeb   :  { %5619 = vmatprep.subr.mxu1 %v2648_v28 }
 0xeec   :  { %5620 = vmatpush3.msra.mxu1 %v2648_v28  ;;  %v5198_v28 = vld [vmem:[%s7293_s12] ss:$0 sm:$0xff] }
 0xeed   :  { %5621 = vmatprep.subr.mxu1 %v2647_v29 }
 0xeee   :  { %5622 = vmatpush3.msra.mxu1 %v2647_v29 }
 0xeef   :  { %5623 = vmatprep.subr.mxu1 %v2646_v32 }
 0xef0   :  { %5624 = vmatpush3.msra.mxu1 %v2646_v32  ;;  %v5204_v32 = vld [vmem:[#allocation26] ss:$0 sm:$0xff] }
 0xef1   :  { %5625 = vmatprep.subr.mxu1 %v2645_v33 }
 0xef2   :  { %5626 = vmatpush3.msra.mxu1 %v2645_v33 }
 0xfa3   :  { %v5599_v22 = vpop.f32.mrf.mxu1 }
 0xfa4   :  { %v2495_v47 = vadd.f32 %v5599_v22, %v2082_v19 }
 0xfa5   :  { %v2485_v48 = vpop.f32.mrf.mxu1 }
 0xfa6   :  { %v2497_v13 = vadd.f32 %v2495_v47, %v6775_v31  ;;  %v2494_v20 = vadd.f32 %v2485_v48, %v2081_v24  ;;  %v5189_v24 = vld [vmem:[#allocation17] ss:$0 sm:$0xff] }
 0xfa8   :  { %v6970_v49 = vadd.f32 %v5187_v15, %v2497_v13  ;;  %v2496_v50 = vadd.f32 %v2494_v20, %v6773_v30 }
 0xfaa   :  { %v6973_v51 = vadd.f32 %v5187_v15, %v2496_v50  ;;  %v2512_v52 = vsel %vm543_vm2, %v6970_v49, 0.0 }
 0xfab   :  { %2513 = vadd.xlane.f32.xlu0 %v2512_v52 }
 0xfac   :  { %v2509_v53 = vsel %vm543_vm2, %v6973_v51, 0.0 }
 0xfad   :  { %2510 = vadd.xlane.f32.xlu1 %v2509_v53 }
0x1034   :  { %v2514_v54 = vpop.xlane.xlu0 %2513 }
0x1035   :  { %v2516_v31 = vmul.f32 0.03125, %v2514_v54 }
0x1036   :  { %v2511_v55 = vpop.xlane.xlu1 %2510 }
0x1037   :  { %v2518_v56 = vsub.f32 %v6970_v49, %v2516_v31  ;;  %v2515_v30 = vmul.f32 0.03125, %v2511_v55  ;;  %v2791_v31 = vld [vmem:[%s7290_s7 + $0x18] sm:$0xff] }
0x1038   :  { %v2969_v55 = vld [vmem:[%s7291_s10 + $0x18] sm:$0xff]  ;;  %5630 = vmatprep.subr.mxu0 %v2791_v31 }
0x1039   :  { %v2517_v57 = vsub.f32 %v6973_v51, %v2515_v30  ;;  %v2520_v58 = vmul.f32 %v2518_v56, %v2518_v56  ;;  %5652 = vmatprep.subr.mxu1 %v2969_v55  ;;  %v2968_v30 = vld [vmem:[%s7291_s10 + $0x10] sm:$0xff] }
0x103b   :  { %v2524_v17 = vsel %vm543_vm2, %v2520_v58, 0.0  ;;  %v2519_v59 = vmul.f32 %v2517_v57, %v2517_v57  ;;  %v2967_v58 = vld [vmem:[%s7291_s10 + $0x8] sm:$0xff] }
0x103c   :  { %2525 = vadd.xlane.f32.xlu0 %v2524_v17  ;;  %v2788_v17 = vld [vmem:[%s7290_s7] sm:$0xff] }
0x103d   :  { %v2521_v60 = vsel %vm543_vm2, %v2519_v59, 0.0  ;;  %v2966_v59 = vld [vmem:[%s7291_s10] sm:$0xff] }
0x103e   :  { %2522 = vadd.xlane.f32.xlu1 %v2521_v60  ;;  %v2883_v60 = vld [vmem:[%s7292_s25 + $0x18] sm:$0xff] }
0x10c5   :  { %v2526_v5 = vpop.xlane.xlu0 %2525 }
0x10c6   :  { %v2528_v6 = vmul.f32 0.03125, %v2526_v5 }
0x10c7   :  { %v2523_v7 = vpop.xlane.xlu1 %2522 }
0x10c8   :  { %v2530_v9 = vadd.f32 1e-05, %v2528_v6  ;;  %v2527_v10 = vmul.f32 0.03125, %v2523_v7 }
0x10ca   :  { %5910 = vrsqrt.f32 %v2530_v9  ;;  %v2529_v11 = vadd.f32 1e-05, %v2527_v10  ;;  %v5197_v10 = vld [vmem:[#allocation23] ss:$0 sm:$0xff] }
0x10cc   :  { %5912 = vrsqrt.f32 %v2529_v11 }
0x10d7   :  { %v5911_v12 = vpop.eup %5910 }
0x10d8   :  { %v2534_v16 = vmul.f32 %v5911_v12, %v2518_v56  ;;  %v2790_v56 = vld [vmem:[%s7290_s7 + $0x10] sm:$0xff] }
0x10d9   :  { %v5913_v18 = vpop.eup %5912 }
0x10da   :  { %v2533_v19 = vmul.f32 %v5913_v18, %v2517_v57  ;;  %v2542_v21 = vmul.f32 %v5188_v14, %v2534_v16  ;;  %v2789_v57 = vld [vmem:[%s7290_s7 + $0x8] sm:$0xff]  ;;  %v2882_v16 = vld [vmem:[%s7292_s25 + $0x10] sm:$0xff] }
0x10db   :  { %v2881_v18 = vld [vmem:[%s7292_s25 + $0x8] sm:$0xff] }
0x10dc   :  { %v2541_v25 = vmul.f32 %v5188_v14, %v2533_v19  ;;  %v2550_v27 = vadd.f32 %v5189_v24, %v2542_v21  ;;  %v2880_v19 = vld [vmem:[%s7292_s25] sm:$0xff] }
0x10de   :  { %v2549_v26 = vadd.f32 %v5189_v24, %v2541_v25  ;;  %v5201_v25 = vld [vmem:[#allocation25] ss:$0 sm:$0xff] }
0x10e0   :  { %5608 = vmatprep.mubr.msk.f32.mxu0 %vm543_vm2, %v2549_v26 }
0x10e1   :  { %5609 = vmatmul.mubr.msk.f32.vlgmr.msra.gmra.mxu0 %vm543_vm2, %v2550_v27 }
0x10e2   :  { %5631 = vmatpush3.msra.mxu0 %v2791_v31 }
0x10e3   :  { %5632 = vmatprep.subr.mxu0 %v2790_v56 }
0x10e4   :  { %5633 = vmatpush3.msra.mxu0 %v2790_v56 }
0x10e5   :  { %5634 = vmatprep.subr.mxu0 %v2789_v57 }
0x10e6   :  { %5635 = vmatpush3.msra.mxu0 %v2789_v57 }
0x10e7   :  { %5636 = vmatprep.subr.mxu0 %v2788_v17 }
0x10e8   :  { %5637 = vmatpush3.msra.mxu0 %v2788_v17 }
0x10e9   :  { %5641 = vmatprep.subr.mxu0 %v2883_v60 }
0x11a1   :  { %v5610_v35 = vpop.f32.mrf.mxu0 }
0x11a2   :  { %v2640_v36 = vadd.f32 %v5610_v35, %v5190_v34 }
0x11a3   :  { %v2634_v37 = vpop.f32.mrf.mxu0 }
0x11a4   :  { %v2635_v38 = vadd.f32 %v5190_v34, %v2634_v37  ;;  %v2644_v39 = vmax.f32 %v2640_v36, 0.0 }
0x11a6   :  { %v2643_v23 = vmax.f32 %v2635_v38, 0.0 }
0x11a8   :  { %5627 = vmatprep.mubr.msk.f32.mxu1 %vm2660_vm5, %v2643_v23 }
0x11a9   :  { %5628 = vmatmul.mubr.msk.f32.vlgmr.msra.gmra.mxu1 %vm2660_vm5, %v2644_v39 }
0x11aa   :  { %5653 = vmatpush3.msra.mxu1 %v2969_v55 }
0x11ab   :  { %5654 = vmatprep.subr.mxu1 %v2968_v30 }
0x11ac   :  { %5655 = vmatpush3.msra.mxu1 %v2968_v30 }
0x11ad   :  { %5656 = vmatprep.subr.mxu1 %v2967_v58 }
0x11ae   :  { %5657 = vmatpush3.msra.mxu1 %v2967_v58 }
0x11af   :  { %5658 = vmatprep.subr.mxu1 %v2966_v59 }
0x11b0   :  { %5659 = vmatpush3.msra.mxu1 %v2966_v59 }
0x11b1   :  { %5668 = vmatprep.subr.mxu1 %v6526_v8 }
0x1269   :  { %v5629_v41 = vpop.f32.mrf.mxu1 }
0x126a   :  { %v2739_v42 = vadd.f32 %v5629_v41, %v5193_v40 }
0x126b   :  { %v2733_v43 = vpop.f32.mrf.mxu1 }
0x126c   :  { %v7000_v44 = vadd.f32 %v2739_v42, %v6970_v49  ;;  %v2734_v45 = vadd.f32 %v5193_v40, %v2733_v43 }
0x126e   :  { %v7003_v46 = vadd.f32 %v2734_v45, %v6973_v51  ;;  %v2749_v22 = vsel %vm543_vm2, %v7000_v44, 0.0 }
0x126f   :  { %2750 = vadd.xlane.f32.xlu0 %v2749_v22 }
0x1270   :  { %v2746_v47 = vsel %vm543_vm2, %v7003_v46, 0.0 }
0x1271   :  { %2747 = vadd.xlane.f32.xlu1 %v2746_v47 }
0x12f8   :  { %v2751_v15 = vpop.xlane.xlu0 %2750 }
0x12f9   :  { %v2753_v48 = vmul.f32 0.03125, %v2751_v15 }
0x12fa   :  { %v2748_v13 = vpop.xlane.xlu1 %2747 }
0x12fb   :  { %v2755_v20 = vsub.f32 %v7000_v44, %v2753_v48  ;;  %v2752_v49 = vmul.f32 0.03125, %v2748_v13 }
0x12fd   :  { %v2754_v50 = vsub.f32 %v7003_v46, %v2752_v49  ;;  %v2757_v51 = vmul.f32 %v2755_v20, %v2755_v20 }
0x12ff   :  { %v2761_v52 = vsel %vm543_vm2, %v2757_v51, 0.0  ;;  %v2756_v53 = vmul.f32 %v2754_v50, %v2754_v50 }
0x1300   :  { %2762 = vadd.xlane.f32.xlu0 %v2761_v52 }
0x1301   :  { %v2758_v54 = vsel %vm543_vm2, %v2756_v53, 0.0 }
0x1302   :  { %2759 = vadd.xlane.f32.xlu1 %v2758_v54 }
0x1389   :  { %v2763_v61 = vpop.xlane.xlu0 %2762 }
0x138a   :  { %v2765_v62 = vmul.f32 0.03125, %v2763_v61 }
0x138b   :  { %v2760_v63 = vpop.xlane.xlu1 %2759 }
0x138c   :  { %v2767_v0 = vadd.f32 1e-05, %v2765_v62  ;;  %v2764_v1 = vmul.f32 0.03125, %v2760_v63 }
0x138e   :  { %5914 = vrsqrt.f32 %v2767_v0  ;;  %v2766_v2 = vadd.f32 1e-05, %v2764_v1 }
0x1390   :  { %5916 = vrsqrt.f32 %v2766_v2 }
0x139b   :  { %v5915_v3 = vpop.eup %5914 }
0x139c   :  { %v2771_v5 = vmul.f32 %v5915_v3, %v2755_v20 }
0x139d   :  { %v5917_v6 = vpop.eup %5916 }
0x139e   :  { %v2770_v7 = vmul.f32 %v5917_v6, %v2754_v50  ;;  %v2779_v9 = vmul.f32 %v5196_v4, %v2771_v5 }
0x13a0   :  { %v2778_v11 = vmul.f32 %v5196_v4, %v2770_v7  ;;  %v2787_v14 = vadd.f32 %v5197_v10, %v2779_v9 }
0x13a2   :  { %v2786_v12 = vadd.f32 %v5197_v10, %v2778_v11 }
0x13a4   :  { %5638 = vmatprep.mubr.msk.f32.mxu0 %vm543_vm2, %v2786_v12  ;;  %5660 = vmatprep.mubr.msk.f32.mxu1 %vm543_vm2, %v2786_v12 }
0x13a5   :  { %5639 = vmatmul.mubr.msk.f32.vlgmr.msra.gmra.mxu0 %vm543_vm2, %v2787_v14  ;;  %5661 = vmatmul.mubr.msk.f32.vlgmr.msra.gmra.mxu1 %vm543_vm2, %v2787_v14 }
0x13a6   :  { %5642 = vmatpush3.msra.mxu0 %v2883_v60  ;;  %5649 = vmatprep.mubr.msk.f32.mxu0 %vm543_vm2, %v2786_v12 }
0x13a7   :  { %5643 = vmatprep.subr.mxu0 %v2882_v16  ;;  %5670 = vmatprep.mubr.msk.f32.mxu1 %vm6527_vm3, %v6526_v8 }
0x13a8   :  { %5644 = vmatpush3.msra.mxu0 %v2882_v16 }
0x13a9   :  { %5645 = vmatprep.subr.mxu0 %v2881_v18 }
0x13aa   :  { %5646 = vmatpush3.msra.mxu0 %v2881_v18 }
0x13ab   :  { %5647 = vmatprep.subr.mxu0 %v2880_v19 }
0x13ac   :  { %5648 = vmatpush3.msra.mxu0 %v2880_v19 }
0x13ad   :  { %5650 = vmatmul.mubr.msk.f32.vlgmr.msra.gmra.mxu0 %vm543_vm2, %v2787_v14  ;;  %5663 = vmatprep.subr.mxu0 %v6526_v8 }
0x13ae   :  { %5665 = vmatprep.mubr.msk.f32.mxu0 %vm6527_vm3, %v6526_v8 }
0x1465   :  { %v5640_v21 = vpop.f32.mrf.mxu0  ;;  %v5662_v26 = vpop.f32.mrf.mxu1 }
0x1466   :  { %v7044_v35 = vadd.f32 %v5640_v21, %v5198_v28  ;;  %v7047_v37 = vadd.f32 %v5662_v26, %v5204_v32  ;;  %v3052_v26 = vld [vmem:[%s7294_s5] sm:$0xff] }
0x1467   :  { %v2871_v24 = vpop.f32.mrf.mxu0  ;;  %v3043_v36 = vpop.f32.mrf.mxu1 }
0x1468   :  { %v7051_v38 = vadd.f32 %v5198_v28, %v2871_v24  ;;  %v7056_v23 = vadd.f32 %v5204_v32, %v3043_v36 }
0x146d   :  { %v5651_v27 = vpop.f32.mrf.mxu0 }
0x146e   :  { %v7038_v29 = vadd.f32 %v5651_v27, %v5201_v25 }
0x146f   :  { %v2957_v33 = vpop.f32.mrf.mxu0 }
0x1470   :  { %v7040_v34 = vadd.f32 %v5201_v25, %v2957_v33  ;;  %5669 = vmatpush3.xpose.msk.msra.mxu1 %vm855_vm4, %v7038_v29 }
0x1471   :  { %5678 = vmatprep.subr.mxu1 %v6526_v8 }
0x1472   :  { %5664 = vmatpush3.xpose.msk.msra.mxu0 %vm855_vm4, %v7040_v34 }
0x1473   :  { %5671 = vmatmul.mubr.msk.f32.vlgmr.msra.gmra.mxu1 %vm855_vm4, %v7044_v35  ;;  %5673 = vmatprep.subr.mxu0 %v6526_v8 }
0x1474   :  { %5679 = vmatpush3.msra.mxu1 %v7047_v37  ;;  %5680 = vmatprep.mubr.msk.f32.mxu1 %vm6527_vm3, %v6526_v8 }
0x1475   :  { %5666 = vmatmul.mubr.msk.f32.vlgmr.msra.gmra.mxu0 %vm855_vm4, %v7051_v38  ;;  %5688 = vmatprep.subr.mxu1 %v6526_v8 }
0x1476   :  { %5674 = vmatpush3.msra.mxu0 %v7056_v23  ;;  %5675 = vmatprep.mubr.msk.f32.mxu0 %vm6527_vm3, %v6526_v8 }
0x1477   :  { %5683 = vmatprep.subr.mxu0 %v6526_v8 }
0x1533   :  { %v3204_v39 = vpop.f32.mrf.mxu1 }
0x1534   :  { %v3211_v40 = vsel %vm855_vm4, %v3204_v39, -inf }
0x1535   :  { %3212 = vmax.xlane.f32.xlu0 %v3211_v40  ;;  %v3128_v41 = vpop.f32.mrf.mxu0  ;;  %v5672_v42 = vpop.f32.mrf.mxu1 }
0x1536   :  { %v3208_v43 = vsel %vm855_vm4, %v3128_v41, -inf  ;;  %v3053_v42 = vld [vmem:[%s7294_s5 + $0x8] sm:$0xff] }
0x1537   :  { %3209 = vmax.xlane.f32.xlu1 %v3208_v43  ;;  %v5667_v45 = vpop.f32.mrf.mxu0 }
0x1548   :  { %3378 = vrot.lane.b32.xlu1 %v7040_v34, %s6528_s30 }
0x154c   :  { %3376 = vrot.lane.b32.xlu1 %v7051_v38, %s6528_s30 }
0x15be   :  { %v3213_v22 = vpop.xlane.xlu0 %3212 }
0x15bf   :  { %v3215_v47 = vsub.f32 %v3204_v39, %v3213_v22 }
0x15c0   :  { %v3210_v15 = vpop.xlane.xlu1 %3209 }
0x15c1   :  { %v3218_v48 = vmul.f32 1.442695, %v3215_v47  ;;  %v3214_v13 = vsub.f32 %v3128_v41, %v3210_v15 }
0x15c3   :  { %5918 = vpow2.f32 %v3218_v48  ;;  %v3216_v20 = vmul.f32 1.442695, %v3214_v13 }
0x15c4   :  { %v3379_v53 = vpop.permute.xlu1 %3378 }
0x15c5   :  { %5920 = vpow2.f32 %v3216_v20 }
0x15c8   :  { %v3377_v54 = vpop.permute.xlu1 %3376 }
0x15d0   :  { %v5919_v49 = vpop.eup %5918 }
0x15d1   :  { %v3223_v50 = vsel %vm855_vm4, %v5919_v49, 0.0 }
0x15d2   :  { %v5921_v51 = vpop.eup %5920  ;;  %3224 = vadd.xlane.f32.xlu0 %v3223_v50 }
0x15d3   :  { %v3220_v52 = vsel %vm855_vm4, %v5921_v51, 0.0 }
0x15d4   :  { %3221 = vadd.xlane.f32.xlu1 %v3220_v52 }
0x15e5   :  { %3454 = vrot.lane.b32.xlu1 %v7044_v35, %s6528_s30 }
0x15e8   :  { %3456 = vrot.lane.b32.xlu0 %v7038_v29, %s6528_s30 }
0x165b   :  { %v3225_v31 = vpop.xlane.xlu0 %3224 }
0x165c   :  { %5922 = vrcp.f32 %v3225_v31 }
0x165d   :  { %v3222_v55 = vpop.xlane.xlu1 %3221 }
0x165e   :  { %5924 = vrcp.f32 %v3222_v55 }
0x165f   :  { %v3457_v58 = vpop.permute.xlu0 %3456 }
0x1661   :  { %v3455_v59 = vpop.permute.xlu1 %3454 }
0x1669   :  { %v5923_v56 = vpop.eup %5922 }
0x166a   :  { %v3229_v30 = vmul.f32 %v5923_v56, %v5919_v49 }
0x166b   :  { %v5925_v57 = vpop.eup %5924 }
0x166c   :  { %5681 = vmatmul.mubr.msk.f32.vlgmr.msra.gmra.mxu1 %vm855_vm4, %v3229_v30  ;;  %v3228_v17 = vmul.f32 %v5925_v57, %v5921_v51 }
0x166d   :  { %5689 = vmatpush3.xpose.msk.msra.mxu1 %vm855_vm4, %v3457_v58  ;;  %5690 = vmatprep.mubr.msk.f32.mxu1 %vm6527_vm3, %v6526_v8 }
0x166e   :  { %5676 = vmatmul.mubr.msk.f32.vlgmr.msra.gmra.mxu0 %vm855_vm4, %v3228_v17  ;;  %5698 = vmatprep.subr.mxu1 %v6526_v8 }
0x166f   :  { %5684 = vmatpush3.xpose.msk.msra.mxu0 %vm855_vm4, %v3379_v53  ;;  %5685 = vmatprep.mubr.msk.f32.mxu0 %vm6527_vm3, %v6526_v8 }
0x1670   :  { %5691 = vmatmul.mubr.msk.f32.vlgmr.msra.gmra.mxu1 %vm855_vm4, %v3455_v59  ;;  %5693 = vmatprep.subr.mxu0 %v6526_v8 }
0x1671   :  { %5700 = vmatprep.mubr.msk.f32.mxu1 %vm6527_vm3, %v6526_v8 }
0x1672   :  { %5686 = vmatmul.mubr.msk.f32.vlgmr.msra.gmra.mxu0 %vm855_vm4, %v3377_v54 }
0x1673   :  { %5695 = vmatprep.mubr.msk.f32.mxu0 %vm6527_vm3, %v6526_v8 }
0x172c   :  { %v3372_v60 = vpop.f32.mrf.mxu1 }
0x172e   :  { %v3299_v61 = vpop.f32.mrf.mxu0  ;;  %v5682_v62 = vpop.f32.mrf.mxu1 }
0x1730   :  { %v5677_v63 = vpop.f32.mrf.mxu0  ;;  %v3528_v0 = vpop.f32.mrf.mxu1 }
0x1731   :  { %v3535_v1 = vsel %vm855_vm4, %v3528_v0, -inf }
0x1732   :  { %3536 = vmax.xlane.f32.xlu1 %v3535_v1  ;;  %v3450_v2 = vpop.f32.mrf.mxu0  ;;  %v5692_v3 = vpop.f32.mrf.mxu1 }
0x1733   :  { %v3532_v4 = vsel %vm855_vm4, %v3450_v2, -inf }
0x1734   :  { %3533 = vmax.xlane.f32.xlu0 %v3532_v4  ;;  %v5687_v5 = vpop.f32.mrf.mxu0 }
0x1735   :  { %v3054_v5 = vld [vmem:[%s7294_s5 + $0x10] sm:$0xff] }
0x1743   :  { %3555 = vrot.lane.b32.xlu1 %v7056_v23, %s6528_s30 }
0x1747   :  { %3872 = vrot.lane.b32.xlu1 %v7040_v34, %s6529_s13 }
0x174b   :  { %3950 = vrot.lane.b32.xlu1 %v7038_v29, %s6529_s13 }
0x174f   :  { %3948 = vrot.lane.b32.xlu1 %v7044_v35, %s6529_s13 }
0x17bb   :  { %v3537_v6 = vpop.xlane.xlu1 %3536 }
0x17bc   :  { %v3539_v7 = vsub.f32 %v3528_v0, %v3537_v6 }
0x17bd   :  { %v3534_v9 = vpop.xlane.xlu0 %3533 }
0x17be   :  { %v3542_v10 = vmul.f32 1.442695, %v3539_v7  ;;  %v3538_v11 = vsub.f32 %v3450_v2, %v3534_v9 }
0x17bf   :  { %v3556_v12 = vpop.permute.xlu1 %3555 }
0x17c0   :  { %5926 = vpow2.f32 %v3542_v10  ;;  %v3540_v14 = vmul.f32 1.442695, %v3538_v11  ;;  %5694 = vmatpush3.msra.mxu0 %v3556_v12 }
0x17c1   :  { %5703 = vmatprep.subr.mxu0 %v3053_v42 }
0x17c2   :  { %5928 = vpow2.f32 %v3540_v14 }
0x17c3   :  { %v3873_v28 = vpop.permute.xlu1 %3872 }
0x17c7   :  { %v3951_v39 = vpop.permute.xlu1 %3950 }
0x17cb   :  { %v3949_v41 = vpop.permute.xlu1 %3948 }
0x17cd   :  { %v5927_v16 = vpop.eup %5926 }
0x17ce   :  { %v3547_v18 = vsel %vm855_vm4, %v5927_v16, 0.0 }
0x17cf   :  { %v5929_v19 = vpop.eup %5928  ;;  %3548 = vadd.xlane.f32.xlu0 %v3547_v18 }
0x17d0   :  { %v3544_v21 = vsel %vm855_vm4, %v5929_v19, 0.0 }
0x17d3   :  { %3545 = vadd.xlane.f32.xlu0 %v3544_v21 }
0x17e9   :  { %3632 = vrot.lane.b32.xlu0 %v7047_v37, %s6528_s30 }
0x17ed   :  { %3870 = vrot.lane.b32.xlu0 %v7051_v38, %s6529_s13 }
0x1858   :  { %v3549_v24 = vpop.xlane.xlu0 %3548 }
0x1859   :  { %5930 = vrcp.f32 %v3549_v24 }
0x185c   :  { %v3546_v25 = vpop.xlane.xlu0 %3545 }
0x185d   :  { %5932 = vrcp.f32 %v3546_v25 }
0x1860   :  { %v3633_v27 = vpop.permute.xlu0 %3632 }
0x1861   :  { %5699 = vmatpush3.msra.mxu1 %v3633_v27 }
0x1862   :  { %5708 = vmatprep.subr.mxu1 %v3052_v26 }
0x1864   :  { %v3871_v20 = vpop.permute.xlu0 %3870 }
0x1866   :  { %v5931_v32 = vpop.eup %5930 }
0x1867   :  { %v3553_v33 = vmul.f32 %v5931_v32, %v5927_v16 }
0x1869   :  { %5701 = vmatmul.mubr.msk.f32.vlgmr.msra.gmra.mxu1 %vm855_vm4, %v3553_v33 }
0x186a   :  { %v5933_v36 = vpop.eup %5932  ;;  %5710 = vmatprep.mubr.msk.f32.mxu1 %vm855_vm4, %v3299_v61  ;;  %5709 = vmatpush3.msra.mxu1 %v3052_v26 }
0x186b   :  { %5718 = vmatprep.subr.mxu1 %v6526_v8  ;;  %v3552_v40 = vmul.f32 %v5933_v36, %v5929_v19 }
0x186d   :  { %5696 = vmatmul.mubr.msk.f32.vlgmr.msra.gmra.mxu0 %vm855_vm4, %v3552_v40  ;;  %5711 = vmatmul.mubr.msk.f32.vlgmr.msra.gmra.mxu1 %vm855_vm4, %v3372_v60 }
0x186e   :  { %5719 = vmatpush3.xpose.msk.msra.mxu1 %vm855_vm4, %v3951_v39  ;;  %5720 = vmatprep.mubr.msk.f32.mxu1 %vm6527_vm3, %v6526_v8 }
0x186f   :  { %5728 = vmatprep.subr.mxu1 %v6526_v8  ;;  %5704 = vmatpush3.msra.mxu0 %v3053_v42 }
0x1870   :  { %5713 = vmatprep.subr.mxu0 %v6526_v8 }
0x1871   :  { %5721 = vmatmul.mubr.msk.f32.vlgmr.msra.gmra.mxu1 %vm855_vm4, %v3949_v41 }
0x1872   :  { %5730 = vmatprep.mubr.msk.f32.mxu1 %vm6527_vm3, %v6526_v8 }
0x1929   :  { %v3704_v43 = vpop.f32.mrf.mxu1 }
0x192b   :  { %v5702_v45 = vpop.f32.mrf.mxu1 }
0x192d   :  { %v3627_v22 = vpop.f32.mrf.mxu0  ;;  %v7127_v47 = vpop.f32.mrf.mxu1 }
0x192e   :  { %5705 = vmatprep.mubr.msk.f32.mxu0 %vm855_vm4, %v3627_v22 }
0x192f   :  { %v5697_v15 = vpop.f32.mrf.mxu0  ;;  %5706 = vmatmul.mubr.msk.f32.vlgmr.msra.gmra.mxu0 %vm855_vm4, %v3704_v43  ;;  %v7131_v48 = vpop.f32.mrf.mxu1 }
0x1930   :  { %5714 = vmatpush3.xpose.msk.msra.mxu0 %vm855_vm4, %v3873_v28  ;;  %5715 = vmatprep.mubr.msk.f32.mxu0 %vm6527_vm3, %v6526_v8 }
0x1931   :  { %v4022_v13 = vpop.f32.mrf.mxu1  ;;  %5723 = vmatprep.subr.mxu0 %v6526_v8 }
0x1932   :  { %v4029_v49 = vsel %vm855_vm4, %v4022_v13, -inf }
0x1933   :  { %4030 = vmax.xlane.f32.xlu1 %v4029_v49  ;;  %5716 = vmatmul.mubr.msk.f32.vlgmr.msra.gmra.mxu0 %vm855_vm4, %v3871_v20  ;;  %v5722_v50 = vpop.f32.mrf.mxu1 }
0x1934   :  { %5725 = vmatprep.mubr.msk.f32.mxu0 %vm6527_vm3, %v6526_v8 }
0x1944   :  { %4048 = vrot.lane.b32.xlu1 %v7056_v23, %s6529_s13 }
0x1948   :  { %4285 = vrot.lane.b32.xlu1 %v7040_v34, %s6530_s28 }
0x194c   :  { %4363 = vrot.lane.b32.xlu1 %v7038_v29, %s6530_s28 }
0x1950   :  { %4361 = vrot.lane.b32.xlu1 %v7044_v35, %s6530_s28 }
0x19bc   :  { %v4031_v51 = vpop.xlane.xlu1 %4030 }
0x19bd   :  { %v4033_v53 = vsub.f32 %v4022_v13, %v4031_v51 }
0x19bf   :  { %v4036_v54 = vmul.f32 1.442695, %v4033_v53 }
0x19c0   :  { %v4049_v52 = vpop.permute.xlu1 %4048 }
0x19c1   :  { %5724 = vmatpush3.msra.mxu0 %v4049_v52  ;;  %5934 = vpow2.f32 %v4036_v54 }
0x19c2   :  { %5733 = vmatprep.subr.mxu0 %v3054_v5 }
0x19c4   :  { %v4286_v2 = vpop.permute.xlu1 %4285 }
0x19c8   :  { %v4364_v12 = vpop.permute.xlu1 %4363 }
0x19cc   :  { %v4362_v18 = vpop.permute.xlu1 %4361 }
0x19ce   :  { %v5935_v34 = vpop.eup %5934 }
0x19cf   :  { %v4041_v29 = vsel %vm855_vm4, %v5935_v34, 0.0 }
0x19ef   :  { %v7149_v31 = vpop.f32.mrf.mxu0 }
0x19f0   :  { %v3867_v27 = vadd.f32 %v7127_v47, %v7149_v31 }
0x19f1   :  { %v7151_v55 = vpop.f32.mrf.mxu0 }
0x19f2   :  { %v3862_v32 = vadd.f32 %v7131_v48, %v7151_v55 }
0x19f3   :  { %v3944_v56 = vpop.f32.mrf.mxu0 }
0x19f4   :  { %v4026_v30 = vsel %vm855_vm4, %v3944_v56, -inf }
0x19f5   :  { %4027 = vmax.xlane.f32.xlu0 %v4026_v30  ;;  %v5717_v57 = vpop.f32.mrf.mxu0  ;;  %v5239_v30 = vld [vmem:[#allocation28] ss:$0 sm:$0xff] }
0x19f9   :  { %4042 = vadd.xlane.f32.xlu0 %v4041_v29 }
0x1a7e   :  { %v4028_v35 = vpop.xlane.xlu0 %4027 }
0x1a7f   :  { %v4032_v58 = vsub.f32 %v3944_v56, %v4028_v35 }
0x1a81   :  { %v4034_v17 = vmul.f32 1.442695, %v4032_v58 }
0x1a82   :  { %v4043_v61 = vpop.xlane.xlu0 %4042 }
0x1a83   :  { %5936 = vpow2.f32 %v4034_v17 }
0x1a84   :  { %5938 = vrcp.f32 %v4043_v61 }
0x1a90   :  { %v5937_v59 = vpop.eup %5936 }
0x1a91   :  { %v4038_v60 = vsel %vm855_vm4, %v5937_v59, 0.0  ;;  %v5939_v63 = vpop.eup %5938 }
0x1a92   :  { %4039 = vadd.xlane.f32.xlu0 %v4038_v60  ;;  %v4047_v1 = vmul.f32 %v5939_v63, %v5935_v34 }
0x1aa8   :  { %4124 = vrot.lane.b32.xlu0 %v7047_v37, %s6529_s13 }
0x1aac   :  { %4283 = vrot.lane.b32.xlu0 %v7051_v38, %s6530_s28 }
0x1b1b   :  { %v4040_v62 = vpop.xlane.xlu0 %4039 }
0x1b1c   :  { %5940 = vrcp.f32 %v4040_v62 }
0x1b1f   :  { %v4125_v0 = vpop.permute.xlu0 %4124 }
0x1b20   :  { %5729 = vmatpush3.msra.mxu1 %v4125_v0 }
0x1b21   :  { %5731 = vmatmul.mubr.msk.f32.vlgmr.msra.gmra.mxu1 %vm855_vm4, %v4047_v1  ;;  %5738 = vmatprep.subr.mxu1 %v6526_v8 }
0x1b22   :  { %5739 = vmatpush3.xpose.msk.msra.mxu1 %vm855_vm4, %v4286_v2  ;;  %5740 = vmatprep.mubr.msk.f32.mxu1 %vm6527_vm3, %v6526_v8 }
0x1b23   :  { %v4284_v38 = vpop.permute.xlu0 %4283  ;;  %5748 = vmatprep.subr.mxu1 %v6526_v8 }
0x1b25   :  { %5741 = vmatmul.mubr.msk.f32.vlgmr.msra.gmra.mxu1 %vm855_vm4, %v4284_v38 }
0x1b26   :  { %5750 = vmatprep.mubr.msk.f32.mxu1 %vm6527_vm3, %v6526_v8 }
0x1b29   :  { %v5941_v3 = vpop.eup %5940 }
0x1b2a   :  { %v4046_v4 = vmul.f32 %v5941_v3, %v5937_v59 }
0x1b2c   :  { %5726 = vmatmul.mubr.msk.f32.vlgmr.msra.gmra.mxu0 %vm855_vm4, %v4046_v4  ;;  %v4754_v4 = vld [vmem:[%s7295_s11 + $0x18] sm:$0xff] }
0x1b2d   :  { %5734 = vmatpush3.msra.mxu0 %v3054_v5  ;;  %v4753_v5 = vld [vmem:[%s7295_s11 + $0x10] sm:$0xff] }
0x1b2e   :  { %5743 = vmatprep.subr.mxu0 %v6526_v8 }
0x1be1   :  { %v4196_v6 = vpop.f32.mrf.mxu1 }
0x1be3   :  { %v5732_v7 = vpop.f32.mrf.mxu1 }
0x1be4   :  { %v4751_v7 = vld [vmem:[%s7295_s11] sm:$0xff] }
0x1be5   :  { %v4357_v9 = vpop.f32.mrf.mxu1 }
0x1be6   :  { %v4439_v10 = vsel %vm855_vm4, %v4357_v9, -inf }
0x1be7   :  { %4440 = vmax.xlane.f32.xlu0 %v4439_v10  ;;  %v5742_v11 = vpop.f32.mrf.mxu1  ;;  %v4851_v10 = vld [vmem:[%s7296_s24 + $0x30] sm:$0xff] }
0x1be8   :  { %v4850_v11 = vld [vmem:[%s7296_s24 + $0x28] sm:$0xff] }
0x1bec   :  { %v4120_v14 = vpop.f32.mrf.mxu0 }
0x1bed   :  { %5735 = vmatprep.mubr.msk.f32.mxu0 %vm855_vm4, %v4120_v14 }
0x1bee   :  { %v5727_v16 = vpop.f32.mrf.mxu0  ;;  %5736 = vmatmul.mubr.msk.f32.vlgmr.msra.gmra.mxu0 %vm855_vm4, %v4196_v6  ;;  %v4752_v6 = vld [vmem:[%s7295_s11 + $0x8] sm:$0xff] }
0x1bef   :  { %5744 = vmatpush3.xpose.msk.msra.mxu0 %vm855_vm4, %v4364_v12  ;;  %5745 = vmatprep.mubr.msk.f32.mxu0 %vm6527_vm3, %v6526_v8  ;;  %v4849_v12 = vld [vmem:[%s7296_s24 + $0x20] sm:$0xff] }
0x1bf0   :  { %5753 = vmatprep.subr.mxu0 %v6526_v8 }
0x1bf2   :  { %5746 = vmatmul.mubr.msk.f32.vlgmr.msra.gmra.mxu0 %vm855_vm4, %v4362_v18 }
0x1bf3   :  { %5755 = vmatprep.mubr.msk.f32.mxu0 %vm6527_vm3, %v6526_v8 }
0x1c70   :  { %v4441_v19 = vpop.xlane.xlu0 %4440 }
0x1c71   :  { %v4445_v21 = vsub.f32 %v4357_v9, %v4441_v19  ;;  %v4852_v9 = vld [vmem:[%s7296_s24 + $0x38] sm:$0xff] }
0x1c73   :  { %v4447_v24 = vmul.f32 1.442695, %v4445_v21 }
0x1c75   :  { %5942 = vpow2.f32 %v4447_v24 }
0x1c82   :  { %v5943_v25 = vpop.eup %5942 }
0x1c83   :  { %v4451_v26 = vsel %vm855_vm4, %v5943_v25, 0.0 }
0x1c84   :  { %4452 = vadd.xlane.f32.xlu0 %v4451_v26  ;;  %v5240_v26 = vld [vmem:[#allocation29] ss:$0 sm:$0xff] }
0x1cae   :  { %v5737_v28 = vpop.f32.mrf.mxu0 }
0x1caf   :  { %v4282_v33 = vadd.f32 %v5737_v28, %v3867_v27 }
0x1cb0   :  { %v4272_v36 = vpop.f32.mrf.mxu0 }
0x1cb1   :  { %v4281_v39 = vadd.f32 %v4272_v36, %v3862_v32  ;;  %v5241_v36 = vld [vmem:[#allocation31] ss:$0 sm:$0xff] }
0x1cb2   :  { %v4435_v40 = vpop.f32.mrf.mxu0 }
0x1cb3   :  { %v4442_v8 = vsel %vm855_vm4, %v4435_v40, -inf }
0x1cb4   :  { %4443 = vmax.xlane.f32.xlu1 %v4442_v8  ;;  %v5747_v41 = vpop.f32.mrf.mxu0 }
0x1cb5   :  { %v4848_v41 = vld [vmem:[%s7296_s24 + $0x18] sm:$0xff] }
0x1cc5   :  { %4461 = vrot.lane.b32.xlu1 %v7056_v23, %s6530_s28  ;;  %v3055_v23 = vld [vmem:[%s7294_s5 + $0x18] sm:$0xff] }
0x1d0d   :  { %v4453_v42 = vpop.xlane.xlu0 %4452 }
0x1d0e   :  { %5944 = vrcp.f32 %v4453_v42  ;;  %v4847_v42 = vld [vmem:[%s7296_s24 + $0x10] sm:$0xff] }
0x1d1b   :  { %v5945_v45 = vpop.eup %5944 }
0x1d1c   :  { %v4459_v48 = vmul.f32 %v5945_v45, %v5943_v25  ;;  %v4845_v45 = vld [vmem:[%s7296_s24] sm:$0xff] }
0x1d3d   :  { %v4444_v43 = vpop.xlane.xlu1 %4443 }
0x1d3e   :  { %v4446_v22 = vsub.f32 %v4435_v40, %v4444_v43  ;;  %v4846_v43 = vld [vmem:[%s7296_s24 + $0x8] sm:$0xff] }
0x1d40   :  { %v4449_v47 = vmul.f32 1.442695, %v4446_v22  ;;  %v5242_v22 = vld [vmem:[#allocation32] ss:$0 sm:$0xff] }
0x1d41   :  { %v4462_v15 = vpop.permute.xlu1 %4461 }
0x1d42   :  { %5946 = vpow2.f32 %v4449_v47  ;;  %5749 = vmatpush3.msra.mxu1 %v4462_v15 }
0x1d43   :  { %5751 = vmatmul.mubr.msk.f32.vlgmr.msra.gmra.mxu1 %vm855_vm4, %v4459_v48  ;;  %5758 = vmatprep.subr.mxu1 %v3055_v23 }
0x1d44   :  { %5759 = vmatpush3.msra.mxu1 %v3055_v23 }
0x1d45   :  { %5774 = vmatprep.subr.mxu1 %v4852_v9 }
0x1d4f   :  { %v5947_v13 = vpop.eup %5946 }
0x1d50   :  { %v4454_v20 = vsel %vm855_vm4, %v5947_v13, 0.0 }
0x1d51   :  { %4455 = vadd.xlane.f32.xlu0 %v4454_v20 }
0x1d67   :  { %4537 = vrot.lane.b32.xlu0 %v7047_v37, %s6530_s28 }
0x1dda   :  { %v4456_v49 = vpop.xlane.xlu0 %4455 }
0x1ddb   :  { %5948 = vrcp.f32 %v4456_v49  ;;  %v5245_v49 = vld [vmem:[#allocation34] ss:$0 sm:$0xff] }
0x1dde   :  { %v4538_v50 = vpop.permute.xlu0 %4537 }
0x1ddf   :  { %5754 = vmatpush3.msra.mxu0 %v4538_v50 }
0x1de0   :  { %5763 = vmatprep.subr.mxu0 %v4754_v4 }
0x1de8   :  { %v5949_v51 = vpop.eup %5948 }
0x1de9   :  { %v4460_v52 = vmul.f32 %v5949_v51, %v5947_v13 }
0x1deb   :  { %5756 = vmatmul.mubr.msk.f32.vlgmr.msra.gmra.mxu0 %vm855_vm4, %v4460_v52 }
0x1dec   :  { %5764 = vmatpush3.msra.mxu0 %v4754_v4 }
0x1ded   :  { %5765 = vmatprep.subr.mxu0 %v4753_v5 }
0x1dee   :  { %5766 = vmatpush3.msra.mxu0 %v4753_v5  ;;  %v5248_v5 = vld [vmem:[#allocation35] ss:$0 sm:$0xff] }
0x1def   :  { %5767 = vmatprep.subr.mxu0 %v4752_v6 }
0x1df0   :  { %5768 = vmatpush3.msra.mxu0 %v4752_v6 }
0x1df1   :  { %5769 = vmatprep.subr.mxu0 %v4751_v7 }
0x1df2   :  { %5770 = vmatpush3.msra.mxu0 %v4751_v7 }
0x1e03   :  { %v4533_v53 = vpop.f32.mrf.mxu1 }
0x1e04   :  { %5760 = vmatprep.mubr.msk.f32.mxu1 %vm855_vm4, %v4533_v53 }
0x1e05   :  { %v5752_v54 = vpop.f32.mrf.mxu1 }
0x1eab   :  { %v4609_v31 = vpop.f32.mrf.mxu0 }
0x1eac   :  { %5761 = vmatmul.mubr.msk.f32.vlgmr.msra.gmra.mxu1 %vm855_vm4, %v4609_v31 }
0x1ead   :  { %v5757_v55 = vpop.f32.mrf.mxu0  ;;  %5775 = vmatpush3.msra.mxu1 %v4852_v9 }
0x1eae   :  { %5776 = vmatprep.subr.mxu1 %v4851_v10 }
0x1eaf   :  { %5777 = vmatpush3.msra.mxu1 %v4851_v10 }
0x1eb0   :  { %5778 = vmatprep.subr.mxu1 %v4850_v11 }
0x1eb1   :  { %5779 = vmatpush3.msra.mxu1 %v4850_v11  ;;  %v5249_v11 = vld [vmem:[#allocation37] ss:$0 sm:$0xff] }
0x1eb2   :  { %5780 = vmatprep.subr.mxu1 %v4849_v12 }
0x1eb3   :  { %5781 = vmatpush3.msra.mxu1 %v4849_v12 }
0x1eb4   :  { %5782 = vmatprep.subr.mxu1 %v4848_v41 }
0x1eb5   :  { %5783 = vmatpush3.msra.mxu1 %v4848_v41 }
0x1eb6   :  { %5784 = vmatprep.subr.mxu1 %v4847_v42 }
0x1eb7   :  { %5785 = vmatpush3.msra.mxu1 %v4847_v42 }
0x1eb8   :  { %5786 = vmatprep.subr.mxu1 %v4846_v43 }
0x1eb9   :  { %5787 = vmatpush3.msra.mxu1 %v4846_v43 }
0x1eba   :  { %5788 = vmatprep.subr.mxu1 %v4845_v45 }
0x1ebb   :  { %5789 = vmatpush3.msra.mxu1 %v4845_v45 }
0x1f6c   :  { %v5762_v37 = vpop.f32.mrf.mxu1 }
0x1f6d   :  { %v4695_v56 = vadd.f32 %v5762_v37, %v4282_v33 }
0x1f6e   :  { %v4685_v34 = vpop.f32.mrf.mxu1 }
0x1f6f   :  { %v4697_v57 = vadd.f32 %v4695_v56, %v7000_v44  ;;  %v4694_v29 = vadd.f32 %v4685_v34, %v4281_v39 }
0x1f71   :  { %v7199_v35 = vadd.f32 %v5239_v30, %v4697_v57  ;;  %v4696_v58 = vadd.f32 %v4694_v29, %v7003_v46 }
0x1f73   :  { %v7202_v17 = vadd.f32 %v5239_v30, %v4696_v58  ;;  %v4712_v59 = vsel %vm543_vm2, %v7199_v35, 0.0 }
0x1f74   :  { %4713 = vadd.xlane.f32.xlu0 %v4712_v59 }
0x1f75   :  { %v4709_v60 = vsel %vm543_vm2, %v7202_v17, 0.0 }
0x1f76   :  { %4710 = vadd.xlane.f32.xlu1 %v4709_v60 }
0x1ffd   :  { %v4714_v61 = vpop.xlane.xlu0 %4713 }
0x1ffe   :  { %v4716_v44 = vmul.f32 0.03125, %v4714_v61  ;;  %v4990_v61 = vld [vmem:[%s6727_s27 + $0x18] sm:$0xff] }
0x1fff   :  { %v4711_v62 = vpop.xlane.xlu1 %4710  ;;  %5793 = vmatprep.subr.mxu0 %v4990_v61 }
0x2000   :  { %v4718_v63 = vsub.f32 %v7199_v35, %v4716_v44  ;;  %v4715_v46 = vmul.f32 0.03125, %v4711_v62  ;;  %v4989_v44 = vld [vmem:[%s6727_s27 + $0x10] sm:$0xff]  ;;  %v4988_v62 = vld [vmem:[%s6727_s27 + $0x8] sm:$0xff] }
0x2002   :  { %v4717_v0 = vsub.f32 %v7202_v17, %v4715_v46  ;;  %v4720_v1 = vmul.f32 %v4718_v63, %v4718_v63 }
0x2004   :  { %v4724_v2 = vsel %vm543_vm2, %v4720_v1, 0.0  ;;  %v4719_v38 = vmul.f32 %v4717_v0, %v4717_v0 }
0x2005   :  { %4725 = vadd.xlane.f32.xlu0 %v4724_v2 }
0x2006   :  { %v4721_v3 = vsel %vm543_vm2, %v4719_v38, 0.0 }
0x2007   :  { %4722 = vadd.xlane.f32.xlu1 %v4721_v3 }
0x208e   :  { %v4726_v14 = vpop.xlane.xlu0 %4725 }
0x208f   :  { %v4728_v16 = vmul.f32 0.03125, %v4726_v14 }
0x2090   :  { %v4723_v18 = vpop.xlane.xlu1 %4722 }
0x2091   :  { %v4730_v19 = vadd.f32 1e-05, %v4728_v16  ;;  %v4727_v21 = vmul.f32 0.03125, %v4723_v18 }
0x2093   :  { %5950 = vrsqrt.f32 %v4730_v19  ;;  %v4729_v24 = vadd.f32 1e-05, %v4727_v21 }
0x2095   :  { %5952 = vrsqrt.f32 %v4729_v24 }
0x20a0   :  { %v5951_v25 = vpop.eup %5950 }
0x20a1   :  { %v4734_v27 = vmul.f32 %v5951_v25, %v4718_v63  ;;  %v4987_v63 = vld [vmem:[%s6727_s27] sm:$0xff]  ;;  %s6531_s27 = smov [#allocation38]  }
0x20a2   :  { %v5953_v28 = vpop.eup %5952  ;;  %s5079_s9 = sshll.u32 %s6531_s27, 4  ;;  %s5080_s9 = int_to_ptr.vmem [resolvable:$true] %s5079_s9 }
0x20a3   :  { %v4733_v32 = vmul.f32 %v5953_v28, %v4717_v0  ;;  %v4742_v33 = vmul.f32 %v5240_v26, %v4734_v27  ;;  %s6418_s15 = scalar_lea.vmem %s5080_s9, 256  ;;  %p6423_p4 = scmp.lt.s32.totalorder %s5080_s9, %s5080_s9 }
0x20a4   :  { %p6419_p3 = scmp.ne.s32.totalorder %s5080_s9, %s6418_s15  ;;  %p6424_p5 = scmp.lt.s32.totalorder %s6418_s15, %s6418_s15 }
0x20a5   :  { %v4741_v39 = vmul.f32 %v5240_v26, %v4733_v32  ;;  %v4750_v8 = vadd.f32 %v5241_v36, %v4742_v33 }
0x20a6   :  { %p6425_p6 = por %p6424_p5, %p6423_p4 }
0x20a7   :  { %v4749_v40 = vadd.f32 %v5241_v36, %v4741_v39 }
0x20a8   :  { %p6426_p7 = pnand %p6425_p6, %p6419_p3 }
0x20a9   :  { %5771 = vmatprep.mubr.msk.f32.mxu0 %vm543_vm2, %v4749_v40 }
0x20aa   :  { %5772 = vmatmul.mubr.msk.f32.vlgmr.msra.gmra.mxu0 %vm543_vm2, %v4750_v8 }
0x20ab   :  { %5794 = vmatpush3.msra.mxu0 %v4990_v61 }
0x20ac   :  { %5795 = vmatprep.subr.mxu0 %v4989_v44 }
0x20ad   :  { %5796 = vmatpush3.msra.mxu0 %v4989_v44 }
0x20ae   :  { %5797 = vmatprep.subr.mxu0 %v4988_v62 }
0x20af   :  { %5798 = vmatpush3.msra.mxu0 %v4988_v62 }
0x20b0   :  { %5799 = vmatprep.subr.mxu0 %v4987_v63 }
0x20b1   :  { %5800 = vmatpush3.msra.mxu0 %v4987_v63 }
0x216a   :  { %v5773_v47 = vpop.f32.mrf.mxu0 }
0x216b   :  { %v4840_v15 = vadd.f32 %v5773_v47, %v5242_v22 }
0x216c   :  { %v4834_v48 = vpop.f32.mrf.mxu0 }
0x216d   :  { %v4835_v13 = vadd.f32 %v5242_v22, %v4834_v48  ;;  %v4844_v23 = vmax.f32 %v4840_v15, 0.0 }
0x216f   :  { %v4843_v20 = vmax.f32 %v4835_v13, 0.0 }
0x2171   :  { %5790 = vmatprep.mubr.msk.f32.mxu1 %vm2660_vm5, %v4843_v20 }
0x2172   :  { %5791 = vmatmul.mubr.msk.f32.vlgmr.msra.gmra.mxu1 %vm2660_vm5, %v4844_v23 }
0x2232   :  { %v5792_v50 = vpop.f32.mrf.mxu1 }
0x2233   :  { %v4938_v51 = vadd.f32 %v5792_v50, %v5245_v49 }
0x2234   :  { %v4932_v52 = vpop.f32.mrf.mxu1 }
0x2235   :  { %v4933_v53 = vadd.f32 %v5245_v49, %v4932_v52  ;;  %v4942_v54 = vadd.f32 %v4938_v51, %v7199_v35 }
0x2237   :  { %v4948_v31 = vsel %vm543_vm2, %v4942_v54, 0.0  ;;  %v4941_v55 = vadd.f32 %v4933_v53, %v7202_v17 }
0x2238   :  { %4949 = vadd.xlane.f32.xlu0 %v4948_v31 }
0x2239   :  { %v4945_v37 = vsel %vm543_vm2, %v4941_v55, 0.0 }
0x223a   :  { %4946 = vadd.xlane.f32.xlu1 %v4945_v37 }
0x22c1   :  { %v4950_v56 = vpop.xlane.xlu0 %4949 }
0x22c2   :  { %v4952_v30 = vmul.f32 0.03125, %v4950_v56 }
0x22c3   :  { %v4947_v34 = vpop.xlane.xlu1 %4946 }
0x22c4   :  { %v4954_v57 = vsub.f32 %v4942_v54, %v4952_v30  ;;  %v4951_v29 = vmul.f32 0.03125, %v4947_v34 }
0x22c6   :  { %v4953_v58 = vsub.f32 %v4941_v55, %v4951_v29  ;;  %v4956_v59 = vmul.f32 %v4954_v57, %v4954_v57 }
0x22c8   :  { %v4960_v35 = vsel %vm543_vm2, %v4956_v59, 0.0  ;;  %v4955_v60 = vmul.f32 %v4953_v58, %v4953_v58 }
0x22c9   :  { %4961 = vadd.xlane.f32.xlu0 %v4960_v35 }
0x22ca   :  { %v4957_v17 = vsel %vm543_vm2, %v4955_v60, 0.0 }
0x22cb   :  { %4958 = vadd.xlane.f32.xlu1 %v4957_v17 }
0x2352   :  { %v4962_v46 = vpop.xlane.xlu0 %4961 }
0x2353   :  { %v4964_v0 = vmul.f32 0.03125, %v4962_v46 }
0x2354   :  { %v4959_v1 = vpop.xlane.xlu1 %4958 }
0x2355   :  { %v4966_v2 = vadd.f32 1e-05, %v4964_v0  ;;  %v4963_v38 = vmul.f32 0.03125, %v4959_v1 }
0x2357   :  { %5954 = vrsqrt.f32 %v4966_v2  ;;  %v4965_v3 = vadd.f32 1e-05, %v4963_v38 }
0x2359   :  { %5956 = vrsqrt.f32 %v4965_v3 }
0x2364   :  { %v5955_v4 = vpop.eup %5954 }
0x2365   :  { %v4970_v6 = vmul.f32 %v5955_v4, %v4954_v57 }
0x2366   :  { %v5957_v7 = vpop.eup %5956 }
0x2367   :  { %v4969_v9 = vmul.f32 %v5957_v7, %v4953_v58  ;;  %v4978_v10 = vmul.f32 %v5248_v5, %v4970_v6 }
0x2369   :  { %v4977_v12 = vmul.f32 %v5248_v5, %v4969_v9  ;;  %v4986_v16 = vadd.f32 %v5249_v11, %v4978_v10 }
0x236b   :  { %v4985_v14 = vadd.f32 %v5249_v11, %v4977_v12 }
0x236d   :  { %5801 = vmatprep.mubr.msk.f32.mxu0 %vm543_vm2, %v4985_v14 }
0x236e   :  { %5802 = vmatmul.mubr.msk.f32.vlgmr.msra.gmra.mxu0 %vm543_vm2, %v4986_v16 }
0x242e   :  { %v5803_v18 = vpop.f32.mrf.mxu0 }
0x242f   :  { %5073 = vst [vmem:[#allocation38 + $0x8] sm:$0xff] %v5803_v18 }
0x2430   :  { %v5063_v19 = vpop.f32.mrf.mxu0 }
0x2431   :  { %5072 = vst [vmem:[#allocation38] sm:$0xff] %v5063_v19 }
0x2432   :  { %6429 = shalt.err (!%p6426_p7)
}
0x2433   :  { %s6532_s21 = smov 128   ;;  %s6533_s17 = smov 8  }
0x2434   :  { %5085 = dma.vmem_to_hbm [thread:$0]  %s5080_s9, 256, %s6732_s20, [#allocation4], %s6532_s21, %s6532_s21, %s6533_s17  }
0x2435   :  { %6462 = dma.done.wait [#allocation4], 256  }
0x2436   :  { %6463 = vsyncadd [#allocation4], 4294967040 }
0x2437   :  { %5089 = vsyncpa [#allocation3], 1 }
0x2438   :  { %5090 = vsyncpa [#allocation6], 1 }
0x2439   :  { %5091 = vsyncpa [#allocation9], 1 }
0x243a   :  { %5092 = vsyncpa [#allocation12], 1 }
0x243b   :  { %5093 = vsyncpa [#allocation15], 1 }
0x243c   :  { %5094 = vsyncpa [#allocation18], 1 }
0x243d   :  { %5095 = vsyncpa [#allocation21], 1 }
0x243e   :  { %5096 = vsyncpa [#allocation24], 1 }
0x243f   :  { %5097 = vsyncpa [#allocation27], 1 }
0x2440   :  { %5098 = vsyncpa [#allocation30], 1 }
0x2441   :  { %5099 = vsyncpa [#allocation33], 1 }
0x2442   :  { %5100 = vsyncpa [#allocation36], 1 }
0x2443   :  { %5101 = vsyncpa [#allocation4], 1 }

</bundles_post_ra>
